<compile_context>
chip_gen: v7x
topology: tpu7x:2x2x1
jax: 0.10.0
libtpu: 0.0.40
codegen_flags: <defaults>
</compile_context>

<pallas_src>
import math

import jax
import jax.numpy as jnp
from jax import lax
from jax.experimental import pallas as pl
from jax.experimental.pallas import tpu as pltpu

N_GROUPS = 32        # nn.GroupNorm(32, channels)
N_HEADS = 4          # CrossAttention(4, channels, d_context, True, False)
EPS = 1e-5           # default eps of GroupNorm / LayerNorm


def cross_attention_block_kernel(
    x_ref, y_ref, gmat_ref,
    gn_g_ref, gn_b_ref,
    ln_g_ref, ln_b_ref,
    wq_ref, bq_ref,
    wk_ref, bk_ref,
    wv_ref, bv_ref,
    wo_ref,
    o_ref,
):
    f32 = jnp.float32
    B, HW, C = x_ref.shape
    dh = C // N_HEADS
    scale = 1.0 / math.sqrt(dh)

    # Hoisted: weights / biases / norm params loaded once per grid step.
    gmat = gmat_ref[...]                 # (C, C) group-average matrix, 1/(gsize*HW) entries
    gn_g = gn_g_ref[...]                 # (1, C)
    gn_b = gn_b_ref[...]                 # (1, C)
    ln_g = ln_g_ref[...]                 # (1, Dc)
    ln_b = ln_b_ref[...]                 # (1, Dc)
    wq = wq_ref[...]; bq = bq_ref[...]   # (C, C), (1, C)
    wk = wk_ref[...]; bk = bk_ref[...]   # (Dc, C), (1, C)
    wv = wv_ref[...]; bv = bv_ref[...]   # (Dc, C), (1, C)
    wo = wo_ref[...]                     # (C, C)

    for b in range(B):                   # small static batch-block loop
        x = x_ref[b].astype(f32)         # (HW, C)  residual / groupnorm input
        y = y_ref[b].astype(f32)         # (Lkv, Dc) context

        # ---------------- GroupNorm(32, C) over (group channels x spatial) ----------
        # per-channel spatial sums (XLU reductions), then tiny group-average matvecs.
        sum_x = jnp.sum(x, axis=0, keepdims=True)                      # (1, C)
        mu = jnp.dot(sum_x, gmat, preferred_element_type=f32)          # (1, C) group means
        xc = x - mu
        sum_d2 = jnp.sum(xc * xc, axis=0, keepdims=True)               # (1, C)
        var = jnp.dot(sum_d2, gmat, preferred_element_type=f32)        # centered variance
        xn = xc * (lax.rsqrt(var + EPS) * gn_g) + gn_b                 # (HW, C)

        # ---------------- LayerNorm(d_context) on y ---------------------------------
        ymu = jnp.mean(y, axis=1, keepdims=True)
        yc = y - ymu
        yvar = jnp.mean(yc * yc, axis=1, keepdims=True)
        yn = yc * (lax.rsqrt(yvar + EPS) * ln_g) + ln_b                # (Lkv, Dc)

        # ---------------- Q/K/V projections (already in token layout, no transposes) -
        q = jnp.dot(xn, wq, preferred_element_type=f32) + bq           # (HW, C)
        k = jnp.dot(yn, wk, preferred_element_type=f32) + bk           # (Lkv, C)
        v = jnp.dot(yn, wv, preferred_element_type=f32) + bv           # (Lkv, C)

        # ---------------- multi-head attention + fused output projection + residual -
        # attn @ Wo == sum_h head_out_h @ Wo[h*dh:(h+1)*dh, :]  ->  no concat needed.
        acc = x                                                        # residual start
        for h in range(N_HEADS):
            lo, hi = h * dh, (h + 1) * dh
            qh = q[:, lo:hi]                                           # (HW, dh)
            kh = k[:, lo:hi]                                           # (Lkv, dh)
            vh = v[:, lo:hi]                                           # (Lkv, dh)
            s = lax.dot_general(qh, kh, (((1,), (1,)), ((), ())),
                                preferred_element_type=f32) * scale    # (HW, Lkv)
            s = s - jnp.max(s, axis=-1, keepdims=True)
            p = jnp.exp(s)
            p = p * pl.reciprocal(jnp.sum(p, axis=-1, keepdims=True), approx=True)
            ho = jnp.dot(p, vh, preferred_element_type=f32)            # (HW, dh)
            acc = acc + jnp.dot(ho, wo[lo:hi, :],
                                preferred_element_type=f32)            # (HW, C)

        o_ref[b] = acc.astype(o_ref.dtype)


def cross_attention_block(x, y, p):
    """x: (N, C, H, W) NCHW, y: (N, Lkv, Dc). Returns (N, C, H, W)."""
    N, C, H, W = x.shape
    _, Lkv, Dc = y.shape
    HW = H * W
    gsize = C // N_GROUPS

    # Layout fix done in XLA: kernel works on lane-dense (N, HW, C) slabs.
    x_t = x.reshape(N, C, HW).transpose(0, 2, 1)                       # (N, HW, C)

    # Precomputed group-average matrix (includes the 1/(gsize*HW) factor).
    gidx = jnp.arange(C, dtype=jnp.int32) // gsize
    gmat = (gidx[:, None] == gidx[None, :]).astype(jnp.float32) / float(gsize * HW)

    gn_g = p["gn_gamma"].reshape(1, C)
    gn_b = p["gn_beta"].reshape(1, C)
    ln_g = p["ln_gamma"].reshape(1, Dc)
    ln_b = p["ln_beta"].reshape(1, Dc)
    bq = p["bq"].reshape(1, C)
    bk = p["bk"].reshape(1, C)
    bv = p["bv"].reshape(1, C)

    # Pack several small batch elements per grid step to amortize per-step overhead;
    # realistic UNet shapes (C=512, HW=4096) fall back to B_TILE=1 automatically.
    per_elem = HW * C * x.dtype.itemsize
    B_TILE = 1
    for d in range(1, N + 1):
        if N % d == 0 and d * per_elem <= 2 * 1024 * 1024:
            B_TILE = d
    grid = (N // B_TILE,)

    const2d = lambda shape: pl.BlockSpec(shape, lambda n: (0, 0))

    # Raise the scoped VMEM limit only when the working set needs it.
    f32b = 4
    need = (2 * B_TILE * (2 * HW * C + Lkv * Dc) * f32b                # pipelined x/out/y
            + 2 * (3 * C * C + 2 * Dc * C) * f32b                      # weight blocks
            + B_TILE * (7 * HW * C + 2 * HW * Lkv + 4 * Lkv * C) * f32b)  # live temporaries
    vmem_limit = None
    if need > 32 * 1024 * 1024:
        vmem_limit = min(int(need * 1.2), 100 * 1024 * 1024)

    out = pl.pallas_call(
        cross_attention_block_kernel,
        out_shape=jax.ShapeDtypeStruct((N, HW, C), x.dtype),
        grid=grid,
        in_specs=[
            pl.BlockSpec((B_TILE, HW, C), lambda n: (n, 0, 0)),        # x (token layout)
            pl.BlockSpec((B_TILE, Lkv, Dc), lambda n: (n, 0, 0)),      # y
            const2d((C, C)),                                           # group-average matrix
            const2d((1, C)), const2d((1, C)),                          # groupnorm gamma/beta
            const2d((1, Dc)), const2d((1, Dc)),                        # layernorm gamma/beta
            const2d((C, C)), const2d((1, C)),                          # Wq, bq
            const2d((Dc, C)), const2d((1, C)),                         # Wk, bk
            const2d((Dc, C)), const2d((1, C)),                         # Wv, bv
            const2d((C, C)),                                           # Wo (no bias)
        ],
        out_specs=pl.BlockSpec((B_TILE, HW, C), lambda n: (n, 0, 0)),
        compiler_params=pltpu.CompilerParams(
            dimension_semantics=("parallel",),
            vmem_limit_bytes=vmem_limit),
    )(x_t, y, gmat, gn_g, gn_b, ln_g, ln_b,
      p["wq"], bq, p["wk"], bk, p["wv"], bv, p["wo"])

    return out.transpose(0, 2, 1).reshape(N, C, H, W)


def reference(x, y, p):
    """Pure-JAX reference matching the PyTorch forward."""
    N, C, H, W = x.shape
    HW = H * W
    gsize = C // N_GROUPS
    dh = C // N_HEADS

    xg = x.reshape(N, N_GROUPS, gsize, H, W)
    mu = xg.mean(axis=(2, 3, 4), keepdims=True)
    var = ((xg - mu) ** 2).mean(axis=(2, 3, 4), keepdims=True)
    xn = ((xg - mu) / jnp.sqrt(var + EPS)).reshape(N, C, H, W)
    xn = xn * p["gn_gamma"].reshape(1, C, 1, 1) + p["gn_beta"].reshape(1, C, 1, 1)

    ymu = y.mean(-1, keepdims=True)
    yvar = ((y - ymu) ** 2).mean(-1, keepdims=True)
    yn = (y - ymu) / jnp.sqrt(yvar + EPS) * p["ln_gamma"] + p["ln_beta"]

    xt = xn.reshape(N, C, HW).transpose(0, 2, 1)              # (N, HW, C)
    q = xt @ p["wq"] + p["bq"]
    k = yn @ p["wk"] + p["bk"]
    v = yn @ p["wv"] + p["bv"]

    def split(t):
        n, L, _ = t.shape
        return t.reshape(n, L, N_HEADS, dh).transpose(0, 2, 1, 3)

    qh, kh, vh = split(q), split(k), split(v)
    s = jnp.einsum("nhqd,nhkd->nhqk", qh, kh) / math.sqrt(dh)
    a = jax.nn.softmax(s, axis=-1)
    o = jnp.einsum("nhqk,nhkd->nhqd", a, vh)
    o = o.transpose(0, 2, 1, 3).reshape(N, HW, C) @ p["wo"]
    o = o.transpose(0, 2, 1).reshape(N, C, H, W)
    return o + x


def make_params(key, C, Dc):
    ks = jax.random.split(key, 12)
    std = 0.05
    return {
        "gn_gamma": 1.0 + 0.1 * jax.random.normal(ks[0], (C,), jnp.float32),
        "gn_beta": 0.1 * jax.random.normal(ks[1], (C,), jnp.float32),
        "ln_gamma": 1.0 + 0.1 * jax.random.normal(ks[2], (Dc,), jnp.float32),
        "ln_beta": 0.1 * jax.random.normal(ks[3], (Dc,), jnp.float32),
        # Linear weights stored already transposed to (in, out)
        "wq": std * jax.random.normal(ks[4], (C, C), jnp.float32),
        "bq": std * jax.random.normal(ks[5], (C,), jnp.float32),
        "wk": std * jax.random.normal(ks[6], (Dc, C), jnp.float32),
        "bk": std * jax.random.normal(ks[7], (C,), jnp.float32),
        "wv": std * jax.random.normal(ks[8], (Dc, C), jnp.float32),
        "bv": std * jax.random.normal(ks[9], (C,), jnp.float32),
        "wo": std * jax.random.normal(ks[10], (C, C), jnp.float32),   # out_proj bias=False
    }


if __name__ == "__main__":
    # small shapes: batch=2, channels=64 (divisible by 32 groups / 4 heads),
    # spatial 8x8, context seq=16, d_context=64
    N, C, H, W = 2, 64, 8, 8
    Lkv, Dc = 16, 64

    key = jax.random.PRNGKey(0)
    kx, ky, kp = jax.random.split(key, 3)
    x = jax.random.normal(kx, (N, C, H, W), jnp.float32)
    y = jax.random.normal(ky, (N, Lkv, Dc), jnp.float32)
    params = make_params(kp, C, Dc)

    out = cross_attention_block(x, y, params)
    out = jax.block_until_ready(out)

    ref = jax.block_until_ready(reference(x, y, params))
    assert out.shape == (N, C, H, W)
    assert jnp.allclose(out, ref, atol=1e-3, rtol=1e-3), (
        f"max abs err {jnp.max(jnp.abs(out - ref))}")

    print("KERNEL_OK")
</pallas_src>

<mosaic_0001>
module attributes {stable_mosaic.version = 11 : i64} {
  func.func @cross_attention_block_kernel(%arg0: i32, %arg1: memref<2x64x64xf32, #tpu.memory_space<vmem>>, %arg2: memref<2x16x64xf32, #tpu.memory_space<vmem>>, %arg3: memref<64x64xf32, #tpu.memory_space<vmem>>, %arg4: memref<1x64xf32, #tpu.memory_space<vmem>>, %arg5: memref<1x64xf32, #tpu.memory_space<vmem>>, %arg6: memref<1x64xf32, #tpu.memory_space<vmem>>, %arg7: memref<1x64xf32, #tpu.memory_space<vmem>>, %arg8: memref<64x64xf32, #tpu.memory_space<vmem>>, %arg9: memref<1x64xf32, #tpu.memory_space<vmem>>, %arg10: memref<64x64xf32, #tpu.memory_space<vmem>>, %arg11: memref<1x64xf32, #tpu.memory_space<vmem>>, %arg12: memref<64x64xf32, #tpu.memory_space<vmem>>, %arg13: memref<1x64xf32, #tpu.memory_space<vmem>>, %arg14: memref<64x64xf32, #tpu.memory_space<vmem>>, %arg15: memref<2x64x64xf32, #tpu.memory_space<vmem>>) attributes {dimension_semantics = [#tpu.dimension_semantics<parallel>], iteration_bounds = array<i64: 1>, scalar_prefetch = 0 : i64, scratch_operands = 0 : i64, tpu.core_type = #tpu.core_type<tc>, window_params = [{transform_indices = @transform_0, window_bounds = array<i64: 2, 64, 64>}, {transform_indices = @transform_1, window_bounds = array<i64: 2, 16, 64>}, {pipeline_mode = #tpu.pipeline_mode<synchronous>, transform_indices = @transform_2, window_bounds = array<i64: 64, 64>}, {pipeline_mode = #tpu.pipeline_mode<synchronous>, transform_indices = @transform_3, window_bounds = array<i64: 1, 64>}, {pipeline_mode = #tpu.pipeline_mode<synchronous>, transform_indices = @transform_4, window_bounds = array<i64: 1, 64>}, {pipeline_mode = #tpu.pipeline_mode<synchronous>, transform_indices = @transform_5, window_bounds = array<i64: 1, 64>}, {pipeline_mode = #tpu.pipeline_mode<synchronous>, transform_indices = @transform_6, window_bounds = array<i64: 1, 64>}, {pipeline_mode = #tpu.pipeline_mode<synchronous>, transform_indices = @transform_7, window_bounds = array<i64: 64, 64>}, {pipeline_mode = #tpu.pipeline_mode<synchronous>, transform_indices = @transform_8, window_bounds = array<i64: 1, 64>}, {pipeline_mode = #tpu.pipeline_mode<synchronous>, transform_indices = @transform_9, window_bounds = array<i64: 64, 64>}, {pipeline_mode = #tpu.pipeline_mode<synchronous>, transform_indices = @transform_10, window_bounds = array<i64: 1, 64>}, {pipeline_mode = #tpu.pipeline_mode<synchronous>, transform_indices = @transform_11, window_bounds = array<i64: 64, 64>}, {pipeline_mode = #tpu.pipeline_mode<synchronous>, transform_indices = @transform_12, window_bounds = array<i64: 1, 64>}, {pipeline_mode = #tpu.pipeline_mode<synchronous>, transform_indices = @transform_13, window_bounds = array<i64: 64, 64>}, {transform_indices = @transform_14, window_bounds = array<i64: 2, 64, 64>}]} {
    %c0 = arith.constant 0 : index
    %c0_0 = arith.constant 0 : index
    %0 = vector.load %arg3[%c0, %c0_0] : memref<64x64xf32, #tpu.memory_space<vmem>>, vector<64x64xf32>
    %c0_1 = arith.constant 0 : index
    %c0_2 = arith.constant 0 : index
    %1 = vector.load %arg4[%c0_1, %c0_2] : memref<1x64xf32, #tpu.memory_space<vmem>>, vector<1x64xf32>
    %c0_3 = arith.constant 0 : index
    %c0_4 = arith.constant 0 : index
    %2 = vector.load %arg5[%c0_3, %c0_4] : memref<1x64xf32, #tpu.memory_space<vmem>>, vector<1x64xf32>
    %c0_5 = arith.constant 0 : index
    %c0_6 = arith.constant 0 : index
    %3 = vector.load %arg6[%c0_5, %c0_6] : memref<1x64xf32, #tpu.memory_space<vmem>>, vector<1x64xf32>
    %c0_7 = arith.constant 0 : index
    %c0_8 = arith.constant 0 : index
    %4 = vector.load %arg7[%c0_7, %c0_8] : memref<1x64xf32, #tpu.memory_space<vmem>>, vector<1x64xf32>
    %c0_9 = arith.constant 0 : index
    %c0_10 = arith.constant 0 : index
    %5 = vector.load %arg8[%c0_9, %c0_10] : memref<64x64xf32, #tpu.memory_space<vmem>>, vector<64x64xf32>
    %c0_11 = arith.constant 0 : index
    %c0_12 = arith.constant 0 : index
    %6 = vector.load %arg9[%c0_11, %c0_12] : memref<1x64xf32, #tpu.memory_space<vmem>>, vector<1x64xf32>
    %c0_13 = arith.constant 0 : index
    %c0_14 = arith.constant 0 : index
    %7 = vector.load %arg10[%c0_13, %c0_14] : memref<64x64xf32, #tpu.memory_space<vmem>>, vector<64x64xf32>
    %c0_15 = arith.constant 0 : index
    %c0_16 = arith.constant 0 : index
    %8 = vector.load %arg11[%c0_15, %c0_16] : memref<1x64xf32, #tpu.memory_space<vmem>>, vector<1x64xf32>
    %c0_17 = arith.constant 0 : index
    %c0_18 = arith.constant 0 : index
    %9 = vector.load %arg12[%c0_17, %c0_18] : memref<64x64xf32, #tpu.memory_space<vmem>>, vector<64x64xf32>
    %c0_19 = arith.constant 0 : index
    %c0_20 = arith.constant 0 : index
    %10 = vector.load %arg13[%c0_19, %c0_20] : memref<1x64xf32, #tpu.memory_space<vmem>>, vector<1x64xf32>
    %c0_21 = arith.constant 0 : index
    %c0_22 = arith.constant 0 : index
    %11 = vector.load %arg14[%c0_21, %c0_22] : memref<64x64xf32, #tpu.memory_space<vmem>>, vector<64x64xf32>
    %c0_23 = arith.constant 0 : index
    %c0_24 = arith.constant 0 : index
    %c0_25 = arith.constant 0 : index
    %12 = vector.load %arg1[%c0_23, %c0_24, %c0_25] : memref<2x64x64xf32, #tpu.memory_space<vmem>>, vector<1x64x64xf32>
    %13 = vector.shape_cast %12 : vector<1x64x64xf32> to vector<64x64xf32>
    %c0_26 = arith.constant 0 : index
    %c0_27 = arith.constant 0 : index
    %c0_28 = arith.constant 0 : index
    %14 = vector.load %arg2[%c0_26, %c0_27, %c0_28] : memref<2x16x64xf32, #tpu.memory_space<vmem>>, vector<1x16x64xf32>
    %15 = vector.shape_cast %14 : vector<1x16x64xf32> to vector<16x64xf32>
    %cst = arith.constant dense<0.000000e+00> : vector<64xf32>
    %16 = vector.multi_reduction <add>, %13, %cst [0] : vector<64x64xf32> to vector<64xf32>
    %17 = vector.shape_cast %16 : vector<64xf32> to vector<1x64xf32>
    %cst_29 = arith.constant dense<0.000000e+00> : vector<1x64xf32>
    %18 = tpu.matmul %17, %0, %cst_29 {dimension_numbers = #tpu.dot_dimension_numbers<[1], [0], [0], [1], [0, 0, 1, 1], [], []>} : vector<1x64xf32>, vector<64x64xf32>, vector<1x64xf32> -> vector<1x64xf32>
    %19 = vector.broadcast %18 : vector<1x64xf32> to vector<64x64xf32>
    %20 = arith.subf %13, %19 : vector<64x64xf32>
    %21 = arith.mulf %20, %20 : vector<64x64xf32>
    %cst_30 = arith.constant dense<0.000000e+00> : vector<64xf32>
    %22 = vector.multi_reduction <add>, %21, %cst_30 [0] : vector<64x64xf32> to vector<64xf32>
    %23 = vector.shape_cast %22 : vector<64xf32> to vector<1x64xf32>
    %cst_31 = arith.constant dense<0.000000e+00> : vector<1x64xf32>
    %24 = tpu.matmul %23, %0, %cst_31 {dimension_numbers = #tpu.dot_dimension_numbers<[1], [0], [0], [1], [0, 0, 1, 1], [], []>} : vector<1x64xf32>, vector<64x64xf32>, vector<1x64xf32> -> vector<1x64xf32>
    %cst_32 = arith.constant 9.99999974E-6 : f32
    %25 = vector.broadcast %cst_32 : f32 to vector<1x64xf32>
    %26 = arith.addf %24, %25 : vector<1x64xf32>
    %27 = math.rsqrt %26 : vector<1x64xf32>
    %28 = arith.mulf %27, %1 : vector<1x64xf32>
    %29 = vector.broadcast %28 : vector<1x64xf32> to vector<64x64xf32>
    %30 = arith.mulf %20, %29 : vector<64x64xf32>
    %31 = vector.broadcast %2 : vector<1x64xf32> to vector<64x64xf32>
    %32 = arith.addf %30, %31 : vector<64x64xf32>
    %cst_33 = arith.constant dense<0.000000e+00> : vector<16xf32>
    %33 = vector.multi_reduction <add>, %15, %cst_33 [1] : vector<16x64xf32> to vector<16xf32>
    %34 = vector.shape_cast %33 : vector<16xf32> to vector<16x1xf32>
    %cst_34 = arith.constant 6.400000e+01 : f32
    %35 = vector.broadcast %cst_34 : f32 to vector<16x1xf32>
    %36 = arith.divf %34, %35 : vector<16x1xf32>
    %37 = vector.broadcast %36 : vector<16x1xf32> to vector<16x64xf32>
    %38 = arith.subf %15, %37 : vector<16x64xf32>
    %39 = arith.mulf %38, %38 : vector<16x64xf32>
    %cst_35 = arith.constant dense<0.000000e+00> : vector<16xf32>
    %40 = vector.multi_reduction <add>, %39, %cst_35 [1] : vector<16x64xf32> to vector<16xf32>
    %41 = vector.shape_cast %40 : vector<16xf32> to vector<16x1xf32>
    %cst_36 = arith.constant 6.400000e+01 : f32
    %42 = vector.broadcast %cst_36 : f32 to vector<16x1xf32>
    %43 = arith.divf %41, %42 : vector<16x1xf32>
    %cst_37 = arith.constant 9.99999974E-6 : f32
    %44 = vector.broadcast %cst_37 : f32 to vector<16x1xf32>
    %45 = arith.addf %43, %44 : vector<16x1xf32>
    %46 = math.rsqrt %45 : vector<16x1xf32>
    %47 = vector.broadcast %46 : vector<16x1xf32> to vector<16x64xf32>
    %48 = vector.broadcast %3 : vector<1x64xf32> to vector<16x64xf32>
    %49 = arith.mulf %47, %48 : vector<16x64xf32>
    %50 = arith.mulf %38, %49 : vector<16x64xf32>
    %51 = vector.broadcast %4 : vector<1x64xf32> to vector<16x64xf32>
    %52 = arith.addf %50, %51 : vector<16x64xf32>
    %cst_38 = arith.constant dense<0.000000e+00> : vector<64x64xf32>
    %53 = tpu.matmul %32, %5, %cst_38 {dimension_numbers = #tpu.dot_dimension_numbers<[1], [0], [0], [1], [0, 0, 1, 1], [], []>} : vector<64x64xf32>, vector<64x64xf32>, vector<64x64xf32> -> vector<64x64xf32>
    %54 = vector.broadcast %6 : vector<1x64xf32> to vector<64x64xf32>
    %55 = arith.addf %53, %54 : vector<64x64xf32>
    %cst_39 = arith.constant dense<0.000000e+00> : vector<16x64xf32>
    %56 = tpu.matmul %52, %7, %cst_39 {dimension_numbers = #tpu.dot_dimension_numbers<[1], [0], [0], [1], [0, 0, 1, 1], [], []>} : vector<16x64xf32>, vector<64x64xf32>, vector<16x64xf32> -> vector<16x64xf32>
    %57 = vector.broadcast %8 : vector<1x64xf32> to vector<16x64xf32>
    %58 = arith.addf %56, %57 : vector<16x64xf32>
    %cst_40 = arith.constant dense<0.000000e+00> : vector<16x64xf32>
    %59 = tpu.matmul %52, %9, %cst_40 {dimension_numbers = #tpu.dot_dimension_numbers<[1], [0], [0], [1], [0, 0, 1, 1], [], []>} : vector<16x64xf32>, vector<64x64xf32>, vector<16x64xf32> -> vector<16x64xf32>
    %60 = vector.broadcast %10 : vector<1x64xf32> to vector<16x64xf32>
    %61 = arith.addf %59, %60 : vector<16x64xf32>
    %62 = vector.extract_strided_slice %55 {offsets = [0, 0], sizes = [64, 16], strides = [1, 1]} : vector<64x64xf32> to vector<64x16xf32>
    %63 = vector.extract_strided_slice %58 {offsets = [0, 0], sizes = [16, 16], strides = [1, 1]} : vector<16x64xf32> to vector<16x16xf32>
    %64 = vector.extract_strided_slice %61 {offsets = [0, 0], sizes = [16, 16], strides = [1, 1]} : vector<16x64xf32> to vector<16x16xf32>
    %cst_41 = arith.constant dense<0.000000e+00> : vector<64x16xf32>
    %65 = tpu.matmul %62, %63, %cst_41 {dimension_numbers = #tpu.dot_dimension_numbers<[1], [1], [0], [0], [0, 0, 1, 0], [], []>} : vector<64x16xf32>, vector<16x16xf32>, vector<64x16xf32> -> vector<64x16xf32>
    %cst_42 = arith.constant 2.500000e-01 : f32
    %66 = vector.broadcast %cst_42 : f32 to vector<64x16xf32>
    %67 = arith.mulf %65, %66 : vector<64x16xf32>
    %cst_43 = arith.constant dense<0xFF800000> : vector<64xf32>
    %68 = vector.multi_reduction <maximumf>, %67, %cst_43 [1] : vector<64x16xf32> to vector<64xf32>
    %69 = vector.shape_cast %68 : vector<64xf32> to vector<64x1xf32>
    %70 = vector.broadcast %69 : vector<64x1xf32> to vector<64x16xf32>
    %71 = arith.subf %67, %70 : vector<64x16xf32>
    %72 = math.exp %71 : vector<64x16xf32>
    %cst_44 = arith.constant dense<0.000000e+00> : vector<64xf32>
    %73 = vector.multi_reduction <add>, %72, %cst_44 [1] : vector<64x16xf32> to vector<64xf32>
    %74 = vector.shape_cast %73 : vector<64xf32> to vector<64x1xf32>
    %75 = tpu.reciprocal %74 {approx = true} : vector<64x1xf32> -> vector<64x1xf32>
    %76 = vector.broadcast %75 : vector<64x1xf32> to vector<64x16xf32>
    %77 = arith.mulf %72, %76 : vector<64x16xf32>
    %cst_45 = arith.constant dense<0.000000e+00> : vector<64x16xf32>
    %78 = tpu.matmul %77, %64, %cst_45 {dimension_numbers = #tpu.dot_dimension_numbers<[1], [0], [0], [1], [0, 0, 1, 1], [], []>} : vector<64x16xf32>, vector<16x16xf32>, vector<64x16xf32> -> vector<64x16xf32>
    %79 = vector.extract_strided_slice %11 {offsets = [0, 0], sizes = [16, 64], strides = [1, 1]} : vector<64x64xf32> to vector<16x64xf32>
    %cst_46 = arith.constant dense<0.000000e+00> : vector<64x64xf32>
    %80 = tpu.matmul %78, %79, %cst_46 {dimension_numbers = #tpu.dot_dimension_numbers<[1], [0], [0], [1], [0, 0, 1, 1], [], []>} : vector<64x16xf32>, vector<16x64xf32>, vector<64x64xf32> -> vector<64x64xf32>
    %81 = arith.addf %13, %80 : vector<64x64xf32>
    %82 = vector.extract_strided_slice %55 {offsets = [0, 16], sizes = [64, 16], strides = [1, 1]} : vector<64x64xf32> to vector<64x16xf32>
    %83 = vector.extract_strided_slice %58 {offsets = [0, 16], sizes = [16, 16], strides = [1, 1]} : vector<16x64xf32> to vector<16x16xf32>
    %84 = vector.extract_strided_slice %61 {offsets = [0, 16], sizes = [16, 16], strides = [1, 1]} : vector<16x64xf32> to vector<16x16xf32>
    %cst_47 = arith.constant dense<0.000000e+00> : vector<64x16xf32>
    %85 = tpu.matmul %82, %83, %cst_47 {dimension_numbers = #tpu.dot_dimension_numbers<[1], [1], [0], [0], [0, 0, 1, 0], [], []>} : vector<64x16xf32>, vector<16x16xf32>, vector<64x16xf32> -> vector<64x16xf32>
    %cst_48 = arith.constant 2.500000e-01 : f32
    %86 = vector.broadcast %cst_48 : f32 to vector<64x16xf32>
    %87 = arith.mulf %85, %86 : vector<64x16xf32>
    %cst_49 = arith.constant dense<0xFF800000> : vector<64xf32>
    %88 = vector.multi_reduction <maximumf>, %87, %cst_49 [1] : vector<64x16xf32> to vector<64xf32>
    %89 = vector.shape_cast %88 : vector<64xf32> to vector<64x1xf32>
    %90 = vector.broadcast %89 : vector<64x1xf32> to vector<64x16xf32>
    %91 = arith.subf %87, %90 : vector<64x16xf32>
    %92 = math.exp %91 : vector<64x16xf32>
    %cst_50 = arith.constant dense<0.000000e+00> : vector<64xf32>
    %93 = vector.multi_reduction <add>, %92, %cst_50 [1] : vector<64x16xf32> to vector<64xf32>
    %94 = vector.shape_cast %93 : vector<64xf32> to vector<64x1xf32>
    %95 = tpu.reciprocal %94 {approx = true} : vector<64x1xf32> -> vector<64x1xf32>
    %96 = vector.broadcast %95 : vector<64x1xf32> to vector<64x16xf32>
    %97 = arith.mulf %92, %96 : vector<64x16xf32>
    %cst_51 = arith.constant dense<0.000000e+00> : vector<64x16xf32>
    %98 = tpu.matmul %97, %84, %cst_51 {dimension_numbers = #tpu.dot_dimension_numbers<[1], [0], [0], [1], [0, 0, 1, 1], [], []>} : vector<64x16xf32>, vector<16x16xf32>, vector<64x16xf32> -> vector<64x16xf32>
    %99 = vector.extract_strided_slice %11 {offsets = [16, 0], sizes = [16, 64], strides = [1, 1]} : vector<64x64xf32> to vector<16x64xf32>
    %cst_52 = arith.constant dense<0.000000e+00> : vector<64x64xf32>
    %100 = tpu.matmul %98, %99, %cst_52 {dimension_numbers = #tpu.dot_dimension_numbers<[1], [0], [0], [1], [0, 0, 1, 1], [], []>} : vector<64x16xf32>, vector<16x64xf32>, vector<64x64xf32> -> vector<64x64xf32>
    %101 = arith.addf %81, %100 : vector<64x64xf32>
    %102 = vector.extract_strided_slice %55 {offsets = [0, 32], sizes = [64, 16], strides = [1, 1]} : vector<64x64xf32> to vector<64x16xf32>
    %103 = vector.extract_strided_slice %58 {offsets = [0, 32], sizes = [16, 16], strides = [1, 1]} : vector<16x64xf32> to vector<16x16xf32>
    %104 = vector.extract_strided_slice %61 {offsets = [0, 32], sizes = [16, 16], strides = [1, 1]} : vector<16x64xf32> to vector<16x16xf32>
    %cst_53 = arith.constant dense<0.000000e+00> : vector<64x16xf32>
    %105 = tpu.matmul %102, %103, %cst_53 {dimension_numbers = #tpu.dot_dimension_numbers<[1], [1], [0], [0], [0, 0, 1, 0], [], []>} : vector<64x16xf32>, vector<16x16xf32>, vector<64x16xf32> -> vector<64x16xf32>
    %cst_54 = arith.constant 2.500000e-01 : f32
    %106 = vector.broadcast %cst_54 : f32 to vector<64x16xf32>
    %107 = arith.mulf %105, %106 : vector<64x16xf32>
    %cst_55 = arith.constant dense<0xFF800000> : vector<64xf32>
    %108 = vector.multi_reduction <maximumf>, %107, %cst_55 [1] : vector<64x16xf32> to vector<64xf32>
    %109 = vector.shape_cast %108 : vector<64xf32> to vector<64x1xf32>
    %110 = vector.broadcast %109 : vector<64x1xf32> to vector<64x16xf32>
    %111 = arith.subf %107, %110 : vector<64x16xf32>
    %112 = math.exp %111 : vector<64x16xf32>
    %cst_56 = arith.constant dense<0.000000e+00> : vector<64xf32>
    %113 = vector.multi_reduction <add>, %112, %cst_56 [1] : vector<64x16xf32> to vector<64xf32>
    %114 = vector.shape_cast %113 : vector<64xf32> to vector<64x1xf32>
    %115 = tpu.reciprocal %114 {approx = true} : vector<64x1xf32> -> vector<64x1xf32>
    %116 = vector.broadcast %115 : vector<64x1xf32> to vector<64x16xf32>
    %117 = arith.mulf %112, %116 : vector<64x16xf32>
    %cst_57 = arith.constant dense<0.000000e+00> : vector<64x16xf32>
    %118 = tpu.matmul %117, %104, %cst_57 {dimension_numbers = #tpu.dot_dimension_numbers<[1], [0], [0], [1], [0, 0, 1, 1], [], []>} : vector<64x16xf32>, vector<16x16xf32>, vector<64x16xf32> -> vector<64x16xf32>
    %119 = vector.extract_strided_slice %11 {offsets = [32, 0], sizes = [16, 64], strides = [1, 1]} : vector<64x64xf32> to vector<16x64xf32>
    %cst_58 = arith.constant dense<0.000000e+00> : vector<64x64xf32>
    %120 = tpu.matmul %118, %119, %cst_58 {dimension_numbers = #tpu.dot_dimension_numbers<[1], [0], [0], [1], [0, 0, 1, 1], [], []>} : vector<64x16xf32>, vector<16x64xf32>, vector<64x64xf32> -> vector<64x64xf32>
    %121 = arith.addf %101, %120 : vector<64x64xf32>
    %122 = vector.extract_strided_slice %55 {offsets = [0, 48], sizes = [64, 16], strides = [1, 1]} : vector<64x64xf32> to vector<64x16xf32>
    %123 = vector.extract_strided_slice %58 {offsets = [0, 48], sizes = [16, 16], strides = [1, 1]} : vector<16x64xf32> to vector<16x16xf32>
    %124 = vector.extract_strided_slice %61 {offsets = [0, 48], sizes = [16, 16], strides = [1, 1]} : vector<16x64xf32> to vector<16x16xf32>
    %cst_59 = arith.constant dense<0.000000e+00> : vector<64x16xf32>
    %125 = tpu.matmul %122, %123, %cst_59 {dimension_numbers = #tpu.dot_dimension_numbers<[1], [1], [0], [0], [0, 0, 1, 0], [], []>} : vector<64x16xf32>, vector<16x16xf32>, vector<64x16xf32> -> vector<64x16xf32>
    %cst_60 = arith.constant 2.500000e-01 : f32
    %126 = vector.broadcast %cst_60 : f32 to vector<64x16xf32>
    %127 = arith.mulf %125, %126 : vector<64x16xf32>
    %cst_61 = arith.constant dense<0xFF800000> : vector<64xf32>
    %128 = vector.multi_reduction <maximumf>, %127, %cst_61 [1] : vector<64x16xf32> to vector<64xf32>
    %129 = vector.shape_cast %128 : vector<64xf32> to vector<64x1xf32>
    %130 = vector.broadcast %129 : vector<64x1xf32> to vector<64x16xf32>
    %131 = arith.subf %127, %130 : vector<64x16xf32>
    %132 = math.exp %131 : vector<64x16xf32>
    %cst_62 = arith.constant dense<0.000000e+00> : vector<64xf32>
    %133 = vector.multi_reduction <add>, %132, %cst_62 [1] : vector<64x16xf32> to vector<64xf32>
    %134 = vector.shape_cast %133 : vector<64xf32> to vector<64x1xf32>
    %135 = tpu.reciprocal %134 {approx = true} : vector<64x1xf32> -> vector<64x1xf32>
    %136 = vector.broadcast %135 : vector<64x1xf32> to vector<64x16xf32>
    %137 = arith.mulf %132, %136 : vector<64x16xf32>
    %cst_63 = arith.constant dense<0.000000e+00> : vector<64x16xf32>
    %138 = tpu.matmul %137, %124, %cst_63 {dimension_numbers = #tpu.dot_dimension_numbers<[1], [0], [0], [1], [0, 0, 1, 1], [], []>} : vector<64x16xf32>, vector<16x16xf32>, vector<64x16xf32> -> vector<64x16xf32>
    %139 = vector.extract_strided_slice %11 {offsets = [48, 0], sizes = [16, 64], strides = [1, 1]} : vector<64x64xf32> to vector<16x64xf32>
    %cst_64 = arith.constant dense<0.000000e+00> : vector<64x64xf32>
    %140 = tpu.matmul %138, %139, %cst_64 {dimension_numbers = #tpu.dot_dimension_numbers<[1], [0], [0], [1], [0, 0, 1, 1], [], []>} : vector<64x16xf32>, vector<16x64xf32>, vector<64x64xf32> -> vector<64x64xf32>
    %141 = arith.addf %121, %140 : vector<64x64xf32>
    %c0_65 = arith.constant 0 : index
    %c0_66 = arith.constant 0 : index
    %c0_67 = arith.constant 0 : index
    %142 = vector.load %arg15[%c0_65, %c0_66, %c0_67] : memref<2x64x64xf32, #tpu.memory_space<vmem>>, vector<1x64x64xf32>
    %143 = vector.shape_cast %142 : vector<1x64x64xf32> to vector<64x64xf32>
    %144 = vector.shape_cast %141 : vector<64x64xf32> to vector<1x64x64xf32>
    tpu.vector_store %arg15[%c0_65, %c0_66, %c0_67], %144 {strides = array<i32>} : memref<2x64x64xf32, #tpu.memory_space<vmem>>, vector<1x64x64xf32>,
    %c1 = arith.constant 1 : index
    %c0_68 = arith.constant 0 : index
    %c0_69 = arith.constant 0 : index
    %145 = vector.load %arg1[%c1, %c0_68, %c0_69] : memref<2x64x64xf32, #tpu.memory_space<vmem>>, vector<1x64x64xf32>
    %146 = vector.shape_cast %145 : vector<1x64x64xf32> to vector<64x64xf32>
    %c1_70 = arith.constant 1 : index
    %c0_71 = arith.constant 0 : index
    %c0_72 = arith.constant 0 : index
    %147 = vector.load %arg2[%c1_70, %c0_71, %c0_72] : memref<2x16x64xf32, #tpu.memory_space<vmem>>, vector<1x16x64xf32>
    %148 = vector.shape_cast %147 : vector<1x16x64xf32> to vector<16x64xf32>
    %cst_73 = arith.constant dense<0.000000e+00> : vector<64xf32>
    %149 = vector.multi_reduction <add>, %146, %cst_73 [0] : vector<64x64xf32> to vector<64xf32>
    %150 = vector.shape_cast %149 : vector<64xf32> to vector<1x64xf32>
    %cst_74 = arith.constant dense<0.000000e+00> : vector<1x64xf32>
    %151 = tpu.matmul %150, %0, %cst_74 {dimension_numbers = #tpu.dot_dimension_numbers<[1], [0], [0], [1], [0, 0, 1, 1], [], []>} : vector<1x64xf32>, vector<64x64xf32>, vector<1x64xf32> -> vector<1x64xf32>
    %152 = vector.broadcast %151 : vector<1x64xf32> to vector<64x64xf32>
    %153 = arith.subf %146, %152 : vector<64x64xf32>
    %154 = arith.mulf %153, %153 : vector<64x64xf32>
    %cst_75 = arith.constant dense<0.000000e+00> : vector<64xf32>
    %155 = vector.multi_reduction <add>, %154, %cst_75 [0] : vector<64x64xf32> to vector<64xf32>
    %156 = vector.shape_cast %155 : vector<64xf32> to vector<1x64xf32>
    %cst_76 = arith.constant dense<0.000000e+00> : vector<1x64xf32>
    %157 = tpu.matmul %156, %0, %cst_76 {dimension_numbers = #tpu.dot_dimension_numbers<[1], [0], [0], [1], [0, 0, 1, 1], [], []>} : vector<1x64xf32>, vector<64x64xf32>, vector<1x64xf32> -> vector<1x64xf32>
    %cst_77 = arith.constant 9.99999974E-6 : f32
    %158 = vector.broadcast %cst_77 : f32 to vector<1x64xf32>
    %159 = arith.addf %157, %158 : vector<1x64xf32>
    %160 = math.rsqrt %159 : vector<1x64xf32>
    %161 = arith.mulf %160, %1 : vector<1x64xf32>
    %162 = vector.broadcast %161 : vector<1x64xf32> to vector<64x64xf32>
    %163 = arith.mulf %153, %162 : vector<64x64xf32>
    %164 = vector.broadcast %2 : vector<1x64xf32> to vector<64x64xf32>
    %165 = arith.addf %163, %164 : vector<64x64xf32>
    %cst_78 = arith.constant dense<0.000000e+00> : vector<16xf32>
    %166 = vector.multi_reduction <add>, %148, %cst_78 [1] : vector<16x64xf32> to vector<16xf32>
    %167 = vector.shape_cast %166 : vector<16xf32> to vector<16x1xf32>
    %cst_79 = arith.constant 6.400000e+01 : f32
    %168 = vector.broadcast %cst_79 : f32 to vector<16x1xf32>
    %169 = arith.divf %167, %168 : vector<16x1xf32>
    %170 = vector.broadcast %169 : vector<16x1xf32> to vector<16x64xf32>
    %171 = arith.subf %148, %170 : vector<16x64xf32>
    %172 = arith.mulf %171, %171 : vector<16x64xf32>
    %cst_80 = arith.constant dense<0.000000e+00> : vector<16xf32>
    %173 = vector.multi_reduction <add>, %172, %cst_80 [1] : vector<16x64xf32> to vector<16xf32>
    %174 = vector.shape_cast %173 : vector<16xf32> to vector<16x1xf32>
    %cst_81 = arith.constant 6.400000e+01 : f32
    %175 = vector.broadcast %cst_81 : f32 to vector<16x1xf32>
    %176 = arith.divf %174, %175 : vector<16x1xf32>
    %cst_82 = arith.constant 9.99999974E-6 : f32
    %177 = vector.broadcast %cst_82 : f32 to vector<16x1xf32>
    %178 = arith.addf %176, %177 : vector<16x1xf32>
    %179 = math.rsqrt %178 : vector<16x1xf32>
    %180 = vector.broadcast %179 : vector<16x1xf32> to vector<16x64xf32>
    %181 = vector.broadcast %3 : vector<1x64xf32> to vector<16x64xf32>
    %182 = arith.mulf %180, %181 : vector<16x64xf32>
    %183 = arith.mulf %171, %182 : vector<16x64xf32>
    %184 = vector.broadcast %4 : vector<1x64xf32> to vector<16x64xf32>
    %185 = arith.addf %183, %184 : vector<16x64xf32>
    %cst_83 = arith.constant dense<0.000000e+00> : vector<64x64xf32>
    %186 = tpu.matmul %165, %5, %cst_83 {dimension_numbers = #tpu.dot_dimension_numbers<[1], [0], [0], [1], [0, 0, 1, 1], [], []>} : vector<64x64xf32>, vector<64x64xf32>, vector<64x64xf32> -> vector<64x64xf32>
    %187 = vector.broadcast %6 : vector<1x64xf32> to vector<64x64xf32>
    %188 = arith.addf %186, %187 : vector<64x64xf32>
    %cst_84 = arith.constant dense<0.000000e+00> : vector<16x64xf32>
    %189 = tpu.matmul %185, %7, %cst_84 {dimension_numbers = #tpu.dot_dimension_numbers<[1], [0], [0], [1], [0, 0, 1, 1], [], []>} : vector<16x64xf32>, vector<64x64xf32>, vector<16x64xf32> -> vector<16x64xf32>
    %190 = vector.broadcast %8 : vector<1x64xf32> to vector<16x64xf32>
    %191 = arith.addf %189, %190 : vector<16x64xf32>
    %cst_85 = arith.constant dense<0.000000e+00> : vector<16x64xf32>
    %192 = tpu.matmul %185, %9, %cst_85 {dimension_numbers = #tpu.dot_dimension_numbers<[1], [0], [0], [1], [0, 0, 1, 1], [], []>} : vector<16x64xf32>, vector<64x64xf32>, vector<16x64xf32> -> vector<16x64xf32>
    %193 = vector.broadcast %10 : vector<1x64xf32> to vector<16x64xf32>
    %194 = arith.addf %192, %193 : vector<16x64xf32>
    %195 = vector.extract_strided_slice %188 {offsets = [0, 0], sizes = [64, 16], strides = [1, 1]} : vector<64x64xf32> to vector<64x16xf32>
    %196 = vector.extract_strided_slice %191 {offsets = [0, 0], sizes = [16, 16], strides = [1, 1]} : vector<16x64xf32> to vector<16x16xf32>
    %197 = vector.extract_strided_slice %194 {offsets = [0, 0], sizes = [16, 16], strides = [1, 1]} : vector<16x64xf32> to vector<16x16xf32>
    %cst_86 = arith.constant dense<0.000000e+00> : vector<64x16xf32>
    %198 = tpu.matmul %195, %196, %cst_86 {dimension_numbers = #tpu.dot_dimension_numbers<[1], [1], [0], [0], [0, 0, 1, 0], [], []>} : vector<64x16xf32>, vector<16x16xf32>, vector<64x16xf32> -> vector<64x16xf32>
    %cst_87 = arith.constant 2.500000e-01 : f32
    %199 = vector.broadcast %cst_87 : f32 to vector<64x16xf32>
    %200 = arith.mulf %198, %199 : vector<64x16xf32>
    %cst_88 = arith.constant dense<0xFF800000> : vector<64xf32>
    %201 = vector.multi_reduction <maximumf>, %200, %cst_88 [1] : vector<64x16xf32> to vector<64xf32>
    %202 = vector.shape_cast %201 : vector<64xf32> to vector<64x1xf32>
    %203 = vector.broadcast %202 : vector<64x1xf32> to vector<64x16xf32>
    %204 = arith.subf %200, %203 : vector<64x16xf32>
    %205 = math.exp %204 : vector<64x16xf32>
    %cst_89 = arith.constant dense<0.000000e+00> : vector<64xf32>
    %206 = vector.multi_reduction <add>, %205, %cst_89 [1] : vector<64x16xf32> to vector<64xf32>
    %207 = vector.shape_cast %206 : vector<64xf32> to vector<64x1xf32>
    %208 = tpu.reciprocal %207 {approx = true} : vector<64x1xf32> -> vector<64x1xf32>
    %209 = vector.broadcast %208 : vector<64x1xf32> to vector<64x16xf32>
    %210 = arith.mulf %205, %209 : vector<64x16xf32>
    %cst_90 = arith.constant dense<0.000000e+00> : vector<64x16xf32>
    %211 = tpu.matmul %210, %197, %cst_90 {dimension_numbers = #tpu.dot_dimension_numbers<[1], [0], [0], [1], [0, 0, 1, 1], [], []>} : vector<64x16xf32>, vector<16x16xf32>, vector<64x16xf32> -> vector<64x16xf32>
    %212 = vector.extract_strided_slice %11 {offsets = [0, 0], sizes = [16, 64], strides = [1, 1]} : vector<64x64xf32> to vector<16x64xf32>
    %cst_91 = arith.constant dense<0.000000e+00> : vector<64x64xf32>
    %213 = tpu.matmul %211, %212, %cst_91 {dimension_numbers = #tpu.dot_dimension_numbers<[1], [0], [0], [1], [0, 0, 1, 1], [], []>} : vector<64x16xf32>, vector<16x64xf32>, vector<64x64xf32> -> vector<64x64xf32>
    %214 = arith.addf %146, %213 : vector<64x64xf32>
    %215 = vector.extract_strided_slice %188 {offsets = [0, 16], sizes = [64, 16], strides = [1, 1]} : vector<64x64xf32> to vector<64x16xf32>
    %216 = vector.extract_strided_slice %191 {offsets = [0, 16], sizes = [16, 16], strides = [1, 1]} : vector<16x64xf32> to vector<16x16xf32>
    %217 = vector.extract_strided_slice %194 {offsets = [0, 16], sizes = [16, 16], strides = [1, 1]} : vector<16x64xf32> to vector<16x16xf32>
    %cst_92 = arith.constant dense<0.000000e+00> : vector<64x16xf32>
    %218 = tpu.matmul %215, %216, %cst_92 {dimension_numbers = #tpu.dot_dimension_numbers<[1], [1], [0], [0], [0, 0, 1, 0], [], []>} : vector<64x16xf32>, vector<16x16xf32>, vector<64x16xf32> -> vector<64x16xf32>
    %cst_93 = arith.constant 2.500000e-01 : f32
    %219 = vector.broadcast %cst_93 : f32 to vector<64x16xf32>
    %220 = arith.mulf %218, %219 : vector<64x16xf32>
    %cst_94 = arith.constant dense<0xFF800000> : vector<64xf32>
    %221 = vector.multi_reduction <maximumf>, %220, %cst_94 [1] : vector<64x16xf32> to vector<64xf32>
    %222 = vector.shape_cast %221 : vector<64xf32> to vector<64x1xf32>
    %223 = vector.broadcast %222 : vector<64x1xf32> to vector<64x16xf32>
    %224 = arith.subf %220, %223 : vector<64x16xf32>
    %225 = math.exp %224 : vector<64x16xf32>
    %cst_95 = arith.constant dense<0.000000e+00> : vector<64xf32>
    %226 = vector.multi_reduction <add>, %225, %cst_95 [1] : vector<64x16xf32> to vector<64xf32>
    %227 = vector.shape_cast %226 : vector<64xf32> to vector<64x1xf32>
    %228 = tpu.reciprocal %227 {approx = true} : vector<64x1xf32> -> vector<64x1xf32>
    %229 = vector.broadcast %228 : vector<64x1xf32> to vector<64x16xf32>
    %230 = arith.mulf %225, %229 : vector<64x16xf32>
    %cst_96 = arith.constant dense<0.000000e+00> : vector<64x16xf32>
    %231 = tpu.matmul %230, %217, %cst_96 {dimension_numbers = #tpu.dot_dimension_numbers<[1], [0], [0], [1], [0, 0, 1, 1], [], []>} : vector<64x16xf32>, vector<16x16xf32>, vector<64x16xf32> -> vector<64x16xf32>
    %232 = vector.extract_strided_slice %11 {offsets = [16, 0], sizes = [16, 64], strides = [1, 1]} : vector<64x64xf32> to vector<16x64xf32>
    %cst_97 = arith.constant dense<0.000000e+00> : vector<64x64xf32>
    %233 = tpu.matmul %231, %232, %cst_97 {dimension_numbers = #tpu.dot_dimension_numbers<[1], [0], [0], [1], [0, 0, 1, 1], [], []>} : vector<64x16xf32>, vector<16x64xf32>, vector<64x64xf32> -> vector<64x64xf32>
    %234 = arith.addf %214, %233 : vector<64x64xf32>
    %235 = vector.extract_strided_slice %188 {offsets = [0, 32], sizes = [64, 16], strides = [1, 1]} : vector<64x64xf32> to vector<64x16xf32>
    %236 = vector.extract_strided_slice %191 {offsets = [0, 32], sizes = [16, 16], strides = [1, 1]} : vector<16x64xf32> to vector<16x16xf32>
    %237 = vector.extract_strided_slice %194 {offsets = [0, 32], sizes = [16, 16], strides = [1, 1]} : vector<16x64xf32> to vector<16x16xf32>
    %cst_98 = arith.constant dense<0.000000e+00> : vector<64x16xf32>
    %238 = tpu.matmul %235, %236, %cst_98 {dimension_numbers = #tpu.dot_dimension_numbers<[1], [1], [0], [0], [0, 0, 1, 0], [], []>} : vector<64x16xf32>, vector<16x16xf32>, vector<64x16xf32> -> vector<64x16xf32>
    %cst_99 = arith.constant 2.500000e-01 : f32
    %239 = vector.broadcast %cst_99 : f32 to vector<64x16xf32>
    %240 = arith.mulf %238, %239 : vector<64x16xf32>
    %cst_100 = arith.constant dense<0xFF800000> : vector<64xf32>
    %241 = vector.multi_reduction <maximumf>, %240, %cst_100 [1] : vector<64x16xf32> to vector<64xf32>
    %242 = vector.shape_cast %241 : vector<64xf32> to vector<64x1xf32>
    %243 = vector.broadcast %242 : vector<64x1xf32> to vector<64x16xf32>
    %244 = arith.subf %240, %243 : vector<64x16xf32>
    %245 = math.exp %244 : vector<64x16xf32>
    %cst_101 = arith.constant dense<0.000000e+00> : vector<64xf32>
    %246 = vector.multi_reduction <add>, %245, %cst_101 [1] : vector<64x16xf32> to vector<64xf32>
    %247 = vector.shape_cast %246 : vector<64xf32> to vector<64x1xf32>
    %248 = tpu.reciprocal %247 {approx = true} : vector<64x1xf32> -> vector<64x1xf32>
    %249 = vector.broadcast %248 : vector<64x1xf32> to vector<64x16xf32>
    %250 = arith.mulf %245, %249 : vector<64x16xf32>
    %cst_102 = arith.constant dense<0.000000e+00> : vector<64x16xf32>
    %251 = tpu.matmul %250, %237, %cst_102 {dimension_numbers = #tpu.dot_dimension_numbers<[1], [0], [0], [1], [0, 0, 1, 1], [], []>} : vector<64x16xf32>, vector<16x16xf32>, vector<64x16xf32> -> vector<64x16xf32>
    %252 = vector.extract_strided_slice %11 {offsets = [32, 0], sizes = [16, 64], strides = [1, 1]} : vector<64x64xf32> to vector<16x64xf32>
    %cst_103 = arith.constant dense<0.000000e+00> : vector<64x64xf32>
    %253 = tpu.matmul %251, %252, %cst_103 {dimension_numbers = #tpu.dot_dimension_numbers<[1], [0], [0], [1], [0, 0, 1, 1], [], []>} : vector<64x16xf32>, vector<16x64xf32>, vector<64x64xf32> -> vector<64x64xf32>
    %254 = arith.addf %234, %253 : vector<64x64xf32>
    %255 = vector.extract_strided_slice %188 {offsets = [0, 48], sizes = [64, 16], strides = [1, 1]} : vector<64x64xf32> to vector<64x16xf32>
    %256 = vector.extract_strided_slice %191 {offsets = [0, 48], sizes = [16, 16], strides = [1, 1]} : vector<16x64xf32> to vector<16x16xf32>
    %257 = vector.extract_strided_slice %194 {offsets = [0, 48], sizes = [16, 16], strides = [1, 1]} : vector<16x64xf32> to vector<16x16xf32>
    %cst_104 = arith.constant dense<0.000000e+00> : vector<64x16xf32>
    %258 = tpu.matmul %255, %256, %cst_104 {dimension_numbers = #tpu.dot_dimension_numbers<[1], [1], [0], [0], [0, 0, 1, 0], [], []>} : vector<64x16xf32>, vector<16x16xf32>, vector<64x16xf32> -> vector<64x16xf32>
    %cst_105 = arith.constant 2.500000e-01 : f32
    %259 = vector.broadcast %cst_105 : f32 to vector<64x16xf32>
    %260 = arith.mulf %258, %259 : vector<64x16xf32>
    %cst_106 = arith.constant dense<0xFF800000> : vector<64xf32>
    %261 = vector.multi_reduction <maximumf>, %260, %cst_106 [1] : vector<64x16xf32> to vector<64xf32>
    %262 = vector.shape_cast %261 : vector<64xf32> to vector<64x1xf32>
    %263 = vector.broadcast %262 : vector<64x1xf32> to vector<64x16xf32>
    %264 = arith.subf %260, %263 : vector<64x16xf32>
    %265 = math.exp %264 : vector<64x16xf32>
    %cst_107 = arith.constant dense<0.000000e+00> : vector<64xf32>
    %266 = vector.multi_reduction <add>, %265, %cst_107 [1] : vector<64x16xf32> to vector<64xf32>
    %267 = vector.shape_cast %266 : vector<64xf32> to vector<64x1xf32>
    %268 = tpu.reciprocal %267 {approx = true} : vector<64x1xf32> -> vector<64x1xf32>
    %269 = vector.broadcast %268 : vector<64x1xf32> to vector<64x16xf32>
    %270 = arith.mulf %265, %269 : vector<64x16xf32>
    %cst_108 = arith.constant dense<0.000000e+00> : vector<64x16xf32>
    %271 = tpu.matmul %270, %257, %cst_108 {dimension_numbers = #tpu.dot_dimension_numbers<[1], [0], [0], [1], [0, 0, 1, 1], [], []>} : vector<64x16xf32>, vector<16x16xf32>, vector<64x16xf32> -> vector<64x16xf32>
    %272 = vector.extract_strided_slice %11 {offsets = [48, 0], sizes = [16, 64], strides = [1, 1]} : vector<64x64xf32> to vector<16x64xf32>
    %cst_109 = arith.constant dense<0.000000e+00> : vector<64x64xf32>
    %273 = tpu.matmul %271, %272, %cst_109 {dimension_numbers = #tpu.dot_dimension_numbers<[1], [0], [0], [1], [0, 0, 1, 1], [], []>} : vector<64x16xf32>, vector<16x64xf32>, vector<64x64xf32> -> vector<64x64xf32>
    %274 = arith.addf %254, %273 : vector<64x64xf32>
    %c1_110 = arith.constant 1 : index
    %c0_111 = arith.constant 0 : index
    %c0_112 = arith.constant 0 : index
    %275 = vector.load %arg15[%c1_110, %c0_111, %c0_112] : memref<2x64x64xf32, #tpu.memory_space<vmem>>, vector<1x64x64xf32>
    %276 = vector.shape_cast %275 : vector<1x64x64xf32> to vector<64x64xf32>
    %277 = vector.shape_cast %274 : vector<64x64xf32> to vector<1x64x64xf32>
    tpu.vector_store %arg15[%c1_110, %c0_111, %c0_112], %277 {strides = array<i32>} : memref<2x64x64xf32, #tpu.memory_space<vmem>>, vector<1x64x64xf32>,
    return
  }
  func.func @transform_0(%arg0: i32) -> (i32, i32, i32) {
    %c0_i32 = arith.constant 0 : i32
    %c0_i32_0 = arith.constant 0 : i32
    %c0_i32_1 = arith.constant 0 : i32
    return %arg0, %c0_i32, %c0_i32_0 : i32, i32, i32
  }
  func.func @transform_1(%arg0: i32) -> (i32, i32, i32) {
    %c0_i32 = arith.constant 0 : i32
    %c0_i32_0 = arith.constant 0 : i32
    %c0_i32_1 = arith.constant 0 : i32
    return %arg0, %c0_i32, %c0_i32_0 : i32, i32, i32
  }
  func.func @transform_2(%arg0: i32) -> (i32, i32) {
    %c0_i32 = arith.constant 0 : i32
    %c0_i32_0 = arith.constant 0 : i32
    %c0_i32_1 = arith.constant 0 : i32
    return %c0_i32, %c0_i32_0 : i32, i32
  }
  func.func @transform_3(%arg0: i32) -> (i32, i32) {
    %c0_i32 = arith.constant 0 : i32
    %c0_i32_0 = arith.constant 0 : i32
    %c0_i32_1 = arith.constant 0 : i32
    return %c0_i32, %c0_i32_0 : i32, i32
  }
  func.func @transform_4(%arg0: i32) -> (i32, i32) {
    %c0_i32 = arith.constant 0 : i32
    %c0_i32_0 = arith.constant 0 : i32
    %c0_i32_1 = arith.constant 0 : i32
    return %c0_i32, %c0_i32_0 : i32, i32
  }
  func.func @transform_5(%arg0: i32) -> (i32, i32) {
    %c0_i32 = arith.constant 0 : i32
    %c0_i32_0 = arith.constant 0 : i32
    %c0_i32_1 = arith.constant 0 : i32
    return %c0_i32, %c0_i32_0 : i32, i32
  }
  func.func @transform_6(%arg0: i32) -> (i32, i32) {
    %c0_i32 = arith.constant 0 : i32
    %c0_i32_0 = arith.constant 0 : i32
    %c0_i32_1 = arith.constant 0 : i32
    return %c0_i32, %c0_i32_0 : i32, i32
  }
  func.func @transform_7(%arg0: i32) -> (i32, i32) {
    %c0_i32 = arith.constant 0 : i32
    %c0_i32_0 = arith.constant 0 : i32
    %c0_i32_1 = arith.constant 0 : i32
    return %c0_i32, %c0_i32_0 : i32, i32
  }
  func.func @transform_8(%arg0: i32) -> (i32, i32) {
    %c0_i32 = arith.constant 0 : i32
    %c0_i32_0 = arith.constant 0 : i32
    %c0_i32_1 = arith.constant 0 : i32
    return %c0_i32, %c0_i32_0 : i32, i32
  }
  func.func @transform_9(%arg0: i32) -> (i32, i32) {
    %c0_i32 = arith.constant 0 : i32
    %c0_i32_0 = arith.constant 0 : i32
    %c0_i32_1 = arith.constant 0 : i32
    return %c0_i32, %c0_i32_0 : i32, i32
  }
  func.func @transform_10(%arg0: i32) -> (i32, i32) {
    %c0_i32 = arith.constant 0 : i32
    %c0_i32_0 = arith.constant 0 : i32
    %c0_i32_1 = arith.constant 0 : i32
    return %c0_i32, %c0_i32_0 : i32, i32
  }
  func.func @transform_11(%arg0: i32) -> (i32, i32) {
    %c0_i32 = arith.constant 0 : i32
    %c0_i32_0 = arith.constant 0 : i32
    %c0_i32_1 = arith.constant 0 : i32
    return %c0_i32, %c0_i32_0 : i32, i32
  }
  func.func @transform_12(%arg0: i32) -> (i32, i32) {
    %c0_i32 = arith.constant 0 : i32
    %c0_i32_0 = arith.constant 0 : i32
    %c0_i32_1 = arith.constant 0 : i32
    return %c0_i32, %c0_i32_0 : i32, i32
  }
  func.func @transform_13(%arg0: i32) -> (i32, i32) {
    %c0_i32 = arith.constant 0 : i32
    %c0_i32_0 = arith.constant 0 : i32
    %c0_i32_1 = arith.constant 0 : i32
    return %c0_i32, %c0_i32_0 : i32, i32
  }
  func.func @transform_14(%arg0: i32) -> (i32, i32, i32) {
    %c0_i32 = arith.constant 0 : i32
    %c0_i32_0 = arith.constant 0 : i32
    %c0_i32_1 = arith.constant 0 : i32
    return %arg0, %c0_i32, %c0_i32_0 : i32, i32, i32
  }
}

</mosaic_0001>

<bundles_post_ra>
// kernel: tpu_custom_call.1
= control target key start
LH: loop header
LB: loop body
LE: loop exit
PB: predicated region body
PF: predicated region fallthrough
CT: control target
= control target key end

     0   :  { %19 = vsyncpa [#allocation3], 0  ;;  %s9189_s0 = inlined_call_operand.hbm [shape: f32[2,64,64], index: 0, kind: input, shape index: {}]   ;;  %s9190_s1 = inlined_call_operand.hbm [shape: f32[2,16,64], index: 1, kind: input, shape index: {}]   ;;  %s9191_s2 = inlined_call_operand.hbm [shape: f32[64,64], index: 2, kind: input, shape index: {}]   ;;  %s9192_s3 = inlined_call_operand.vmem [shape: f32[1,64], index: 3, kind: input, shape index: {}]   ;;  %s9193_s4 = inlined_call_operand.vmem [shape: f32[1,64], index: 4, kind: input, shape index: {}]   ;;  %s9194_s5 = inlined_call_operand.vmem [shape: f32[1,64], index: 5, kind: input, shape index: {}]   ;;  %s9195_s6 = inlined_call_operand.vmem [shape: f32[1,64], index: 6, kind: input, shape index: {}]   ;;  %s9196_s7 = inlined_call_operand.hbm [shape: f32[64,64], index: 7, kind: input, shape index: {}]   ;;  %s9197_s8 = inlined_call_operand.vmem [shape: f32[1,64], index: 8, kind: input, shape index: {}]   ;;  %s9198_s9 = inlined_call_operand.hbm [shape: f32[64,64], index: 9, kind: input, shape index: {}]   ;;  %s9199_s10 = inlined_call_operand.vmem [shape: f32[1,64], index: 10, kind: input, shape index: {}]   ;;  %s9200_s11 = inlined_call_operand.hbm [shape: f32[64,64], index: 11, kind: input, shape index: {}]   ;;  %s9201_s12 = inlined_call_operand.vmem [shape: f32[1,64], index: 12, kind: input, shape index: {}]   ;;  %s9202_s13 = inlined_call_operand.hbm [shape: f32[64,64], index: 13, kind: input, shape index: {}]   ;;  %s9203_s14 = inlined_call_operand.hbm [shape: f32[2,64,64], index: 14, kind: output, shape index: {}]  }
   0x1   :  { %20 = vsyncpa [#allocation6], 0 }
   0x2   :  { %21 = vsyncpa [#allocation9], 0 }
   0x3   :  { %22 = vsyncpa [#allocation12], 0 }
   0x4   :  { %23 = vsyncpa [#allocation4], 0  ;;  %s7509_s29 = smov [#allocation5]   ;;  %s7510_s15 = smov [#allocation8]  }
   0x5   :  { %s41_s30 = sshll.u32 %s7509_s29, 4  ;;  %s73_s16 = sshll.u32 %s7510_s15, 4  ;;  %s42_s30 = int_to_ptr.vmem [resolvable:$true] %s41_s30  ;;  %s7600_s16 = int_to_ptr.vmem [resolvable:$true] %s73_s16 }
   0x6   :  { %s7323_s19 = scalar_lea.hbm %s9190_s1, 512 }
   0x7   :  { %p7324_p0 = scmp.ne.s32.totalorder %s9190_s1, %s7323_s19  ;;  %p7327_p1 = scmp.lt.u32.totalorder %s7323_s19, %s9190_s1 }
   0x9   :  { %p7329_p2 = pnand %p7327_p1, %p7324_p0 }
   0xb   :  { %7332 = shalt.err (!%p7329_p2)
}
   0xc   :  { %s7333_s24 = scalar_lea.vmem %s42_s30, 512  ;;  %p7338_p4 = scmp.lt.s32.totalorder %s42_s30, %s42_s30 }
   0xd   :  { %p7334_p3 = scmp.ne.s32.totalorder %s42_s30, %s7333_s24  ;;  %p7339_p5 = scmp.lt.s32.totalorder %s7333_s24, %s7333_s24 }
   0xf   :  { %p7340_p6 = por %p7339_p5, %p7338_p4 }
  0x11   :  { %p7341_p7 = pnand %p7340_p6, %p7334_p3 }
  0x13   :  { %7344 = shalt.err (!%p7341_p7)
}
  0x14   :  { %s7511_s25 = smov 128   ;;  %s7512_s26 = smov 8  }
  0x15   :  { %47 = dma.hbm_to_vmem [thread:$0]  %s9190_s1, 512, %s42_s30, [#allocation6], %s7511_s25, %s7511_s25, %s7512_s26  }
  0x16   :  { %s7345_s17 = scalar_lea.hbm %s9196_s7, 1024 }
  0x17   :  { %p7346_p8 = scmp.ne.s32.totalorder %s9196_s7, %s7345_s17  ;;  %p7349_p9 = scmp.lt.u32.totalorder %s7345_s17, %s9196_s7 }
  0x19   :  { %p7351_p10 = pnand %p7349_p9, %p7346_p8 }
  0x1b   :  { %7354 = shalt.err (!%p7351_p10)
}
  0x1c   :  { %s7355_s22 = scalar_lea.vmem %s7600_s16, 1024  ;;  %p7360_p12 = scmp.lt.s32.totalorder %s7600_s16, %s7600_s16 }
  0x1d   :  { %p7356_p11 = scmp.ne.s32.totalorder %s7600_s16, %s7355_s22  ;;  %p7361_p13 = scmp.lt.s32.totalorder %s7355_s22, %s7355_s22 }
  0x1f   :  { %p7362_p0 = por %p7361_p13, %p7360_p12 }
  0x21   :  { %p7363_p1 = pnand %p7362_p0, %p7356_p11 }
  0x23   :  { %7366 = shalt.err (!%p7363_p1)
}
  0x24   :  { %79 = dma.hbm_to_vmem [thread:$0]  %s9196_s7, 1024, %s7600_s16, [#allocation9], %s7511_s25, %s7511_s25, %s7512_s26  }
  0x25   :  { %s7513_s23 = smov [#allocation11]   ;;  %s7514_s27 = smov [#allocation2]  }
  0x26   :  { %s101_s24 = sshll.u32 %s7513_s23, 4  ;;  %s29_s28 = sshll.u32 %s7514_s27, 4  ;;  %s102_s24 = int_to_ptr.vmem [resolvable:$true] %s101_s24  ;;  %s7637_s28 = int_to_ptr.vmem [resolvable:$true] %s29_s28 }
  0x27   :  { %s7367_s17 = scalar_lea.hbm %s9200_s11, 1024 }
  0x28   :  { %p7368_p2 = scmp.ne.s32.totalorder %s9200_s11, %s7367_s17  ;;  %p7371_p3 = scmp.lt.u32.totalorder %s7367_s17, %s9200_s11 }
  0x2a   :  { %p7373_p4 = pnand %p7371_p3, %p7368_p2 }
  0x2c   :  { %7376 = shalt.err (!%p7373_p4)
}
  0x2d   :  { %s7377_s7 = scalar_lea.vmem %s102_s24, 1024  ;;  %p7382_p6 = scmp.lt.s32.totalorder %s102_s24, %s102_s24 }
  0x2e   :  { %p7378_p5 = scmp.ne.s32.totalorder %s102_s24, %s7377_s7  ;;  %p7383_p7 = scmp.lt.s32.totalorder %s7377_s7, %s7377_s7 }
  0x30   :  { %p7384_p8 = por %p7383_p7, %p7382_p6 }
  0x32   :  { %p7385_p9 = pnand %p7384_p8, %p7378_p5 }
  0x34   :  { %7388 = shalt.err (!%p7385_p9)
}
  0x35   :  { %107 = dma.hbm_to_vmem [thread:$0]  %s9200_s11, 1024, %s102_s24, [#allocation12], %s7511_s25, %s7511_s25, %s7512_s26  }
  0x36   :  { %s7389_s23 = scalar_lea.hbm %s9189_s0, 2048 }
  0x37   :  { %p7390_p10 = scmp.ne.s32.totalorder %s9189_s0, %s7389_s23  ;;  %p7393_p11 = scmp.lt.u32.totalorder %s7389_s23, %s9189_s0 }
  0x39   :  { %p7395_p12 = pnand %p7393_p11, %p7390_p10 }
  0x3b   :  { %7398 = shalt.err (!%p7395_p12)
}
  0x3c   :  { %s7399_s18 = scalar_lea.vmem %s7637_s28, 2048  ;;  %p7404_p0 = scmp.lt.s32.totalorder %s7637_s28, %s7637_s28 }
  0x3d   :  { %p7400_p13 = scmp.ne.s32.totalorder %s7637_s28, %s7399_s18  ;;  %p7405_p1 = scmp.lt.s32.totalorder %s7399_s18, %s7399_s18 }
  0x3f   :  { %p7406_p2 = por %p7405_p1, %p7404_p0 }
  0x41   :  { %p7407_p3 = pnand %p7406_p2, %p7400_p13 }
  0x43   :  { %7410 = shalt.err (!%p7407_p3)
}
  0x44   :  { %35 = dma.hbm_to_vmem [thread:$0]  %s9189_s0, 2048, %s7637_s28, [#allocation3], %s7511_s25, %s7511_s25, %s7512_s26  }
  0x45   :  { %s7515_s19 = smov [#allocation7]   ;;  %s7516_s21 = smov [#allocation10]  }
  0x46   :  { %s53_s20 = sshll.u32 %s7515_s19, 4  ;;  %s87_s7 = sshll.u32 %s7516_s21, 4  ;;  %s54_s20 = int_to_ptr.vmem [resolvable:$true] %s53_s20  ;;  %s7674_s7 = int_to_ptr.vmem [resolvable:$true] %s87_s7 }
  0x47   :  { %s7411_s1 = scalar_lea.hbm %s9191_s2, 1024 }
  0x48   :  { %p7412_p4 = scmp.ne.s32.totalorder %s9191_s2, %s7411_s1  ;;  %p7415_p5 = scmp.lt.u32.totalorder %s7411_s1, %s9191_s2 }
  0x4a   :  { %p7417_p6 = pnand %p7415_p5, %p7412_p4 }
  0x4c   :  { %7420 = shalt.err (!%p7417_p6)
}
  0x4d   :  { %s7421_s0 = scalar_lea.vmem %s54_s20, 1024  ;;  %p7426_p8 = scmp.lt.s32.totalorder %s54_s20, %s54_s20 }
  0x4e   :  { %p7422_p7 = scmp.ne.s32.totalorder %s54_s20, %s7421_s0  ;;  %p7427_p9 = scmp.lt.s32.totalorder %s7421_s0, %s7421_s0 }
  0x50   :  { %p7428_p10 = por %p7427_p9, %p7426_p8 }
  0x52   :  { %p7429_p11 = pnand %p7428_p10, %p7422_p7 }
  0x54   :  { %7432 = shalt.err (!%p7429_p11)
}
  0x55   :  { %59 = dma.hbm_to_vmem [thread:$0]  %s9191_s2, 1024, %s54_s20, [#allocation6], %s7511_s25, %s7511_s25, %s7512_s26  }
  0x56   :  { %s7433_s11 = scalar_lea.hbm %s9198_s9, 1024 }
  0x57   :  { %p7434_p12 = scmp.ne.s32.totalorder %s9198_s9, %s7433_s11  ;;  %p7437_p13 = scmp.lt.u32.totalorder %s7433_s11, %s9198_s9 }
  0x59   :  { %p7439_p0 = pnand %p7437_p13, %p7434_p12 }
  0x5b   :  { %7442 = shalt.err (!%p7439_p0)
}
  0x5c   :  { %s7443_s22 = scalar_lea.vmem %s7674_s7, 1024  ;;  %p7448_p2 = scmp.lt.s32.totalorder %s7674_s7, %s7674_s7 }
  0x5d   :  { %p7444_p1 = scmp.ne.s32.totalorder %s7674_s7, %s7443_s22  ;;  %p7449_p3 = scmp.lt.s32.totalorder %s7443_s22, %s7443_s22 }
  0x5f   :  { %p7450_p4 = por %p7449_p3, %p7448_p2 }
  0x61   :  { %p7451_p5 = pnand %p7450_p4, %p7444_p1 }
  0x63   :  { %7454 = shalt.err (!%p7451_p5)
}
  0x64   :  { %93 = dma.hbm_to_vmem [thread:$0]  %s9198_s9, 1024, %s7674_s7, [#allocation9], %s7511_s25, %s7511_s25, %s7512_s26  }
  0x65   :  { %s7517_s1 = smov [#allocation13]   ;;  %s7455_s29 = scalar_lea.hbm %s9202_s13, 1024 }
  0x66   :  { %s115_s30 = sshll.u32 %s7517_s1, 4  ;;  %p7456_p6 = scmp.ne.s32.totalorder %s9202_s13, %s7455_s29  ;;  %s116_s30 = int_to_ptr.vmem [resolvable:$true] %s115_s30 }
  0x67   :  { %p7459_p7 = scmp.lt.u32.totalorder %s7455_s29, %s9202_s13 }
  0x69   :  { %p7461_p8 = pnand %p7459_p7, %p7456_p6 }
  0x6b   :  { %7464 = shalt.err (!%p7461_p8)
}
  0x6c   :  { %s7465_s18 = scalar_lea.vmem %s116_s30, 1024  ;;  %p7470_p10 = scmp.lt.s32.totalorder %s116_s30, %s116_s30 }
  0x6d   :  { %p7466_p9 = scmp.ne.s32.totalorder %s116_s30, %s7465_s18  ;;  %p7471_p11 = scmp.lt.s32.totalorder %s7465_s18, %s7465_s18 }
  0x6f   :  { %p7472_p12 = por %p7471_p11, %p7470_p10 }
  0x71   :  { %p7473_p13 = pnand %p7472_p12, %p7466_p9 }
  0x73   :  { %7476 = shalt.err (!%p7473_p13)
}
  0x74   :  { %121 = dma.hbm_to_vmem [thread:$0]  %s9202_s13, 1024, %s116_s30, [#allocation12], %s7511_s25, %s7511_s25, %s7512_s26  }
  0x75   :  { %7499 = dma.done.wait [#allocation3], 2048  }
  0x76   :  { %7500 = vsyncadd [#allocation3], 4294965248 }
  0x77   :  { %7501 = dma.done.wait [#allocation6], 1536  }
  0x78   :  { %7502 = vsyncadd [#allocation6], 4294965760 }
  0x79   :  { %7503 = dma.done.wait [#allocation9], 2048  }
  0x7a   :  { %7504 = vsyncadd [#allocation9], 4294965248 }
  0x7b   :  { %7505 = dma.done.wait [#allocation12], 2048  }
  0x7c   :  { %7506 = vsyncadd [#allocation12], 4294965248  ;;  %v7518_v0 = vmov 0.0|0.0   ;;  %vm7519_vm0 = vmmov 0   ;;  %v7520_v1 = vmov 0.0   ;;  %v143_v2 = vld [vmem:[#allocation7] sm:$0xff]  ;;  %v295_v60 = vlaneseq }
  0x7d   :  { %6636 = vmatprep.subr.bf16.mxu1 %v7518_v0  ;;  %6060 = vmatprep.mubr.msk.f32.mxu1 %vm7519_vm0, %v7520_v1  ;;  %v144_v3 = vld [vmem:[#allocation7 + $0x8] sm:$0xff]  ;;  %v145_v4 = vld [vmem:[#allocation7 + $0x10] sm:$0xff]  ;;  %v146_v6 = vld [vmem:[#allocation7 + $0x18] sm:$0xff]  ;;  %vm200_vm1 = vcmask 523264   ;;  %vm783_vm2 = vcmask 130048   ;;  %s7521_s0 = smov 112  }
  0x7e   :  { %v7729_v5 = vpack.c.bf16 %v144_v3, %v143_v2  ;;  %v198_v7 = vld [vmem:[#allocation5] sm:$0xff]  ;;  %v7732_v9 = vld [vmem:[#allocation5 + $0x8] sm:$0xff]  ;;  %v7735_v10 = vpack.c.bf16 %v146_v6, %v145_v4  ;;  %v7744_v16 = vld [vmem:[#allocation2 + $0x10] sm:$0xff]  ;;  %v296_v61 = vshrl.u32 %v295_v60, 7  ;;  %s7522_s28 = smov 96   ;;  %s7523_s15 = smov 80  }
  0x7f   :  { %v437_v8 = vsel %vm200_vm1, %v198_v7, 0.0  ;;  %v147_v11 = vld [vmem:[#allocation7 + $0x20] sm:$0xff]  ;;  %v7739_v13 = vld [vmem:[#allocation2 + $0x8] sm:$0xff]  ;;  %v440_v15 = vsel %vm200_vm1, %v7732_v9, 0.0  ;;  %v7746_v17 = vld [vmem:[#allocation2 + $0x18] sm:$0xff]  ;;  %v204_v22 = vsel %vm200_vm1, %v7744_v16, 0.0 }
  0x80   :  { %6638 = vmatpush3.bf16.msra.mxu1 %v7729_v5  ;;  %438 = vadd.xlane.f32.xlu0 %v437_v8  ;;  %v7737_v12 = vld [vmem:[#allocation2] sm:$0xff]  ;;  %v148_v14 = vld [vmem:[#allocation7 + $0x28] sm:$0xff]  ;;  %v202_v19 = vsel %vm200_vm1, %v7739_v13, 0.0  ;;  %v206_v23 = vsel %vm200_vm1, %v7746_v17, 0.0  ;;  %v149_v27 = vld [vmem:[#allocation7 + $0x30] sm:$0xff]  ;;  %v7806_v62 = vsub.s32 0, %v296_v61 }
  0x81   :  { %6639 = vmatprep.subr.bf16.mxu1 %v7518_v0  ;;  %v201_v18 = vsel %vm200_vm1, %v7737_v12, 0.0  ;;  %v7752_v20 = vld [vmem:[#allocation2 + $0x20] sm:$0xff]  ;;  %v7759_v24 = vpack.c.bf16 %v148_v14, %v147_v11  ;;  %v7761_v25 = vld [vmem:[#allocation2 + $0x28] sm:$0xff]  ;;  %v150_v28 = vld [vmem:[#allocation7 + $0x38] sm:$0xff] }
  0x82   :  { %v203_v21 = vadd.f32 %v202_v19, %v201_v18  ;;  %v208_v29 = vsel %vm200_vm1, %v7752_v20, 0.0  ;;  %v7766_v30 = vld [vmem:[#allocation2 + $0x30] sm:$0xff]  ;;  %v210_v32 = vsel %vm200_vm1, %v7761_v25, 0.0  ;;  %v7771_v33 = vpack.c.bf16 %v150_v28, %v149_v27  ;;  %v7773_v34 = vld [vmem:[#allocation2 + $0x38] sm:$0xff]  ;;  %v164_v57 = vld [vmem:[#allocation10] sm:$0xff] }
  0x83   :  { %v212_v36 = vsel %vm200_vm1, %v7766_v30, 0.0  ;;  %v214_v38 = vsel %vm200_vm1, %v7773_v34, 0.0  ;;  %v165_v58 = vld [vmem:[#allocation10 + $0x8] sm:$0xff]  ;;  %vm7951_vm3 = vmpackc.low %vm783_vm2, %vm783_vm2 }
  0x84   :  { %6641 = vmatpush3.bf16.msra.mxu1 %v7735_v10  ;;  %441 = vadd.xlane.f32.xlu0 %v440_v15  ;;  %v205_v26 = vadd.f32 %v204_v22, %v203_v21  ;;  %v7803_v59 = vpack.c.bf16 %v165_v58, %v164_v57 }
  0x85   :  { %6642 = vmatprep.subr.bf16.mxu1 %v7518_v0 }
  0x86   :  { %v207_v31 = vadd.f32 %v206_v23, %v205_v26 }
  0x88   :  { %6644 = vmatpush3.bf16.msra.mxu1 %v7759_v24  ;;  %v209_v35 = vadd.f32 %v208_v29, %v207_v31 }
  0x89   :  { %6645 = vmatprep.subr.bf16.mxu1 %v7518_v0 }
  0x8a   :  { %v211_v37 = vadd.f32 %v210_v32, %v209_v35 }
  0x8c   :  { %6647 = vmatpush3.bf16.msra.mxu1 %v7771_v33  ;;  %v213_v39 = vadd.f32 %v212_v36, %v211_v37 }
  0x8d   :  { %6648 = vmatprep.subr.bf16.mxu1 %v7518_v0 }
  0x8e   :  { %v215_v40 = vadd.f32 %v214_v38, %v213_v39 }
  0x90   :  { %v216_v41 = vrot.slane %v215_v40, 4 }
  0x92   :  { %v217_v42 = vadd.f32 %v216_v41, %v215_v40 }
  0x94   :  { %v218_v43 = vrot.slane %v217_v42, 2 }
  0x96   :  { %v219_v44 = vadd.f32 %v218_v43, %v217_v42  ;;  %v166_v43 = vld [vmem:[#allocation10 + $0x10] sm:$0xff] }
  0x98   :  { %v220_v45 = vrot.slane %v219_v44, 1 }
  0x9a   :  { %v221_v46 = vadd.f32 %v220_v45, %v219_v44  ;;  %v167_v44 = vld [vmem:[#allocation10 + $0x18] sm:$0xff] }
  0x9c   :  { %6061 = vmatmul.mubr.msk.f32.vlgmr.msra.gmra.mrb[0].mxu1 %vm200_vm1, %v221_v46 }
  0x9d   :  { %6650 = vmatpush3.bf16.msra.mxu1 %v7729_v5  ;;  %6079 = vmatprep.mubr.msk.f32.mxu1 %vm7519_vm0, %v7520_v1 }
  0x9e   :  { %6651 = vmatprep.subr.bf16.mxu1 %v7518_v0 }
  0xa1   :  { %6653 = vmatpush3.bf16.msra.mxu1 %v7735_v10 }
  0xa2   :  { %6654 = vmatprep.subr.bf16.mxu1 %v7518_v0 }
  0xa5   :  { %6656 = vmatpush3.bf16.msra.mxu1 %v7759_v24 }
  0xa6   :  { %6657 = vmatprep.subr.bf16.mxu1 %v7518_v0 }
  0xa9   :  { %6659 = vmatpush3.bf16.msra.mxu1 %v7771_v33 }
  0xaa   :  { %6677 = vmatprep.subr.bf16.mxu1 %v7803_v59 }
 0x10d   :  { %v439_v47 = vpop.xlane.xlu0 %438 }
 0x10e   :  { %v444_v48 = vmul.f32 0.015625, %v439_v47  ;;  %v7857_v47 = vpack.c.bf16 %v167_v44, %v166_v43  ;;  %v5456_v44 = vld [vmem:[%s9193_s4] ss:$0 sm:$0xff] }
 0x110   :  { %v7792_v49 = vsub.f32 %v198_v7, %v444_v48  ;;  %v168_v48 = vld [vmem:[#allocation10 + $0x20] sm:$0xff] }
 0x111   :  { %v442_v50 = vpop.xlane.xlu0 %441 }
 0x112   :  { %v445_v51 = vmul.f32 0.015625, %v442_v50  ;;  %v448_v52 = vmul.f32 %v7792_v49, %v7792_v49  ;;  %v169_v50 = vld [vmem:[#allocation10 + $0x28] sm:$0xff] }
 0x114   :  { %v7797_v53 = vsub.f32 %v7732_v9, %v445_v51  ;;  %v450_v54 = vsel %vm200_vm1, %v448_v52, 0.0  ;;  %v7862_v51 = vpack.c.bf16 %v169_v50, %v168_v48  ;;  %v170_v52 = vld [vmem:[#allocation10 + $0x30] sm:$0xff] }
 0x115   :  { %451 = vadd.xlane.f32.xlu1 %v450_v54  ;;  %v171_v54 = vld [vmem:[#allocation10 + $0x38] sm:$0xff]  ;;  %v175_v50 = vld [vmem:[#allocation11 + $0x10] sm:$0xff] }
 0x116   :  { %v449_v55 = vmul.f32 %v7797_v53, %v7797_v53 }
 0x118   :  { %v453_v56 = vsel %vm200_vm1, %v449_v55, 0.0  ;;  %v7866_v55 = vpack.c.bf16 %v171_v54, %v170_v52  ;;  %v176_v52 = vld [vmem:[#allocation11 + $0x18] sm:$0xff] }
 0x119   :  { %454 = vadd.xlane.f32.xlu1 %v453_v56 }
 0x16f   :  { %v291_v63 = vpop.f32.mrb[0].mxu1 }
 0x170   :  { %v298_v2 = vrot.slane %v291_v63, %v7806_v62  ;;  %v6062_v3 = vpop.f32.mrb[1].mxu1 }
 0x172   :  { %v7810_v4 = vsub.f32 %v7737_v12, %v298_v2  ;;  %v7813_v6 = vsub.f32 %v7739_v13, %v298_v2  ;;  %v7816_v7 = vsub.f32 %v7744_v16, %v298_v2  ;;  %v7819_v8 = vsub.f32 %v7746_v17, %v298_v2 }
 0x173   :  { %v7822_v9 = vsub.f32 %v7752_v20, %v298_v2  ;;  %v7831_v13 = vsub.f32 %v7761_v25, %v298_v2  ;;  %v7838_v19 = vsub.f32 %v7766_v30, %v298_v2  ;;  %v7844_v23 = vsub.f32 %v7773_v34, %v298_v2  ;;  %v5457_v2 = vld [vmem:[%s9194_s5] ss:$0 sm:$0xff] }
 0x174   :  { %v307_v11 = vmul.f32 %v7810_v4, %v7810_v4  ;;  %v308_v14 = vmul.f32 %v7813_v6, %v7813_v6  ;;  %v309_v12 = vmul.f32 %v7816_v7, %v7816_v7  ;;  %v310_v15 = vmul.f32 %v7819_v8, %v7819_v8 }
 0x175   :  { %v311_v20 = vmul.f32 %v7822_v9, %v7822_v9  ;;  %v312_v25 = vmul.f32 %v7831_v13, %v7831_v13  ;;  %v313_v28 = vmul.f32 %v7838_v19, %v7838_v19  ;;  %v314_v31 = vmul.f32 %v7844_v23, %v7844_v23 }
 0x176   :  { %v315_v16 = vsel %vm200_vm1, %v307_v11, 0.0  ;;  %v316_v17 = vsel %vm200_vm1, %v308_v14, 0.0  ;;  %v318_v21 = vsel %vm200_vm1, %v309_v12, 0.0  ;;  %v320_v26 = vsel %vm200_vm1, %v310_v15, 0.0  ;;  %v5458_v14 = vld [vmem:[%s9195_s6] ss:$0 sm:$0xff] }
 0x177   :  { %v317_v18 = vadd.f32 %v316_v17, %v315_v16  ;;  %v322_v29 = vsel %vm200_vm1, %v311_v20, 0.0  ;;  %v324_v32 = vsel %vm200_vm1, %v312_v25, 0.0  ;;  %v326_v34 = vsel %vm200_vm1, %v313_v28, 0.0  ;;  %v160_v28 = vld [vmem:[#allocation8 + $0x28] sm:$0xff] }
 0x178   :  { %v328_v37 = vsel %vm200_vm1, %v314_v31, 0.0  ;;  %v162_v31 = vld [vmem:[#allocation8 + $0x38] sm:$0xff] }
 0x179   :  { %v319_v22 = vadd.f32 %v318_v21, %v317_v18  ;;  %v155_v21 = vld [vmem:[#allocation8] sm:$0xff] }
 0x17b   :  { %v321_v27 = vadd.f32 %v320_v26, %v319_v22  ;;  %v156_v22 = vld [vmem:[#allocation8 + $0x8] sm:$0xff]  ;;  %v158_v26 = vld [vmem:[#allocation8 + $0x18] sm:$0xff] }
 0x17c   :  { %v7887_v25 = vpack.c.bf16 %v156_v22, %v155_v21 }
 0x17d   :  { %v323_v30 = vadd.f32 %v322_v29, %v321_v27 }
 0x17e   :  { %6661 = vmatprep.subr.bf16.mxu0 %v7887_v25 }
 0x17f   :  { %v325_v35 = vadd.f32 %v324_v32, %v323_v30  ;;  %6663 = vmatpush3.bf16.msra.mxu0 %v7887_v25  ;;  %v161_v30 = vld [vmem:[#allocation8 + $0x30] sm:$0xff] }
 0x180   :  { %v7898_v32 = vpack.c.bf16 %v162_v31, %v161_v30 }
 0x181   :  { %v327_v36 = vadd.f32 %v326_v34, %v325_v35  ;;  %v173_v35 = vld [vmem:[#allocation11] sm:$0xff]  ;;  %v174_v34 = vld [vmem:[#allocation11 + $0x8] sm:$0xff] }
 0x183   :  { %v329_v38 = vadd.f32 %v328_v37, %v327_v36  ;;  %v7903_v36 = vpack.c.bf16 %v174_v34, %v173_v35 }
 0x185   :  { %v330_v39 = vrot.slane %v329_v38, 4 }
 0x187   :  { %v331_v40 = vadd.f32 %v330_v39, %v329_v38 }
 0x189   :  { %v332_v41 = vrot.slane %v331_v40, 2 }
 0x18b   :  { %v333_v42 = vadd.f32 %v332_v41, %v331_v40  ;;  %v151_v40 = vld [vmem:[%s9192_s3] sm:$0x1] }
 0x18d   :  { %v334_v45 = vrot.slane %v333_v42, 1 }
 0x18f   :  { %v335_v46 = vadd.f32 %v334_v45, %v333_v42 }
 0x191   :  { %6080 = vmatmul.mubr.msk.f32.vlgmr.msra.gmra.mrb[2].mxu1 %vm200_vm1, %v335_v46 }
 0x192   :  { %6679 = vmatpush3.bf16.msra.mxu1 %v7803_v59 }
 0x193   :  { %6681 = vmatprep.subr.bf16.mxu1 %v7857_v47 }
 0x196   :  { %6683 = vmatpush3.bf16.msra.mxu1 %v7857_v47 }
 0x197   :  { %6685 = vmatprep.subr.bf16.mxu1 %v7862_v51 }
 0x19a   :  { %6687 = vmatpush3.bf16.msra.mxu1 %v7862_v51 }
 0x19b   :  { %6689 = vmatprep.subr.bf16.mxu1 %v7866_v55 }
 0x19e   :  { %6691 = vmatpush3.bf16.msra.mxu1 %v7866_v55 }
 0x1a2   :  { %v452_v56 = vpop.xlane.xlu1 %451 }
 0x1a3   :  { %v456_v57 = vmul.f32 0.015625, %v452_v56 }
 0x1a5   :  { %v458_v58 = vadd.f32 1e-05, %v456_v57 }
 0x1a6   :  { %v455_v60 = vpop.xlane.xlu1 %454 }
 0x1a7   :  { %7032 = vrsqrt.f32 %v458_v58  ;;  %v457_v61 = vmul.f32 0.015625, %v455_v60  ;;  %v7917_v58 = vpack.c.bf16 %v176_v52, %v175_v50 }
 0x1a9   :  { %v459_v63 = vadd.f32 1e-05, %v457_v61 }
 0x1ab   :  { %7034 = vrsqrt.f32 %v459_v63  ;;  %v177_v63 = vld [vmem:[#allocation11 + $0x20] sm:$0xff] }
 0x1b1   :  { %v7033_v3 = vpop.eup %7032 }
 0x1b2   :  { %v468_v11 = vmul.f32 %v7033_v3, %v5457_v2 }
 0x1b4   :  { %v470_v12 = vmul.f32 %v468_v11, %v7792_v49  ;;  %v157_v49 = vld [vmem:[#allocation8 + $0x10] sm:$0xff] }
 0x1b5   :  { %v7035_v15 = vpop.eup %7034  ;;  %v7891_v27 = vpack.c.bf16 %v158_v26, %v157_v49  ;;  %v179_v11 = vld [vmem:[#allocation11 + $0x30] sm:$0xff] }
 0x1b6   :  { %v469_v16 = vmul.f32 %v7035_v15, %v5457_v2  ;;  %v7878_v17 = vadd.f32 %v5458_v14, %v470_v12  ;;  %v178_v2 = vld [vmem:[#allocation11 + $0x28] sm:$0xff] }
 0x1b7   :  { %6665 = vmatprep.subr.bf16.mxu0 %v7891_v27 }
 0x1b8   :  { %6126 = vmatprep.mubr.msk.f32.mxu1 %vm200_vm1, %v7878_v17  ;;  %v471_v18 = vmul.f32 %v469_v16, %v7797_v53  ;;  %6667 = vmatpush3.bf16.msra.mxu0 %v7891_v27  ;;  %v159_v53 = vld [vmem:[#allocation8 + $0x20] sm:$0xff] }
 0x1b9   :  { %v7895_v29 = vpack.c.bf16 %v160_v28, %v159_v53 }
 0x1ba   :  { %v7883_v20 = vadd.f32 %v5458_v14, %v471_v18 }
 0x1bb   :  { %6669 = vmatprep.subr.bf16.mxu0 %v7895_v29 }
 0x1bc   :  { %6127 = vmatmul.mubr.msk.f32.vlgmr.msra.gmra.mrb[4].mxu1 %vm200_vm1, %v7883_v20  ;;  %6671 = vmatpush3.bf16.msra.mxu0 %v7895_v29 }
 0x1bd   :  { %6673 = vmatprep.subr.bf16.mxu0 %v7898_v32 }
 0x1c0   :  { %6675 = vmatpush3.bf16.msra.mxu0 %v7898_v32 }
 0x1c1   :  { %6693 = vmatprep.subr.bf16.mxu0 %v7903_v36 }
 0x264   :  { %v405_v37 = vpop.f32.mrb[2].mxu1 }
 0x265   :  { %v406_v38 = vadd.f32 1e-05, %v405_v37  ;;  %v6081_v39 = vpop.f32.mrb[3].mxu1 }
 0x267   :  { %7036 = vrsqrt.f32 %v406_v38 }
 0x271   :  { %v7037_v41 = vpop.eup %7036 }
 0x272   :  { %v410_v42 = vmul.f32 %v7037_v41, %v151_v40 }
 0x274   :  { %v414_v43 = vrot.slane %v410_v42, %v7806_v62 }
 0x276   :  { %v415_v45 = vmul.f32 %v414_v43, %v7810_v4  ;;  %v416_v46 = vmul.f32 %v414_v43, %v7813_v6  ;;  %v417_v48 = vmul.f32 %v414_v43, %v7816_v7  ;;  %v418_v57 = vmul.f32 %v414_v43, %v7819_v8 }
 0x277   :  { %v419_v61 = vmul.f32 %v414_v43, %v7822_v9  ;;  %v420_v6 = vmul.f32 %v414_v43, %v7831_v13  ;;  %v7926_v7 = vpack.c.bf16 %v178_v2, %v177_v63  ;;  %v421_v3 = vmul.f32 %v414_v43, %v7838_v19  ;;  %v180_v9 = vld [vmem:[#allocation11 + $0x38] sm:$0xff] }
 0x278   :  { %v429_v54 = vadd.f32 %v5456_v44, %v415_v45  ;;  %v430_v56 = vadd.f32 %v5456_v44, %v416_v46  ;;  %v431_v60 = vadd.f32 %v5456_v44, %v417_v48  ;;  %v432_v4 = vadd.f32 %v5456_v44, %v418_v57  ;;  %v5471_v46 = vld [vmem:[%s9201_s12] ss:$0 sm:$0xff] }
 0x279   :  { %v433_v8 = vadd.f32 %v5456_v44, %v419_v61  ;;  %v434_v14 = vadd.f32 %v5456_v44, %v420_v6  ;;  %v422_v12 = vmul.f32 %v414_v43, %v7844_v23  ;;  %v7934_v15 = vpack.c.bf16 %v180_v9, %v179_v11  ;;  %v5468_v23 = vld [vmem:[%s9199_s10] ss:$0 sm:$0xff] }
 0x27a   :  { %6098 = vmatprep.mubr.msk.f32.mxu0 %vm200_vm1, %v429_v54  ;;  %v435_v13 = vadd.f32 %v5456_v44, %v421_v3 }
 0x27b   :  { %6099 = vmatmul.mubr.msk.f32.vlgmr.msra.gmra.mrb[0].mxu0 %vm200_vm1, %v430_v56  ;;  %v436_v19 = vadd.f32 %v5456_v44, %v422_v12 }
 0x27c   :  { %6101 = vmatprep.mubr.msk.f32.mxu0 %vm200_vm1, %v431_v60  ;;  %6695 = vmatpush3.bf16.msra.mxu0 %v7903_v36 }
 0x27d   :  { %6697 = vmatprep.subr.bf16.mxu0 %v7917_v58 }
 0x27f   :  { %6102 = vmatmul.mubr.msk.f32.gmra.mrb[2].mxu0 %vm200_vm1, %v432_v4 }
 0x280   :  { %6104 = vmatprep.mubr.msk.f32.mxu0 %vm200_vm1, %v433_v8  ;;  %6699 = vmatpush3.bf16.msra.mxu0 %v7917_v58 }
 0x281   :  { %6701 = vmatprep.subr.bf16.mxu0 %v7926_v7 }
 0x283   :  { %6105 = vmatmul.mubr.msk.f32.gmra.mrb[4].mxu0 %vm200_vm1, %v434_v14 }
 0x284   :  { %6107 = vmatprep.mubr.msk.f32.mxu0 %vm200_vm1, %v435_v13  ;;  %6703 = vmatpush3.bf16.msra.mxu0 %v7926_v7 }
 0x285   :  { %6705 = vmatprep.subr.bf16.mxu0 %v7934_v15 }
 0x287   :  { %6108 = vmatmul.mubr.msk.f32.gmra.mrb[6].mxu0 %vm200_vm1, %v436_v19 }
 0x288   :  { %6707 = vmatpush3.bf16.msra.mxu0 %v7934_v15  ;;  %6145 = vmatprep.mubr.msk.f32.mxu0 %vm200_vm1, %v7878_v17 }
 0x28b   :  { %6146 = vmatmul.mubr.msk.f32.vlgmr.msra.gmra.mrb[8].mxu0 %vm200_vm1, %v7883_v20  ;;  %v5459_v20 = vld [vmem:[%s9197_s8] ss:$0 sm:$0xff] }
 0x28f   :  { %v6128_v16 = vpop.f32.mrb[4].mxu1 }
 0x290   :  { %v699_v18 = vadd.f32 %v6128_v16, %v5468_v23  ;;  %v693_v21 = vpop.f32.mrb[5].mxu1 }
 0x291   :  { %v694_v22 = vadd.f32 %v5468_v23, %v693_v21 }
 0x293   :  { %v6708_v26 = vpack.c.bf16 %v699_v18, %v694_v22  ;;  %v7955_v17 = vpack.i.bf16 %v699_v18, %v694_v22 }
 0x295   :  { %6710 = vmatprep.subr.msk.bf16.mxu1 %vm7951_vm3, %v6708_v26 }
 0x296   :  { %6713 = vmatpush3.bf16.xpose.msk.msra.mxu1 %vm7951_vm3, %v6708_v26 }
 0x34e   :  { %v6100_v53 = vpop.f32.mrb[0].mxu0 }
 0x34f   :  { %v576_v28 = vpop.f32.mrb[1].mxu0  ;;  %v7966_v31 = vadd.f32 %v6100_v53, %v5459_v20 }
 0x350   :  { %v7964_v30 = vadd.f32 %v5459_v20, %v576_v28 }
 0x352   :  { %v6103_v35 = vpop.f32.mrb[2].mxu0  ;;  %6152 = vmatprep.mubr.msk.f32.mxu1 %vm783_vm2, %v7964_v30 }
 0x353   :  { %v586_v34 = vpop.f32.mrb[3].mxu0  ;;  %6153 = vmatmul.mubr.msk.f32.vlgmr.msra.gmra.mrb[6].mxu1 %vm783_vm2, %v7966_v31  ;;  %v7974_v38 = vadd.f32 %v6103_v35, %v5459_v20 }
 0x354   :  { %v7972_v37 = vadd.f32 %v5459_v20, %v586_v34 }
 0x356   :  { %v6106_v39 = vpop.f32.mrb[4].mxu0  ;;  %6155 = vmatprep.mubr.msk.f32.mxu1 %vm783_vm2, %v7972_v37 }
 0x357   :  { %v596_v40 = vpop.f32.mrb[5].mxu0  ;;  %6156 = vmatmul.mubr.msk.f32.gmra.mrb[8].mxu1 %vm783_vm2, %v7974_v38  ;;  %v7982_v42 = vadd.f32 %v6106_v39, %v5459_v20 }
 0x358   :  { %v7980_v41 = vadd.f32 %v5459_v20, %v596_v40 }
 0x35a   :  { %v6109_v43 = vpop.f32.mrb[6].mxu0  ;;  %6158 = vmatprep.mubr.msk.f32.mxu1 %vm783_vm2, %v7980_v41 }
 0x35b   :  { %v606_v44 = vpop.f32.mrb[7].mxu0  ;;  %6159 = vmatmul.mubr.msk.f32.gmra.mrb[10].mxu1 %vm783_vm2, %v7982_v42  ;;  %v7993_v48 = vadd.f32 %v6109_v43, %v5459_v20 }
 0x35c   :  { %v7988_v45 = vadd.f32 %v5459_v20, %v606_v44 }
 0x35e   :  { %v6147_v50 = vpop.f32.mrb[8].mxu0  ;;  %6161 = vmatprep.mubr.msk.f32.mxu1 %vm783_vm2, %v7988_v45 }
 0x35f   :  { %v780_v52 = vadd.f32 %v6147_v50, %v5471_v46  ;;  %v774_v54 = vpop.f32.mrb[9].mxu0  ;;  %6162 = vmatmul.mubr.msk.f32.gmra.mrb[12].mxu1 %vm783_vm2, %v7993_v48 }
 0x360   :  { %v775_v56 = vadd.f32 %v5471_v46, %v774_v54 }
 0x362   :  { %v6714_v57 = vpack.c.bf16 %v780_v52, %v775_v56  ;;  %v7999_v60 = vpack.i.bf16 %v780_v52, %v775_v56 }
 0x364   :  { %6715 = vmatprep.subr.bf16.mxu0 %v6714_v57 }
 0x365   :  { %6717 = vmatpush3.bf16.msra.mxu0 %v6714_v57 }
 0x426   :  { %v6154_v61 = vpop.f32.mrb[6].mxu1 }
 0x427   :  { %v920_v63 = vmul.f32 0.25, %v6154_v61  ;;  %v880_v2 = vpop.f32.mrb[7].mxu1 }
 0x428   :  { %v919_v4 = vmul.f32 0.25, %v880_v2 }
 0x429   :  { %v930_v6 = vsel %vm783_vm2, %v920_v63, -inf }
 0x42a   :  { %931 = vmax.xlane.f32.xlu1 %v930_v6  ;;  %v6157_v8 = vpop.f32.mrb[8].mxu1  ;;  %v927_v3 = vsel %vm783_vm2, %v919_v4, -inf }
 0x42b   :  { %v922_v11 = vmul.f32 0.25, %v6157_v8  ;;  %928 = vmax.xlane.f32.xlu0 %v927_v3  ;;  %v890_v9 = vpop.f32.mrb[9].mxu1 }
 0x42c   :  { %v921_v14 = vmul.f32 0.25, %v890_v9 }
 0x42d   :  { %v936_v12 = vsel %vm783_vm2, %v922_v11, -inf }
 0x42e   :  { %937 = vmax.xlane.f32.xlu1 %v936_v12  ;;  %v6160_v13 = vpop.f32.mrb[10].mxu1  ;;  %v933_v19 = vsel %vm783_vm2, %v921_v14, -inf }
 0x42f   :  { %v924_v23 = vmul.f32 0.25, %v6160_v13  ;;  %934 = vmax.xlane.f32.xlu0 %v933_v19  ;;  %v900_v16 = vpop.f32.mrb[11].mxu1 }
 0x430   :  { %v923_v18 = vmul.f32 0.25, %v900_v16 }
 0x431   :  { %v942_v21 = vsel %vm783_vm2, %v924_v23, -inf }
 0x432   :  { %943 = vmax.xlane.f32.xlu1 %v942_v21  ;;  %v6163_v22 = vpop.f32.mrb[12].mxu1  ;;  %v939_v26 = vsel %vm783_vm2, %v923_v18, -inf }
 0x433   :  { %v926_v20 = vmul.f32 0.25, %v6163_v22  ;;  %940 = vmax.xlane.f32.xlu0 %v939_v26  ;;  %v910_v53 = vpop.f32.mrb[13].mxu1 }
 0x434   :  { %v925_v28 = vmul.f32 0.25, %v910_v53 }
 0x435   :  { %v948_v35 = vsel %vm783_vm2, %v926_v20, -inf }
 0x436   :  { %949 = vmax.xlane.f32.xlu1 %v948_v35  ;;  %v945_v34 = vsel %vm783_vm2, %v925_v28, -inf }
 0x437   :  { %946 = vmax.xlane.f32.xlu0 %v945_v34 }
 0x4b7   :  { %v932_v39 = vpop.xlane.xlu1 %931 }
 0x4b8   :  { %v952_v40 = vsub.f32 %v920_v63, %v932_v39  ;;  %v929_v43 = vpop.xlane.xlu0 %928 }
 0x4b9   :  { %v951_v44 = vsub.f32 %v919_v4, %v929_v43 }
 0x4ba   :  { %v961_v46 = vmul.f32 1.442695, %v952_v40 }
 0x4bb   :  { %v959_v50 = vmul.f32 1.442695, %v951_v44  ;;  %v938_v52 = vpop.xlane.xlu1 %937 }
 0x4bc   :  { %7038 = vpow2.f32 %v961_v46  ;;  %v954_v54 = vsub.f32 %v922_v11, %v938_v52  ;;  %v935_v56 = vpop.xlane.xlu0 %934  ;;  %v182_v52 = vld [vmem:[#allocation13] sm:$0xff] }
 0x4bd   :  { %7040 = vpow2.f32 %v959_v50  ;;  %v953_v57 = vsub.f32 %v921_v14, %v935_v56 }
 0x4be   :  { %v965_v61 = vmul.f32 1.442695, %v954_v54  ;;  %v183_v54 = vld [vmem:[#allocation13 + $0x8] sm:$0xff] }
 0x4bf   :  { %v963_v2 = vmul.f32 1.442695, %v953_v57  ;;  %v944_v6 = vpop.xlane.xlu1 %943  ;;  %v8077_v56 = vpack.c.bf16 %v183_v54, %v182_v52 }
 0x4c0   :  { %7042 = vpow2.f32 %v965_v61  ;;  %v956_v8 = vsub.f32 %v924_v23, %v944_v6  ;;  %v941_v3 = vpop.xlane.xlu0 %940 }
 0x4c1   :  { %7044 = vpow2.f32 %v963_v2  ;;  %v955_v9 = vsub.f32 %v923_v18, %v941_v3  ;;  %6719 = vmatprep.subr.bf16.mxu1 %v8077_v56 }
 0x4c2   :  { %v969_v12 = vmul.f32 1.442695, %v956_v8  ;;  %6721 = vmatpush3.bf16.msra.mxu1 %v8077_v56 }
 0x4c3   :  { %v967_v63 = vmul.f32 1.442695, %v955_v9  ;;  %v950_v13 = vpop.xlane.xlu1 %949 }
 0x4c4   :  { %7046 = vpow2.f32 %v969_v12  ;;  %v958_v4 = vsub.f32 %v926_v20, %v950_v13  ;;  %v947_v19 = vpop.xlane.xlu0 %946 }
 0x4c5   :  { %7048 = vpow2.f32 %v967_v63  ;;  %v957_v16 = vsub.f32 %v925_v28, %v947_v19 }
 0x4c6   :  { %v8009_v11 = vpop.eup %7038  ;;  %v973_v21 = vmul.f32 1.442695, %v958_v4 }
 0x4c7   :  { %v8011_v14 = vpop.eup %7040  ;;  %v971_v22 = vmul.f32 1.442695, %v957_v16  ;;  %v978_v23 = vsel %vm783_vm2, %v8009_v11, 0.0 }
 0x4c8   :  { %7050 = vpow2.f32 %v973_v21  ;;  %979 = vadd.xlane.f32.xlu1 %v978_v23  ;;  %v975_v18 = vsel %vm783_vm2, %v8011_v14, 0.0 }
 0x4c9   :  { %7052 = vpow2.f32 %v971_v22  ;;  %976 = vadd.xlane.f32.xlu0 %v975_v18 }
 0x4ca   :  { %v8017_v26 = vpop.eup %7042 }
 0x4cb   :  { %v8019_v20 = vpop.eup %7044  ;;  %v984_v53 = vsel %vm783_vm2, %v8017_v26, 0.0 }
 0x4cc   :  { %985 = vadd.xlane.f32.xlu1 %v984_v53  ;;  %v981_v28 = vsel %vm783_vm2, %v8019_v20, 0.0 }
 0x4cd   :  { %982 = vadd.xlane.f32.xlu0 %v981_v28 }
 0x4ce   :  { %v8025_v35 = vpop.eup %7046 }
 0x4cf   :  { %v8027_v34 = vpop.eup %7048  ;;  %v990_v39 = vsel %vm783_vm2, %v8025_v35, 0.0 }
 0x4d0   :  { %991 = vadd.xlane.f32.xlu1 %v990_v39  ;;  %v987_v40 = vsel %vm783_vm2, %v8027_v34, 0.0 }
 0x4d1   :  { %988 = vadd.xlane.f32.xlu0 %v987_v40 }
 0x4d2   :  { %v8033_v43 = vpop.eup %7050 }
 0x4d3   :  { %v8035_v44 = vpop.eup %7052  ;;  %v996_v46 = vsel %vm783_vm2, %v8033_v43, 0.0 }
 0x4d4   :  { %997 = vadd.xlane.f32.xlu1 %v996_v46  ;;  %v993_v50 = vsel %vm783_vm2, %v8035_v44, 0.0 }
 0x4d5   :  { %994 = vadd.xlane.f32.xlu0 %v993_v50 }
 0x4e5   :  { %1281 = vrot.lane.b32.xlu1 %v7964_v30, %s7521_s0 }
 0x4e9   :  { %1283 = vrot.lane.b32.xlu1 %v7966_v31, %s7521_s0 }
 0x4eb   :  { %6973 = vrot.lane.b32.xlu0 %v7955_v17, %s7521_s0 }
 0x4ed   :  { %1285 = vrot.lane.b32.xlu1 %v7972_v37, %s7521_s0 }
 0x4ef   :  { %1287 = vrot.lane.b32.xlu0 %v7974_v38, %s7521_s0 }
 0x4f1   :  { %6978 = vrot.lane.b32.xlu1 %v7955_v17, %s7522_s28 }
 0x4f3   :  { %1289 = vrot.lane.b32.xlu0 %v7980_v41, %s7521_s0 }
 0x4f5   :  { %1291 = vrot.lane.b32.xlu1 %v7982_v42, %s7521_s0 }
 0x4f7   :  { %1293 = vrot.lane.b32.xlu0 %v7988_v45, %s7521_s0 }
 0x4f9   :  { %1295 = vrot.lane.b32.xlu1 %v7993_v48, %s7521_s0 }
 0x4fb   :  { %1796 = vrot.lane.b32.xlu0 %v7964_v30, %s7522_s28 }
 0x4fd   :  { %1798 = vrot.lane.b32.xlu1 %v7966_v31, %s7522_s28 }
 0x4ff   :  { %1800 = vrot.lane.b32.xlu0 %v7972_v37, %s7522_s28 }
 0x501   :  { %1802 = vrot.lane.b32.xlu1 %v7974_v38, %s7522_s28 }
 0x503   :  { %1804 = vrot.lane.b32.xlu0 %v7980_v41, %s7522_s28 }
 0x505   :  { %1806 = vrot.lane.b32.xlu1 %v7982_v42, %s7522_s28 }
 0x507   :  { %1808 = vrot.lane.b32.xlu0 %v7988_v45, %s7522_s28 }
 0x509   :  { %1810 = vrot.lane.b32.xlu1 %v7993_v48, %s7522_s28 }
 0x555   :  { %v980_v57 = vpop.xlane.xlu1 %979 }
 0x556   :  { %7054 = vrcp.f32 %v980_v57  ;;  %v977_v61 = vpop.xlane.xlu0 %976 }
 0x557   :  { %7056 = vrcp.f32 %v977_v61 }
 0x559   :  { %v986_v2 = vpop.xlane.xlu1 %985 }
 0x55a   :  { %7058 = vrcp.f32 %v986_v2  ;;  %v983_v6 = vpop.xlane.xlu0 %982 }
 0x55b   :  { %7060 = vrcp.f32 %v983_v6 }
 0x55d   :  { %v992_v8 = vpop.xlane.xlu1 %991 }
 0x55e   :  { %7062 = vrcp.f32 %v992_v8  ;;  %v989_v3 = vpop.xlane.xlu0 %988 }
 0x55f   :  { %7064 = vrcp.f32 %v989_v3 }
 0x560   :  { %v7055_v9 = vpop.eup %7054 }
 0x561   :  { %v7057_v12 = vpop.eup %7056  ;;  %v998_v63 = vpop.xlane.xlu1 %997  ;;  %v1008_v19 = vmul.f32 %v7055_v9, %v8009_v11 }
 0x562   :  { %7066 = vrcp.f32 %v998_v63  ;;  %v995_v13 = vpop.xlane.xlu0 %994  ;;  %v1007_v4 = vmul.f32 %v7057_v12, %v8011_v14 }
 0x563   :  { %7068 = vrcp.f32 %v995_v13 }
 0x564   :  { %v7059_v16 = vpop.eup %7058  ;;  %6168 = vmatprep.mubr.msk.f32.mxu0 %vm783_vm2, %v1007_v4 }
 0x565   :  { %v7061_v21 = vpop.eup %7060  ;;  %v1282_v22 = vpop.permute.xlu1 %1281  ;;  %6169 = vmatmul.mubr.msk.f32.vlgmr.msra.gmra.mrb[10].mxu0 %vm783_vm2, %v1008_v19  ;;  %v1010_v39 = vmul.f32 %v7059_v16, %v8017_v26 }
 0x566   :  { %v6974_v23 = vpop.permute.xlu0 %6973  ;;  %v1009_v18 = vmul.f32 %v7061_v21, %v8019_v20 }
 0x567   :  { %v6976_v53 = vunpack.i.h.bf16 %v6974_v23  ;;  %v6975_v28 = vunpack.i.l.bf16 %v6974_v23 }
 0x568   :  { %v7063_v40 = vpop.eup %7062  ;;  %6171 = vmatprep.mubr.msk.f32.mxu0 %vm783_vm2, %v1009_v18 }
 0x569   :  { %v7065_v14 = vpop.eup %7064  ;;  %v6722_v46 = vpack.c.bf16 %v6976_v53, %v6975_v28  ;;  %v1284_v11 = vpop.permute.xlu1 %1283  ;;  %6172 = vmatmul.mubr.msk.f32.gmra.mrb[12].mxu0 %vm783_vm2, %v1010_v39  ;;  %v1012_v20 = vmul.f32 %v7063_v40, %v8025_v35 }
 0x56a   :  { %v1288_v50 = vpop.permute.xlu0 %1287  ;;  %v1011_v52 = vmul.f32 %v7065_v14, %v8027_v34 }
 0x56b   :  { %6724 = vmatprep.subr.msk.bf16.mxu0 %vm7951_vm3, %v6722_v46 }
 0x56c   :  { %v7067_v54 = vpop.eup %7066  ;;  %6174 = vmatprep.mubr.msk.f32.mxu0 %vm783_vm2, %v1011_v52  ;;  %6727 = vmatpush3.bf16.xpose.msk.msra.mxu0 %vm7951_vm3, %v6722_v46 }
 0x56d   :  { %v7069_v26 = vpop.eup %7068  ;;  %v1286_v57 = vpop.permute.xlu1 %1285  ;;  %6175 = vmatmul.mubr.msk.f32.gmra.mrb[14].mxu0 %vm783_vm2, %v1012_v20  ;;  %v1014_v34 = vmul.f32 %v7067_v54, %v8033_v43 }
 0x56e   :  { %v1013_v61 = vmul.f32 %v7069_v26, %v8035_v44  ;;  %v1290_v2 = vpop.permute.xlu0 %1289 }
 0x570   :  { %6177 = vmatprep.mubr.msk.f32.mxu0 %vm783_vm2, %v1013_v61 }
 0x571   :  { %v6979_v6 = vpop.permute.xlu1 %6978  ;;  %6178 = vmatmul.mubr.msk.f32.gmra.mrb[16].mxu0 %vm783_vm2, %v1014_v34 }
 0x572   :  { %v6981_v35 = vunpack.i.h.bf16 %v6979_v6  ;;  %v6980_v8 = vunpack.i.l.bf16 %v6979_v6  ;;  %6200 = vmatprep.mubr.msk.f32.mxu0 %vm783_vm2, %v1282_v22  ;;  %v1294_v9 = vpop.permute.xlu0 %1293 }
 0x574   :  { %v6736_v3 = vpack.c.bf16 %v6981_v35, %v6980_v8 }
 0x575   :  { %v1292_v12 = vpop.permute.xlu1 %1291  ;;  %6201 = vmatmul.mubr.msk.f32.vlgmr.msra.gmra.mrb[18].mxu0 %vm783_vm2, %v1284_v11 }
 0x576   :  { %6203 = vmatprep.mubr.msk.f32.mxu0 %vm783_vm2, %v1286_v57  ;;  %6738 = vmatprep.subr.msk.bf16.mxu0 %vm7951_vm3, %v6736_v3  ;;  %v1797_v44 = vpop.permute.xlu0 %1796 }
 0x577   :  { %6741 = vmatpush3.bf16.xpose.msk.msra.mxu0 %vm7951_vm3, %v6736_v3 }
 0x579   :  { %v1296_v43 = vpop.permute.xlu1 %1295  ;;  %6204 = vmatmul.mubr.msk.f32.gmra.mrb[20].mxu0 %vm783_vm2, %v1288_v50 }
 0x57a   :  { %6206 = vmatprep.mubr.msk.f32.mxu0 %vm783_vm2, %v1290_v2  ;;  %v1801_v13 = vpop.permute.xlu0 %1800 }
 0x57d   :  { %6207 = vmatmul.mubr.msk.f32.gmra.mrb[22].mxu0 %vm783_vm2, %v1292_v12  ;;  %v1799_v63 = vpop.permute.xlu1 %1798 }
 0x57e   :  { %6209 = vmatprep.mubr.msk.f32.mxu0 %vm783_vm2, %v1294_v9  ;;  %v1805_v19 = vpop.permute.xlu0 %1804 }
 0x581   :  { %6210 = vmatmul.mubr.msk.f32.gmra.mrb[24].mxu0 %vm783_vm2, %v1296_v43  ;;  %v1803_v4 = vpop.permute.xlu1 %1802 }
 0x582   :  { %6248 = vmatprep.mubr.msk.f32.mxu0 %vm783_vm2, %v1797_v44  ;;  %v1809_v21 = vpop.permute.xlu0 %1808 }
 0x585   :  { %6249 = vmatmul.mubr.msk.f32.vlgmr.msra.gmra.mrb[26].mxu0 %vm783_vm2, %v1799_v63  ;;  %v1807_v16 = vpop.permute.xlu1 %1806 }
 0x586   :  { %6251 = vmatprep.mubr.msk.f32.mxu0 %vm783_vm2, %v1801_v13 }
 0x589   :  { %6252 = vmatmul.mubr.msk.f32.gmra.mrb[28].mxu0 %vm783_vm2, %v1803_v4  ;;  %v1811_v22 = vpop.permute.xlu1 %1810 }
 0x58a   :  { %6254 = vmatprep.mubr.msk.f32.mxu0 %vm783_vm2, %v1805_v19 }
 0x58d   :  { %6255 = vmatmul.mubr.msk.f32.gmra.mrb[30].mxu0 %vm783_vm2, %v1807_v16 }
 0x58e   :  { %6257 = vmatprep.mubr.msk.f32.mxu0 %vm783_vm2, %v1809_v21 }
 0x591   :  { %6258 = vmatmul.mubr.msk.f32.gmra.mrb[32].mxu0 %vm783_vm2, %v1811_v22 }
 0x638   :  { %v6170_v23 = vpop.f32.mrb[10].mxu0 }
 0x639   :  { %v1105_v18 = vpop.f32.mrb[11].mxu0 }
 0x63a   :  { %6184 = vmatprep.mubr.msk.f32.mxu1 %vm783_vm2, %v1105_v18 }
 0x63b   :  { %6185 = vmatmul.mubr.msk.f32.vlgmr.msra.gmra.mrb[14].mxu1 %vm783_vm2, %v6170_v23 }
 0x63c   :  { %v6173_v53 = vpop.f32.mrb[12].mxu0 }
 0x63d   :  { %v1115_v28 = vpop.f32.mrb[13].mxu0 }
 0x63e   :  { %6187 = vmatprep.mubr.msk.f32.mxu1 %vm783_vm2, %v1115_v28 }
 0x63f   :  { %6188 = vmatmul.mubr.msk.f32.gmra.mrb[16].mxu1 %vm783_vm2, %v6173_v53 }
 0x640   :  { %v6176_v39 = vpop.f32.mrb[14].mxu0 }
 0x641   :  { %v1125_v40 = vpop.f32.mrb[15].mxu0 }
 0x642   :  { %6190 = vmatprep.mubr.msk.f32.mxu1 %vm783_vm2, %v1125_v40 }
 0x643   :  { %6191 = vmatmul.mubr.msk.f32.gmra.mrb[18].mxu1 %vm783_vm2, %v6176_v39 }
 0x644   :  { %v6179_v14 = vpop.f32.mrb[16].mxu0 }
 0x645   :  { %v1135_v46 = vpop.f32.mrb[17].mxu0 }
 0x646   :  { %6193 = vmatprep.mubr.msk.f32.mxu1 %vm783_vm2, %v1135_v46 }
 0x647   :  { %6194 = vmatmul.mubr.msk.f32.gmra.mrb[20].mxu1 %vm783_vm2, %v6179_v14 }
 0x648   :  { %v8129_v11 = vpop.f32.mrb[18].mxu0 }
 0x649   :  { %v8131_v50 = vpop.f32.mrb[19].mxu0 }
 0x64c   :  { %v8133_v52 = vpop.f32.mrb[20].mxu0 }
 0x64d   :  { %v8135_v20 = vpop.f32.mrb[21].mxu0 }
 0x650   :  { %v8137_v54 = vpop.f32.mrb[22].mxu0 }
 0x651   :  { %v8139_v26 = vpop.f32.mrb[23].mxu0 }
 0x654   :  { %v8141_v57 = vpop.f32.mrb[24].mxu0 }
 0x655   :  { %v8143_v61 = vpop.f32.mrb[25].mxu0 }
 0x658   :  { %v6250_v2 = vpop.f32.mrb[26].mxu0 }
 0x659   :  { %v1942_v34 = vmul.f32 0.25, %v6250_v2  ;;  %v1902_v6 = vpop.f32.mrb[27].mxu0 }
 0x65a   :  { %v1941_v35 = vmul.f32 0.25, %v1902_v6 }
 0x65b   :  { %v1952_v8 = vsel %vm783_vm2, %v1942_v34, -inf }
 0x65c   :  { %1953 = vmax.xlane.f32.xlu1 %v1952_v8  ;;  %v6253_v3 = vpop.f32.mrb[28].mxu0  ;;  %v1949_v9 = vsel %vm783_vm2, %v1941_v35, -inf }
 0x65d   :  { %v1944_v12 = vmul.f32 0.25, %v6253_v3  ;;  %1950 = vmax.xlane.f32.xlu0 %v1949_v9  ;;  %v1912_v43 = vpop.f32.mrb[29].mxu0 }
 0x65e   :  { %v1943_v63 = vmul.f32 0.25, %v1912_v43 }
 0x65f   :  { %v1958_v44 = vsel %vm783_vm2, %v1944_v12, -inf }
 0x660   :  { %v6256_v13 = vpop.f32.mrb[30].mxu0  ;;  %v1955_v23 = vsel %vm783_vm2, %v1943_v63, -inf }
 0x661   :  { %v1946_v4 = vmul.f32 0.25, %v6256_v13  ;;  %1959 = vmax.xlane.f32.xlu0 %v1958_v44  ;;  %v1922_v19 = vpop.f32.mrb[31].mxu0 }
 0x662   :  { %v1945_v21 = vmul.f32 0.25, %v1922_v19 }
 0x663   :  { %v1964_v16 = vsel %vm783_vm2, %v1946_v4, -inf }
 0x664   :  { %1965 = vmax.xlane.f32.xlu1 %v1964_v16  ;;  %v6259_v22 = vpop.f32.mrb[32].mxu0  ;;  %v1961_v40 = vsel %vm783_vm2, %v1945_v21, -inf }
 0x665   :  { %v1948_v18 = vmul.f32 0.25, %v6259_v22  ;;  %1956 = vmax.xlane.f32.xlu0 %v1955_v23  ;;  %v1932_v53 = vpop.f32.mrb[33].mxu0 }
 0x666   :  { %v1947_v39 = vmul.f32 0.25, %v1932_v53 }
 0x667   :  { %v1970_v28 = vsel %vm783_vm2, %v1948_v18, -inf }
 0x668   :  { %1971 = vmax.xlane.f32.xlu1 %v1970_v28  ;;  %v1967_v14 = vsel %vm783_vm2, %v1947_v39, -inf }
 0x669   :  { %1962 = vmax.xlane.f32.xlu0 %v1961_v40 }
 0x66d   :  { %1968 = vmax.xlane.f32.xlu0 %v1967_v14 }
 0x679   :  { %6988 = vrot.lane.b32.xlu1 %v7955_v17, %s7523_s15 }
 0x67d   :  { %2309 = vrot.lane.b32.xlu1 %v7964_v30, %s7523_s15 }
 0x681   :  { %2311 = vrot.lane.b32.xlu1 %v7966_v31, %s7523_s15 }
 0x683   :  { %6983 = vrot.lane.b32.xlu0 %v7999_v60, %s7522_s28 }
 0x687   :  { %2313 = vrot.lane.b32.xlu0 %v7972_v37, %s7523_s15 }
 0x6e9   :  { %v1954_v46 = vpop.xlane.xlu1 %1953 }
 0x6ea   :  { %v1974_v2 = vsub.f32 %v1942_v34, %v1954_v46  ;;  %v1951_v6 = vpop.xlane.xlu0 %1950 }
 0x6eb   :  { %v1973_v8 = vsub.f32 %v1941_v35, %v1951_v6 }
 0x6ec   :  { %v1983_v3 = vmul.f32 1.442695, %v1974_v2 }
 0x6ed   :  { %v1981_v9 = vmul.f32 1.442695, %v1973_v8 }
 0x6ee   :  { %7070 = vpow2.f32 %v1983_v3  ;;  %v1960_v17 = vpop.xlane.xlu0 %1959 }
 0x6ef   :  { %7072 = vpow2.f32 %v1981_v9  ;;  %v1976_v43 = vsub.f32 %v1944_v12, %v1960_v17 }
 0x6f1   :  { %v1987_v30 = vmul.f32 1.442695, %v1976_v43  ;;  %v1966_v44 = vpop.xlane.xlu1 %1965 }
 0x6f2   :  { %v1978_v13 = vsub.f32 %v1946_v4, %v1966_v44  ;;  %v1957_v31 = vpop.xlane.xlu0 %1956 }
 0x6f3   :  { %7074 = vpow2.f32 %v1987_v30  ;;  %v1975_v19 = vsub.f32 %v1943_v63, %v1957_v31 }
 0x6f4   :  { %v1991_v16 = vmul.f32 1.442695, %v1978_v13 }
 0x6f5   :  { %v1985_v22 = vmul.f32 1.442695, %v1975_v19  ;;  %v1972_v23 = vpop.xlane.xlu1 %1971 }
 0x6f6   :  { %7076 = vpow2.f32 %v1991_v16  ;;  %v1980_v37 = vsub.f32 %v1948_v18, %v1972_v23  ;;  %v1963_v34 = vpop.xlane.xlu0 %1962 }
 0x6f7   :  { %7078 = vpow2.f32 %v1985_v22  ;;  %v1977_v35 = vsub.f32 %v1945_v21, %v1963_v34 }
 0x6f8   :  { %v8163_v53 = vpop.eup %7070  ;;  %v1995_v28 = vmul.f32 1.442695, %v1980_v37 }
 0x6f9   :  { %v8165_v40 = vpop.eup %7072  ;;  %v1989_v12 = vmul.f32 1.442695, %v1977_v35  ;;  %v2000_v4 = vsel %vm783_vm2, %v8163_v53, 0.0  ;;  %v6989_v21 = vpop.permute.xlu1 %6988 }
 0x6fa   :  { %7080 = vpow2.f32 %v1995_v28  ;;  %2001 = vadd.xlane.f32.xlu1 %v2000_v4  ;;  %v1969_v63 = vpop.xlane.xlu0 %1968  ;;  %v1997_v14 = vsel %vm783_vm2, %v8165_v40, 0.0  ;;  %v6991_v43 = vunpack.i.h.bf16 %v6989_v21  ;;  %v6990_v30 = vunpack.i.l.bf16 %v6989_v21  ;;  %v8254_v21 = vld [vmem:[#allocation2 + $0x48] sm:$0xff] }
 0x6fb   :  { %7082 = vpow2.f32 %v1989_v12  ;;  %v1979_v18 = vsub.f32 %v1947_v39, %v1969_v63  ;;  %1998 = vadd.xlane.f32.xlu0 %v1997_v14  ;;  %v8211_v28 = vmul.f32 0.25, %v8129_v11  ;;  %v8214_v12 = vmul.f32 0.25, %v8131_v50 }
 0x6fc   :  { %v8185_v16 = vpack.c.bf16 %v6991_v43, %v6990_v30  ;;  %v8230_v11 = vmul.f32 0.25, %v8141_v57  ;;  %v8244_v57 = vmul.f32 0.25, %v8143_v61 }
 0x6fd   :  { %v8171_v46 = vpop.eup %7074  ;;  %v1993_v2 = vmul.f32 1.442695, %v1979_v18  ;;  %v8252_v18 = vld [vmem:[#allocation2 + $0x40] sm:$0xff] }
 0x6fe   :  { %v6984_v6 = vpop.permute.xlu0 %6983  ;;  %v2006_v8 = vsel %vm783_vm2, %v8171_v46, 0.0  ;;  %v1455_v4 = vsel %vm783_vm2, %v8230_v11, -inf  ;;  %v1452_v14 = vsel %vm783_vm2, %v8244_v57, -inf  ;;  %v2842_v61 = vsel %vm200_vm1, %v8252_v18, 0.0 }
 0x6ff   :  { %7084 = vpow2.f32 %v1993_v2  ;;  %v6986_v3 = vunpack.i.h.bf16 %v6984_v6  ;;  %v6985_v9 = vunpack.i.l.bf16 %v6984_v6  ;;  %2007 = vadd.xlane.f32.xlu1 %v2006_v8  ;;  %v2843_v8 = vsel %vm200_vm1, %v8254_v21, 0.0 }
 0x700   :  { %v8175_v17 = vpop.eup %7076  ;;  %v2844_v30 = vadd.f32 %v2843_v8, %v2842_v61 }
 0x701   :  { %v8177_v44 = vpop.eup %7078  ;;  %v2012_v39 = vsel %vm783_vm2, %v8175_v17, 0.0  ;;  %v6742_v13 = vpack.c.bf16 %v6986_v3, %v6985_v9  ;;  %v8264_v3 = vld [vmem:[#allocation2 + $0x50] sm:$0xff] }
 0x702   :  { %v2003_v31 = vsel %vm783_vm2, %v8177_v44, 0.0  ;;  %v8258_v6 = vpop.permute.xlu0 %2313 }
 0x703   :  { %2013 = vadd.xlane.f32.xlu1 %v2012_v39  ;;  %2004 = vadd.xlane.f32.xlu0 %v2003_v31  ;;  %v2845_v39 = vsel %vm200_vm1, %v8264_v3, 0.0 }
 0x704   :  { %v8183_v19 = vpop.eup %7080  ;;  %6743 = vmatprep.subr.bf16.mxu0 %v6742_v13 }
 0x705   :  { %v8187_v22 = vpop.eup %7082  ;;  %6745 = vmatpush3.bf16.msra.mxu0 %v6742_v13  ;;  %v2018_v23 = vsel %vm783_vm2, %v8183_v19, 0.0  ;;  %v8268_v13 = vld [vmem:[#allocation2 + $0x58] sm:$0xff] }
 0x706   :  { %6752 = vmatprep.subr.msk.bf16.mxu0 %vm7951_vm3, %v8185_v16  ;;  %v2009_v37 = vsel %vm783_vm2, %v8187_v22, 0.0 }
 0x707   :  { %2019 = vadd.xlane.f32.xlu1 %v2018_v23  ;;  %2010 = vadd.xlane.f32.xlu0 %v2009_v37  ;;  %v2846_v23 = vadd.f32 %v2845_v39, %v2844_v30  ;;  %v2847_v37 = vsel %vm200_vm1, %v8268_v13, 0.0  ;;  %v8283_v39 = vld [vmem:[#allocation2 + $0x70] sm:$0xff] }
 0x709   :  { %v8196_v34 = vpop.eup %7084 }
 0x70a   :  { %v2015_v35 = vsel %vm783_vm2, %v8196_v34, 0.0 }
 0x70b   :  { %2016 = vadd.xlane.f32.xlu0 %v2015_v35  ;;  %v8272_v35 = vld [vmem:[#allocation2 + $0x60] sm:$0xff] }
 0x718   :  { %2315 = vrot.lane.b32.xlu1 %v7974_v38, %s7523_s15  ;;  %v8217_v38 = vmul.f32 0.25, %v8135_v20 }
 0x71a   :  { %v1440_v20 = vsel %vm783_vm2, %v8217_v38, -inf }
 0x71c   :  { %2319 = vrot.lane.b32.xlu1 %v7982_v42, %s7523_s15  ;;  %v8220_v42 = vmul.f32 0.25, %v8137_v54  ;;  %v8237_v54 = vmul.f32 0.25, %v8139_v26  ;;  %v8250_v26 = vpop.permute.xlu1 %2309 }
 0x71e   :  { %v1449_v50 = vsel %vm783_vm2, %v8220_v42, -inf  ;;  %v1446_v63 = vsel %vm783_vm2, %v8237_v54, -inf }
 0x720   :  { %2323 = vrot.lane.b32.xlu1 %v7993_v48, %s7523_s15  ;;  %v1437_v48 = vsel %vm783_vm2, %v8211_v28, -inf  ;;  %v8256_v2 = vpop.permute.xlu1 %2311 }
 0x721   :  { %2317 = vrot.lane.b32.xlu0 %v7980_v41, %s7523_s15  ;;  %v1434_v41 = vsel %vm783_vm2, %v8214_v12, -inf }
 0x725   :  { %2321 = vrot.lane.b32.xlu0 %v7988_v45, %s7523_s15  ;;  %v8227_v45 = vmul.f32 0.25, %v8133_v52 }
 0x727   :  { %v1443_v52 = vsel %vm783_vm2, %v8227_v45, -inf }
 0x744   :  { %1438 = vmax.xlane.f32.xlu1 %v1437_v48  ;;  %1435 = vmax.xlane.f32.xlu0 %v1434_v41 }
 0x748   :  { %1450 = vmax.xlane.f32.xlu1 %v1449_v50  ;;  %1441 = vmax.xlane.f32.xlu0 %v1440_v20  ;;  %v2848_v50 = vadd.f32 %v2847_v37, %v2846_v23  ;;  %v2849_v20 = vsel %vm200_vm1, %v8272_v35, 0.0  ;;  %v8292_v23 = vld [vmem:[#allocation2 + $0x78] sm:$0xff] }
 0x74a   :  { %v2850_v8 = vadd.f32 %v2849_v20, %v2848_v50  ;;  %v2855_v20 = vsel %vm200_vm1, %v8292_v23, 0.0 }
 0x74c   :  { %1456 = vmax.xlane.f32.xlu1 %v1455_v4  ;;  %1444 = vmax.xlane.f32.xlu0 %v1443_v52  ;;  %v8276_v52 = vld [vmem:[#allocation2 + $0x68] sm:$0xff] }
 0x74d   :  { %v2851_v30 = vsel %vm200_vm1, %v8276_v52, 0.0 }
 0x750   :  { %1447 = vmax.xlane.f32.xlu0 %v1446_v63 }
 0x754   :  { %1453 = vmax.xlane.f32.xlu0 %v1452_v14 }
 0x787   :  { %v2002_v9 = vpop.xlane.xlu1 %2001 }
 0x788   :  { %7086 = vrcp.f32 %v2002_v9  ;;  %v1999_v43 = vpop.xlane.xlu0 %1998 }
 0x789   :  { %7088 = vrcp.f32 %v1999_v43 }
 0x78c   :  { %v2008_v31 = vpop.xlane.xlu1 %2007 }
 0x78d   :  { %7090 = vrcp.f32 %v2008_v31  ;;  %v2852_v31 = vadd.f32 %v2851_v30, %v2850_v8 }
 0x790   :  { %v2014_v48 = vpop.xlane.xlu1 %2013  ;;  %v2005_v41 = vpop.xlane.xlu0 %2004 }
 0x791   :  { %7092 = vrcp.f32 %v2005_v41 }
 0x792   :  { %v7087_v4 = vpop.eup %7086  ;;  %7094 = vrcp.f32 %v2014_v48 }
 0x793   :  { %v7089_v63 = vpop.eup %7088  ;;  %v2030_v9 = vmul.f32 %v7087_v4, %v8163_v53  ;;  %v2853_v53 = vsel %vm200_vm1, %v8283_v39, 0.0 }
 0x794   :  { %v2011_v14 = vpop.xlane.xlu0 %2010  ;;  %v2029_v61 = vmul.f32 %v7089_v63, %v8165_v40  ;;  %v2020_v43 = vpop.xlane.xlu1 %2019  ;;  %v2854_v41 = vadd.f32 %v2853_v53, %v2852_v31 }
 0x795   :  { %7096 = vrcp.f32 %v2011_v14 }
 0x796   :  { %6264 = vmatprep.mubr.msk.f32.mxu0 %vm783_vm2, %v2029_v61  ;;  %7098 = vrcp.f32 %v2020_v43  ;;  %v2856_v14 = vadd.f32 %v2855_v20, %v2854_v41 }
 0x797   :  { %6265 = vmatmul.mubr.msk.f32.vlgmr.msra.gmra.mrb[34].mxu0 %vm783_vm2, %v2030_v9  ;;  %v7091_v37 = vpop.eup %7090 }
 0x798   :  { %6755 = vmatpush3.bf16.xpose.msk.msra.mxu0 %vm7951_vm3, %v8185_v16  ;;  %v2017_v40 = vpop.xlane.xlu0 %2016  ;;  %v2032_v16 = vmul.f32 %v7091_v37, %v8171_v46  ;;  %v2857_v46 = vrot.slane %v2856_v14, 4 }
 0x799   :  { %7100 = vrcp.f32 %v2017_v40  ;;  %6764 = vmatprep.subr.bf16.mxu0 %v7518_v0 }
 0x79a   :  { %v2858_v40 = vadd.f32 %v2857_v46, %v2856_v14 }
 0x79b   :  { %v7093_v48 = vpop.eup %7092 }
 0x79c   :  { %v2031_v50 = vmul.f32 %v7093_v48, %v8177_v44  ;;  %v7095_v4 = vpop.eup %7094 }
 0x79d   :  { %v2034_v9 = vmul.f32 %v7095_v4, %v8175_v17  ;;  %v2859_v17 = vrot.slane %v2858_v40, 2 }
 0x79e   :  { %6267 = vmatprep.mubr.msk.f32.mxu0 %vm783_vm2, %v2031_v50 }
 0x79f   :  { %v7097_v63 = vpop.eup %7096  ;;  %6268 = vmatmul.mubr.msk.f32.gmra.mrb[36].mxu0 %vm783_vm2, %v2032_v16 }
 0x7a0   :  { %v2033_v61 = vmul.f32 %v7097_v63, %v8187_v22  ;;  %v7099_v8 = vpop.eup %7098  ;;  %v2316_v22 = vpop.permute.xlu1 %2315 }
 0x7a1   :  { %v2036_v30 = vmul.f32 %v7099_v8, %v8183_v19  ;;  %v2860_v19 = vadd.f32 %v2859_v17, %v2858_v40 }
 0x7a2   :  { %6270 = vmatprep.mubr.msk.f32.mxu0 %vm783_vm2, %v2033_v61 }
 0x7a3   :  { %v7101_v43 = vpop.eup %7100  ;;  %6271 = vmatmul.mubr.msk.f32.gmra.mrb[38].mxu0 %vm783_vm2, %v2034_v9 }
 0x7a4   :  { %v2035_v44 = vmul.f32 %v7101_v43, %v8196_v34  ;;  %v2318_v34 = vpop.permute.xlu0 %2317  ;;  %v2320_v31 = vpop.permute.xlu1 %2319 }
 0x7a6   :  { %6273 = vmatprep.mubr.msk.f32.mxu0 %vm783_vm2, %v2035_v44 }
 0x7a7   :  { %6274 = vmatmul.mubr.msk.f32.gmra.mrb[40].mxu0 %vm783_vm2, %v2036_v30 }
 0x7a8   :  { %6296 = vmatprep.mubr.msk.f32.mxu0 %vm783_vm2, %v8250_v26  ;;  %v2322_v26 = vpop.permute.xlu0 %2321 }
 0x7ab   :  { %6297 = vmatmul.mubr.msk.f32.vlgmr.msra.gmra.mrb[42].mxu0 %vm783_vm2, %v8256_v2  ;;  %v2861_v2 = vrot.slane %v2860_v19, 1 }
 0x7ac   :  { %6299 = vmatprep.mubr.msk.f32.mxu0 %vm783_vm2, %v8258_v6  ;;  %6766 = vmatpush3.bf16.msra.mxu0 %v7729_v5  ;;  %v2324_v6 = vpop.permute.xlu1 %2323 }
 0x7ad   :  { %6767 = vmatprep.subr.bf16.mxu0 %v7518_v0  ;;  %v2862_v53 = vadd.f32 %v2861_v2, %v2860_v19 }
 0x7af   :  { %6300 = vmatmul.mubr.msk.f32.gmra.mrb[44].mxu0 %vm783_vm2, %v2316_v22 }
 0x7b0   :  { %6302 = vmatprep.mubr.msk.f32.mxu0 %vm783_vm2, %v2318_v34  ;;  %6769 = vmatpush3.bf16.msra.mxu0 %v7735_v10 }
 0x7b1   :  { %6770 = vmatprep.subr.bf16.mxu0 %v7518_v0 }
 0x7b3   :  { %6303 = vmatmul.mubr.msk.f32.gmra.mrb[46].mxu0 %vm783_vm2, %v2320_v31 }
 0x7b4   :  { %6305 = vmatprep.mubr.msk.f32.mxu0 %vm783_vm2, %v2322_v26  ;;  %6772 = vmatpush3.bf16.msra.mxu0 %v7759_v24 }
 0x7b5   :  { %6773 = vmatprep.subr.bf16.mxu0 %v7518_v0 }
 0x7b7   :  { %6306 = vmatmul.mubr.msk.f32.gmra.mrb[48].mxu0 %vm783_vm2, %v2324_v6 }
 0x7b8   :  { %6775 = vmatpush3.bf16.msra.mxu0 %v7771_v33  ;;  %6356 = vmatprep.mubr.msk.f32.mxu0 %vm7519_vm0, %v7520_v1 }
 0x7b9   :  { %6776 = vmatprep.subr.bf16.mxu0 %v7518_v0 }
 0x7bb   :  { %6357 = vmatmul.mubr.msk.f32.vlgmr.msra.gmra.mrb[50].mxu0 %vm200_vm1, %v2862_v53 }
 0x7bc   :  { %6778 = vmatpush3.bf16.msra.mxu0 %v7729_v5  ;;  %6375 = vmatprep.mubr.msk.f32.mxu0 %vm7519_vm0, %v7520_v1 }
 0x7bd   :  { %6779 = vmatprep.subr.bf16.mxu0 %v7518_v0 }
 0x7c0   :  { %6781 = vmatpush3.bf16.msra.mxu0 %v7735_v10 }
 0x7c1   :  { %6782 = vmatprep.subr.bf16.mxu0 %v7518_v0 }
 0x7c4   :  { %6784 = vmatpush3.bf16.msra.mxu0 %v7759_v24 }
 0x7c5   :  { %6785 = vmatprep.subr.bf16.mxu0 %v7518_v0 }
 0x7c8   :  { %6787 = vmatpush3.bf16.msra.mxu0 %v7771_v33 }
 0x7c9   :  { %6805 = vmatprep.subr.bf16.mxu0 %v7803_v59 }
 0x7d1   :  { %v1439_v37 = vpop.xlane.xlu1 %1438  ;;  %v1436_v48 = vpop.xlane.xlu0 %1435 }
 0x7d2   :  { %v1459_v5 = vsub.f32 %v8211_v28, %v1439_v37  ;;  %v1458_v1 = vsub.f32 %v8214_v12, %v1436_v48 }
 0x7d4   :  { %v1468_v41 = vmul.f32 1.442695, %v1459_v5  ;;  %v1466_v50 = vmul.f32 1.442695, %v1458_v1 }
 0x7d5   :  { %v1451_v20 = vpop.xlane.xlu1 %1450  ;;  %v1442_v10 = vpop.xlane.xlu0 %1441 }
 0x7d6   :  { %7102 = vpow2.f32 %v1468_v41  ;;  %v1460_v16 = vsub.f32 %v8217_v38, %v1442_v10  ;;  %v1463_v0 = vsub.f32 %v8220_v42, %v1451_v20 }
 0x7d7   :  { %7104 = vpow2.f32 %v1466_v50 }
 0x7d8   :  { %v1470_v24 = vmul.f32 1.442695, %v1460_v16  ;;  %v1476_v28 = vmul.f32 1.442695, %v1463_v0 }
 0x7d9   :  { %v1445_v33 = vpop.xlane.xlu0 %1444  ;;  %v1457_v4 = vpop.xlane.xlu1 %1456 }
 0x7da   :  { %v1461_v63 = vsub.f32 %v8227_v45, %v1445_v33  ;;  %7106 = vpow2.f32 %v1470_v24  ;;  %v1465_v12 = vsub.f32 %v8230_v11, %v1457_v4 }
 0x7dc   :  { %v1472_v14 = vmul.f32 1.442695, %v1461_v63  ;;  %v1480_v44 = vmul.f32 1.442695, %v1465_v12 }
 0x7dd   :  { %v1448_v61 = vpop.xlane.xlu0 %1447 }
 0x7de   :  { %v1462_v8 = vsub.f32 %v8237_v54, %v1448_v61  ;;  %7108 = vpow2.f32 %v1472_v14 }
 0x7df   :  { %7110 = vpow2.f32 %v1476_v28 }
 0x7e0   :  { %v8347_v9 = vpop.eup %7102  ;;  %v1474_v38 = vmul.f32 1.442695, %v1462_v8 }
 0x7e1   :  { %v7105_v43 = vpop.eup %7104  ;;  %v1454_v42 = vpop.xlane.xlu0 %1453  ;;  %v1485_v46 = vsel %vm783_vm2, %v8347_v9, 0.0 }
 0x7e2   :  { %7112 = vpow2.f32 %v1474_v38  ;;  %v1464_v45 = vsub.f32 %v8244_v57, %v1454_v42  ;;  %1486 = vadd.xlane.f32.xlu1 %v1485_v46  ;;  %v1482_v11 = vsel %vm783_vm2, %v7105_v43, 0.0 }
 0x7e3   :  { %1483 = vadd.xlane.f32.xlu0 %v1482_v11  ;;  %7114 = vpow2.f32 %v1480_v44 }
 0x7e4   :  { %v1478_v30 = vmul.f32 1.442695, %v1464_v45  ;;  %v8353_v54 = vpop.eup %7106 }
 0x7e5   :  { %v1488_v40 = vsel %vm783_vm2, %v8353_v54, 0.0 }
 0x7e6   :  { %7116 = vpow2.f32 %v1478_v30 }
 0x7e7   :  { %1489 = vadd.xlane.f32.xlu0 %v1488_v40 }
 0x7e8   :  { %v8357_v22 = vpop.eup %7108 }
 0x7e9   :  { %v1491_v17 = vsel %vm783_vm2, %v8357_v22, 0.0  ;;  %v8361_v34 = vpop.eup %7110 }
 0x7ea   :  { %1492 = vadd.xlane.f32.xlu1 %v1491_v17  ;;  %v1497_v31 = vsel %vm783_vm2, %v8361_v34, 0.0 }
 0x7ec   :  { %v8363_v57 = vpop.eup %7112 }
 0x7ed   :  { %v1494_v19 = vsel %vm783_vm2, %v8363_v57, 0.0  ;;  %v8369_v26 = vpop.eup %7114 }
 0x7ee   :  { %1495 = vadd.xlane.f32.xlu0 %v1494_v19  ;;  %1498 = vadd.xlane.f32.xlu1 %v1497_v31  ;;  %v1503_v53 = vsel %vm783_vm2, %v8369_v26, 0.0 }
 0x7f0   :  { %v8371_v2 = vpop.eup %7116 }
 0x7f1   :  { %v1500_v6 = vsel %vm783_vm2, %v8371_v2, 0.0 }
 0x7f2   :  { %1501 = vadd.xlane.f32.xlu0 %v1500_v6  ;;  %1504 = vadd.xlane.f32.xlu1 %v1503_v53 }
 0x808   :  { %6993 = vrot.lane.b32.xlu0 %v7999_v60, %s7521_s0 }
 0x86a   :  { %v8379_v37 = vpop.f32.mrb[34].mxu0 }
 0x86b   :  { %v8381_v48 = vpop.f32.mrb[35].mxu0 }
 0x86f   :  { %v1487_v41 = vpop.xlane.xlu1 %1486 }
 0x870   :  { %v1484_v5 = vpop.xlane.xlu0 %1483 }
 0x871   :  { %7118 = vrcp.f32 %v1484_v5 }
 0x872   :  { %v8383_v1 = vpop.f32.mrb[36].mxu0  ;;  %7120 = vrcp.f32 %v1487_v41 }
 0x873   :  { %v8385_v50 = vpop.f32.mrb[37].mxu0 }
 0x874   :  { %v1490_v20 = vpop.xlane.xlu0 %1489 }
 0x875   :  { %7122 = vrcp.f32 %v1490_v20 }
 0x876   :  { %v8387_v10 = vpop.f32.mrb[38].mxu0 }
 0x877   :  { %v1493_v16 = vpop.xlane.xlu1 %1492  ;;  %v8389_v24 = vpop.f32.mrb[39].mxu0 }
 0x878   :  { %7124 = vrcp.f32 %v1493_v16 }
 0x87a   :  { %v8391_v33 = vpop.f32.mrb[40].mxu0 }
 0x87b   :  { %v7119_v0 = vpop.eup %7118  ;;  %v1496_v4 = vpop.xlane.xlu0 %1495 }
 0x87c   :  { %v8393_v63 = vpop.f32.mrb[41].mxu0  ;;  %v1514_v14 = vmul.f32 %v7119_v0, %v7105_v43  ;;  %v1499_v28 = vpop.xlane.xlu1 %1498  ;;  %7126 = vrcp.f32 %v1496_v4 }
 0x87d   :  { %7128 = vrcp.f32 %v1499_v28  ;;  %v7121_v6 = vpop.eup %7120 }
 0x87e   :  { %6216 = vmatprep.mubr.msk.f32.mxu1 %vm783_vm2, %v1514_v14  ;;  %v6298_v12 = vpop.f32.mrb[42].mxu0  ;;  %v1515_v20 = vmul.f32 %v7121_v6, %v8347_v9 }
 0x87f   :  { %v1502_v61 = vpop.xlane.xlu0 %1501  ;;  %v8396_v8 = vmul.f32 0.25, %v6298_v12  ;;  %v2415_v38 = vpop.f32.mrb[43].mxu0 }
 0x880   :  { %v8398_v44 = vmul.f32 0.25, %v2415_v38  ;;  %v1505_v40 = vpop.xlane.xlu1 %1504  ;;  %7130 = vrcp.f32 %v1502_v61  ;;  %v7123_v5 = vpop.eup %7122 }
 0x881   :  { %v2465_v42 = vsel %vm783_vm2, %v8396_v8, -inf  ;;  %7132 = vrcp.f32 %v1505_v40  ;;  %v1516_v28 = vmul.f32 %v7123_v5, %v8353_v54 }
 0x882   :  { %2466 = vmax.xlane.f32.xlu1 %v2465_v42  ;;  %v6301_v46 = vpop.f32.mrb[44].mxu0  ;;  %v2462_v19 = vsel %vm783_vm2, %v8398_v44, -inf  ;;  %v7125_v4 = vpop.eup %7124 }
 0x883   :  { %v6994_v43 = vpop.permute.xlu0 %6993  ;;  %v2425_v45 = vpop.f32.mrb[45].mxu0  ;;  %v8402_v17 = vmul.f32 0.25, %v6301_v46 }
 0x884   :  { %v6996_v11 = vunpack.i.h.bf16 %v6994_v43  ;;  %v6995_v30 = vunpack.i.l.bf16 %v6994_v43  ;;  %v8407_v16 = vmul.f32 0.25, %v2425_v45  ;;  %v1517_v43 = vmul.f32 %v7125_v4, %v8357_v22 }
 0x885   :  { %v2471_v0 = vsel %vm783_vm2, %v8402_v17, -inf }
 0x886   :  { %v6728_v31 = vpack.c.bf16 %v6996_v11, %v6995_v30  ;;  %2463 = vmax.xlane.f32.xlu1 %v2462_v19  ;;  %v6304_v53 = vpop.f32.mrb[46].mxu0  ;;  %v7127_v12 = vpop.eup %7126  ;;  %v2468_v46 = vsel %vm783_vm2, %v8407_v16, -inf }
 0x887   :  { %v2435_v41 = vpop.f32.mrb[47].mxu0  ;;  %v7129_v9 = vpop.eup %7128  ;;  %v1518_v45 = vmul.f32 %v7127_v12, %v8363_v57 }
 0x888   :  { %6729 = vmatprep.subr.bf16.mxu1 %v6728_v31  ;;  %v8413_v38 = vmul.f32 0.25, %v2435_v41  ;;  %v1519_v6 = vmul.f32 %v7129_v9, %v8361_v34 }
 0x889   :  { %6731 = vmatpush3.bf16.msra.mxu1 %v6728_v31  ;;  %v8426_v31 = vmul.f32 0.25, %v6304_v53 }
 0x88a   :  { %2472 = vmax.xlane.f32.xlu1 %v2471_v0  ;;  %v6307_v14 = vpop.f32.mrb[48].mxu0  ;;  %v7131_v30 = vpop.eup %7130  ;;  %v2474_v22 = vsel %vm783_vm2, %v8413_v38, -inf }
 0x88b   :  { %v2445_v61 = vpop.f32.mrb[49].mxu0  ;;  %v7133_v5 = vpop.eup %7132  ;;  %v1520_v0 = vmul.f32 %v7131_v30, %v8371_v2  ;;  %v8460_v2 = vmul.f32 0.25, %v6307_v14 }
 0x88c   :  { %6217 = vmatmul.mubr.msk.f32.vlgmr.msra.gmra.mrb[22].mxu1 %vm783_vm2, %v1515_v20  ;;  %v8415_v42 = vmul.f32 0.25, %v2445_v61 }
 0x88d   :  { %6219 = vmatprep.mubr.msk.f32.mxu1 %vm783_vm2, %v1516_v28 }
 0x88e   :  { %2469 = vmax.xlane.f32.xlu1 %v2468_v46  ;;  %v2480_v54 = vsel %vm783_vm2, %v8415_v42, -inf  ;;  %v2932_v11 = vpop.f32.mrb[50].mxu0 }
 0x88f   :  { %2481 = vmax.xlane.f32.xlu0 %v2480_v54  ;;  %v2939_v40 = vrot.slane %v2932_v11, %v7806_v62  ;;  %v6358_v19 = vpop.f32.mrb[51].mxu0 }
 0x890   :  { %6220 = vmatmul.mubr.msk.f32.gmra.mrb[24].mxu1 %vm783_vm2, %v1517_v43 }
 0x891   :  { %6222 = vmatprep.mubr.msk.f32.mxu1 %vm783_vm2, %v1518_v45  ;;  %v8433_v57 = vsub.f32 %v8252_v18, %v2939_v40  ;;  %v8436_v41 = vsub.f32 %v8254_v21, %v2939_v40  ;;  %v8439_v20 = vsub.f32 %v8264_v3, %v2939_v40  ;;  %v8442_v53 = vsub.f32 %v8268_v13, %v2939_v40 }
 0x892   :  { %2475 = vmax.xlane.f32.xlu1 %v2474_v22  ;;  %v8446_v4 = vsub.f32 %v8272_v35, %v2939_v40  ;;  %v8449_v34 = vsub.f32 %v8276_v52, %v2939_v40  ;;  %v2477_v35 = vsel %vm783_vm2, %v8426_v31, -inf  ;;  %v1521_v52 = vmul.f32 %v7133_v5, %v8369_v26 }
 0x893   :  { %v2948_v18 = vmul.f32 %v8433_v57, %v8433_v57  ;;  %v2949_v21 = vmul.f32 %v8436_v41, %v8436_v41  ;;  %v2950_v3 = vmul.f32 %v8439_v20, %v8439_v20  ;;  %v2951_v13 = vmul.f32 %v8442_v53, %v8442_v53 }
 0x894   :  { %6223 = vmatmul.mubr.msk.f32.gmra.mrb[26].mxu1 %vm783_vm2, %v1519_v6  ;;  %v8467_v28 = vsub.f32 %v8283_v39, %v2939_v40  ;;  %v2952_v12 = vmul.f32 %v8446_v4, %v8446_v4  ;;  %v8476_v43 = vsub.f32 %v8292_v23, %v2939_v40  ;;  %v2953_v39 = vmul.f32 %v8449_v34, %v8449_v34 }
 0x895   :  { %6225 = vmatprep.mubr.msk.f32.mxu1 %vm783_vm2, %v1520_v0  ;;  %v2956_v61 = vsel %vm200_vm1, %v2948_v18, 0.0  ;;  %v2957_v9 = vsel %vm200_vm1, %v2949_v21, 0.0  ;;  %v2959_v14 = vsel %vm200_vm1, %v2950_v3, 0.0  ;;  %v2961_v26 = vsel %vm200_vm1, %v2951_v13, 0.0 }
 0x896   :  { %2478 = vmax.xlane.f32.xlu1 %v2477_v35  ;;  %v2958_v46 = vadd.f32 %v2957_v9, %v2956_v61  ;;  %v2483_v45 = vsel %vm783_vm2, %v8460_v2, -inf  ;;  %v2954_v11 = vmul.f32 %v8467_v28, %v8467_v28  ;;  %v2963_v30 = vsel %vm200_vm1, %v2952_v12, 0.0  ;;  %v184_v9 = vld [vmem:[#allocation13 + $0x10] sm:$0xff] }
 0x897   :  { %v2955_v23 = vmul.f32 %v8476_v43, %v8476_v43  ;;  %v2965_v40 = vsel %vm200_vm1, %v2953_v39, 0.0  ;;  %v187_v39 = vld [vmem:[#allocation13 + $0x28] sm:$0xff] }
 0x898   :  { %6226 = vmatmul.mubr.msk.f32.gmra.mrb[28].mxu1 %vm783_vm2, %v1521_v52  ;;  %v2960_v54 = vadd.f32 %v2959_v14, %v2958_v46  ;;  %v2967_v6 = vsel %vm200_vm1, %v2954_v11, 0.0  ;;  %v185_v14 = vld [vmem:[#allocation13 + $0x18] sm:$0xff] }
 0x899   :  { %v2969_v0 = vsel %vm200_vm1, %v2955_v23, 0.0  ;;  %v8499_v46 = vpack.c.bf16 %v185_v14, %v184_v9 }
 0x89a   :  { %2484 = vmax.xlane.f32.xlu1 %v2483_v45  ;;  %v2962_v19 = vadd.f32 %v2961_v26, %v2960_v54 }
 0x89b   :  { %6733 = vmatprep.subr.bf16.mxu1 %v8499_v46 }
 0x89c   :  { %v2964_v22 = vadd.f32 %v2963_v30, %v2962_v19  ;;  %6735 = vmatpush3.bf16.msra.mxu1 %v8499_v46 }
 0x89e   :  { %v2966_v5 = vadd.f32 %v2965_v40, %v2964_v22 }
 0x8a0   :  { %v2968_v18 = vadd.f32 %v2967_v6, %v2966_v5 }
 0x8a2   :  { %v2970_v21 = vadd.f32 %v2969_v0, %v2968_v18 }
 0x8a4   :  { %v2971_v3 = vrot.slane %v2970_v21, 4 }
 0x8a6   :  { %v2972_v13 = vadd.f32 %v2971_v3, %v2970_v21 }
 0x8a8   :  { %v2973_v35 = vrot.slane %v2972_v13, 2 }
 0x8aa   :  { %v2974_v52 = vadd.f32 %v2973_v35, %v2972_v13 }
 0x8ac   :  { %v2975_v12 = vrot.slane %v2974_v52, 1 }
 0x8ae   :  { %v2976_v61 = vadd.f32 %v2975_v12, %v2974_v52 }
 0x8b0   :  { %6376 = vmatmul.mubr.msk.f32.vlgmr.msra.gmra.mrb[52].mxu0 %vm200_vm1, %v2976_v61 }
 0x8b1   :  { %6807 = vmatpush3.bf16.msra.mxu0 %v7803_v59  ;;  %v186_v59 = vld [vmem:[#allocation13 + $0x20] sm:$0xff] }
 0x8b2   :  { %6809 = vmatprep.subr.bf16.mxu0 %v7857_v47  ;;  %v8503_v26 = vpack.c.bf16 %v187_v39, %v186_v59 }
 0x8b4   :  { %6747 = vmatprep.subr.bf16.mxu1 %v8503_v26 }
 0x8b5   :  { %6811 = vmatpush3.bf16.msra.mxu0 %v7857_v47 }
 0x8b6   :  { %6813 = vmatprep.subr.bf16.mxu0 %v7862_v51 }
 0x8b9   :  { %6815 = vmatpush3.bf16.msra.mxu0 %v7862_v51 }
 0x8ba   :  { %6817 = vmatprep.subr.bf16.mxu0 %v7866_v55 }
 0x8bd   :  { %6819 = vmatpush3.bf16.msra.mxu0 %v7866_v55 }
 0x90f   :  { %v2467_v47 = vpop.xlane.xlu1 %2466 }
 0x910   :  { %v2487_v51 = vsub.f32 %v8396_v8, %v2467_v47 }
 0x912   :  { %v2496_v54 = vmul.f32 1.442695, %v2487_v51 }
 0x913   :  { %v2464_v45 = vpop.xlane.xlu1 %2463 }
 0x914   :  { %7134 = vpow2.f32 %v2496_v54  ;;  %v2486_v55 = vsub.f32 %v8398_v44, %v2464_v45  ;;  %v2840_v54 = vld [vmem:[#allocation5 + $0x10] sm:$0xff] }
 0x916   :  { %v2494_v11 = vmul.f32 1.442695, %v2486_v55 }
 0x917   :  { %v2473_v30 = vpop.xlane.xlu1 %2472 }
 0x918   :  { %7136 = vpow2.f32 %v2494_v11  ;;  %v2489_v19 = vsub.f32 %v8402_v17, %v2473_v30  ;;  %v3072_v30 = vsel %vm200_vm1, %v2840_v54, 0.0 }
 0x91a   :  { %v2500_v23 = vmul.f32 1.442695, %v2489_v19  ;;  %v2841_v19 = vld [vmem:[#allocation5 + $0x18] sm:$0xff] }
 0x91b   :  { %v2470_v40 = vpop.xlane.xlu1 %2469 }
 0x91c   :  { %7138 = vpow2.f32 %v2500_v23  ;;  %v2488_v22 = vsub.f32 %v8407_v16, %v2470_v40  ;;  %v2482_v21 = vpop.xlane.xlu0 %2481  ;;  %v3075_v40 = vsel %vm200_vm1, %v2841_v19, 0.0 }
 0x91d   :  { %v2492_v35 = vsub.f32 %v8415_v42, %v2482_v21 }
 0x91e   :  { %v8510_v6 = vpop.eup %7134  ;;  %v2498_v5 = vmul.f32 1.442695, %v2488_v22 }
 0x91f   :  { %v2476_v0 = vpop.xlane.xlu1 %2475  ;;  %v2513_v8 = vsel %vm783_vm2, %v8510_v6, 0.0  ;;  %v2506_v59 = vmul.f32 1.442695, %v2492_v35 }
 0x920   :  { %7140 = vpow2.f32 %v2498_v5  ;;  %2514 = vadd.xlane.f32.xlu1 %v2513_v8  ;;  %v2490_v18 = vsub.f32 %v8413_v38, %v2476_v0 }
 0x922   :  { %v8514_v44 = vpop.eup %7136  ;;  %v2502_v52 = vmul.f32 1.442695, %v2490_v18 }
 0x923   :  { %v2479_v17 = vpop.xlane.xlu1 %2478  ;;  %v2510_v3 = vsel %vm783_vm2, %v8514_v44, 0.0 }
 0x924   :  { %v2491_v16 = vsub.f32 %v8426_v31, %v2479_v17  ;;  %2511 = vadd.xlane.f32.xlu1 %v2510_v3 }
 0x926   :  { %v8520_v13 = vpop.eup %7138  ;;  %v2504_v12 = vmul.f32 1.442695, %v2491_v16 }
 0x927   :  { %v2485_v61 = vpop.xlane.xlu1 %2484  ;;  %v2519_v9 = vsel %vm783_vm2, %v8520_v13, 0.0 }
 0x928   :  { %7142 = vpow2.f32 %v2504_v12  ;;  %v2493_v38 = vsub.f32 %v8460_v2, %v2485_v61  ;;  %2520 = vadd.xlane.f32.xlu1 %v2519_v9 }
 0x929   :  { %7144 = vpow2.f32 %v2502_v52 }
 0x92a   :  { %v8526_v14 = vpop.eup %7140  ;;  %v2508_v31 = vmul.f32 1.442695, %v2493_v38 }
 0x92b   :  { %v2516_v39 = vsel %vm783_vm2, %v8526_v14, 0.0 }
 0x92c   :  { %7146 = vpow2.f32 %v2508_v31  ;;  %2517 = vadd.xlane.f32.xlu1 %v2516_v39 }
 0x92d   :  { %7148 = vpow2.f32 %v2506_v59 }
 0x932   :  { %v8530_v42 = vpop.eup %7142 }
 0x933   :  { %v2525_v47 = vsel %vm783_vm2, %v8530_v42, 0.0  ;;  %v8534_v51 = vpop.eup %7144 }
 0x934   :  { %2526 = vadd.xlane.f32.xlu1 %v2525_v47  ;;  %v2522_v45 = vsel %vm783_vm2, %v8534_v51, 0.0 }
 0x936   :  { %v8536_v2 = vpop.eup %7146 }
 0x937   :  { %v2531_v55 = vsel %vm783_vm2, %v8536_v2, 0.0  ;;  %v8542_v11 = vpop.eup %7148 }
 0x938   :  { %2523 = vadd.xlane.f32.xlu1 %v2522_v45  ;;  %2532 = vadd.xlane.f32.xlu0 %v2531_v55  ;;  %v2528_v23 = vsel %vm783_vm2, %v8542_v11, 0.0 }
 0x93c   :  { %3073 = vadd.xlane.f32.xlu0 %v3072_v30  ;;  %2529 = vadd.xlane.f32.xlu1 %v2528_v23 }
 0x940   :  { %3076 = vadd.xlane.f32.xlu0 %v3075_v40 }
 0x94d   :  { %6998 = vrot.lane.b32.xlu1 %v7999_v60, %s7523_s15 }
 0x95f   :  { %v6218_v22 = vpop.f32.mrb[22].mxu1 }
 0x960   :  { %v1620_v5 = vpop.f32.mrb[23].mxu1 }
 0x961   :  { %6232 = vmatprep.mubr.msk.f32.mxu1 %vm783_vm2, %v1620_v5 }
 0x962   :  { %6233 = vmatmul.mubr.msk.f32.vlgmr.msra.gmra.mrb[14].mxu1 %vm783_vm2, %v6218_v22 }
 0x963   :  { %v6221_v0 = vpop.f32.mrb[24].mxu1  ;;  %6749 = vmatpush3.bf16.msra.mxu1 %v8503_v26 }
 0x964   :  { %v1630_v8 = vpop.f32.mrb[25].mxu1 }
 0x965   :  { %6235 = vmatprep.mubr.msk.f32.mxu1 %vm783_vm2, %v1630_v8 }
 0x966   :  { %6236 = vmatmul.mubr.msk.f32.gmra.mrb[16].mxu1 %vm783_vm2, %v6221_v0 }
 0x967   :  { %v6224_v18 = vpop.f32.mrb[26].mxu1 }
 0x968   :  { %v1640_v21 = vpop.f32.mrb[27].mxu1 }
 0x969   :  { %6238 = vmatprep.mubr.msk.f32.mxu1 %vm783_vm2, %v1640_v21 }
 0x96a   :  { %6239 = vmatmul.mubr.msk.f32.gmra.mrb[18].mxu1 %vm783_vm2, %v6224_v18 }
 0x96b   :  { %v6227_v60 = vpop.f32.mrb[28].mxu1 }
 0x96c   :  { %v1650_v17 = vpop.f32.mrb[29].mxu1 }
 0x96d   :  { %6241 = vmatprep.mubr.msk.f32.mxu1 %vm783_vm2, %v1650_v17 }
 0x96e   :  { %6242 = vmatmul.mubr.msk.f32.gmra.mrb[20].mxu1 %vm783_vm2, %v6227_v60 }
 0x96f   :  { %6280 = vmatprep.mubr.msk.f32.mxu1 %vm783_vm2, %v8381_v48 }
 0x972   :  { %6281 = vmatmul.mubr.msk.f32.vlgmr.msra.gmra.mrb[14].mxu1 %vm783_vm2, %v8379_v37 }
 0x973   :  { %6283 = vmatprep.mubr.msk.f32.mxu1 %vm783_vm2, %v8385_v50 }
 0x976   :  { %6284 = vmatmul.mubr.msk.f32.gmra.mrb[16].mxu1 %vm783_vm2, %v8383_v1 }
 0x977   :  { %6286 = vmatprep.mubr.msk.f32.mxu1 %vm783_vm2, %v8389_v24 }
 0x97a   :  { %6287 = vmatmul.mubr.msk.f32.gmra.mrb[18].mxu1 %vm783_vm2, %v8387_v10 }
 0x97b   :  { %6289 = vmatprep.mubr.msk.f32.mxu1 %vm783_vm2, %v8393_v63 }
 0x97e   :  { %6290 = vmatmul.mubr.msk.f32.gmra.mrb[20].mxu1 %vm783_vm2, %v8391_v33 }
 0x983   :  { %v8575_v48 = vpop.f32.mrb[52].mxu0 }
 0x984   :  { %v6377_v37 = vpop.f32.mrb[53].mxu0 }
 0x9ad   :  { %v2515_v3 = vpop.xlane.xlu1 %2514 }
 0x9b1   :  { %v2512_v50 = vpop.xlane.xlu1 %2511 }
 0x9b2   :  { %7150 = vrcp.f32 %v2512_v50 }
 0x9b3   :  { %7152 = vrcp.f32 %v2515_v3 }
 0x9b5   :  { %v2521_v16 = vpop.xlane.xlu1 %2520 }
 0x9b9   :  { %v2518_v35 = vpop.xlane.xlu1 %2517 }
 0x9ba   :  { %7154 = vrcp.f32 %v2518_v35 }
 0x9bb   :  { %7156 = vrcp.f32 %v2521_v16 }
 0x9bc   :  { %v7151_v1 = vpop.eup %7150 }
 0x9bd   :  { %v2542_v24 = vmul.f32 %v7151_v1, %v8514_v44  ;;  %v7153_v23 = vpop.eup %7152 }
 0x9bf   :  { %6312 = vmatprep.mubr.msk.f32.mxu1 %vm783_vm2, %v2542_v24 }
 0x9c1   :  { %v2527_v10 = vpop.xlane.xlu1 %2526 }
 0x9c4   :  { %v7155_v40 = vpop.eup %7154 }
 0x9c5   :  { %v2524_v52 = vpop.xlane.xlu1 %2523  ;;  %v2533_v12 = vpop.xlane.xlu0 %2532  ;;  %v2544_v8 = vmul.f32 %v7155_v40, %v8526_v14 }
 0x9c6   :  { %7158 = vrcp.f32 %v2524_v52  ;;  %v7157_v0 = vpop.eup %7156 }
 0x9c7   :  { %7160 = vrcp.f32 %v2527_v10  ;;  %v7300_v10 = vld [vmem:[%s9194_s5] ss:$0 sm:$0xff] }
 0x9c9   :  { %v2530_v63 = vpop.xlane.xlu1 %2529  ;;  %v3074_v33 = vpop.xlane.xlu0 %3073 }
 0x9ca   :  { %v3078_v61 = vmul.f32 0.015625, %v3074_v33  ;;  %7162 = vrcp.f32 %v2530_v63 }
 0x9cb   :  { %7164 = vrcp.f32 %v2533_v12 }
 0x9cc   :  { %v3080_v9 = vsub.f32 %v2840_v54, %v3078_v61  ;;  %v2543_v54 = vmul.f32 %v7153_v23, %v8510_v6  ;;  %v7301_v61 = vld [vmem:[%s9195_s6] ss:$0 sm:$0xff] }
 0x9cd   :  { %v6999_v38 = vpop.permute.xlu1 %6998  ;;  %v3077_v59 = vpop.xlane.xlu0 %3076 }
 0x9ce   :  { %v7001_v31 = vunpack.i.h.bf16 %v6999_v38  ;;  %v7000_v39 = vunpack.i.l.bf16 %v6999_v38  ;;  %v3079_v47 = vmul.f32 0.015625, %v3077_v59  ;;  %v3082_v45 = vmul.f32 %v3080_v9, %v3080_v9 }
 0x9d0   :  { %v3081_v44 = vsub.f32 %v2841_v19, %v3079_v47  ;;  %v3084_v55 = vsel %vm200_vm1, %v3082_v45, 0.0  ;;  %v6756_v30 = vpack.c.bf16 %v7001_v31, %v7000_v39  ;;  %v7159_v18 = vpop.eup %7158  ;;  %v2545_v19 = vmul.f32 %v7157_v0, %v8520_v13  ;;  %v188_v13 = vld [vmem:[#allocation13 + $0x30] sm:$0xff] }
 0x9d1   :  { %3085 = vadd.xlane.f32.xlu0 %v3084_v55  ;;  %v7161_v21 = vpop.eup %7160  ;;  %v2546_v60 = vmul.f32 %v7159_v18, %v8534_v51  ;;  %v189_v51 = vld [vmem:[#allocation13 + $0x38] sm:$0xff]  ;;  %v3047_v39 = vadd.f32 1e-05, %v8575_v48  ;;  %v7302_v55 = vld [vmem:[%s9192_s3] sm:$0x1] }
 0x9d2   :  { %6757 = vmatprep.subr.bf16.mxu1 %v6756_v30  ;;  %v3083_v22 = vmul.f32 %v3081_v44, %v3081_v44  ;;  %v2547_v6 = vmul.f32 %v7161_v21, %v8530_v42  ;;  %v8595_v50 = vpack.c.bf16 %v189_v51, %v188_v13  ;;  %v7306_v13 = vld [vmem:[#allocation2] sm:$0xff] }
 0x9d3   :  { %6759 = vmatpush3.bf16.msra.mxu1 %v6756_v30 }
 0x9d4   :  { %v3087_v5 = vsel %vm200_vm1, %v3083_v22, 0.0  ;;  %v7163_v17 = vpop.eup %7162  ;;  %6761 = vmatprep.subr.bf16.mxu1 %v8595_v50 }
 0x9d5   :  { %3088 = vadd.xlane.f32.xlu0 %v3087_v5  ;;  %v7165_v37 = vpop.eup %7164  ;;  %v2548_v14 = vmul.f32 %v7163_v17, %v8542_v11 }
 0x9d6   :  { %6313 = vmatmul.mubr.msk.f32.vlgmr.msra.gmra.mrb[30].mxu1 %vm783_vm2, %v2543_v54  ;;  %v2549_v3 = vmul.f32 %v7165_v37, %v8536_v2  ;;  %v7305_v37 = vld [vmem:[#allocation2 + $0x8] sm:$0xff] }
 0x9d7   :  { %6315 = vmatprep.mubr.msk.f32.mxu1 %vm783_vm2, %v2544_v8  ;;  %6763 = vmatpush3.bf16.msra.mxu1 %v8595_v50 }
 0x9d8   :  { %6789 = vmatprep.subr.bf16.mxu1 %v7887_v25 }
 0x9da   :  { %6316 = vmatmul.mubr.msk.f32.gmra.mrb[32].mxu1 %vm783_vm2, %v2545_v19 }
 0x9db   :  { %6318 = vmatprep.mubr.msk.f32.mxu1 %vm783_vm2, %v2546_v60 }
 0x9de   :  { %6319 = vmatmul.mubr.msk.f32.gmra.mrb[34].mxu1 %vm783_vm2, %v2547_v6 }
 0x9df   :  { %6321 = vmatprep.mubr.msk.f32.mxu1 %vm783_vm2, %v2548_v14 }
 0x9e2   :  { %6322 = vmatmul.mubr.msk.f32.gmra.mrb[36].mxu1 %vm783_vm2, %v2549_v3 }
 0xa5e   :  { %v3086_v42 = vpop.xlane.xlu0 %3085 }
 0xa5f   :  { %v3090_v11 = vmul.f32 0.015625, %v3086_v42 }
 0xa61   :  { %v3092_v16 = vadd.f32 1e-05, %v3090_v11  ;;  %v7307_v11 = vld [vmem:[#allocation2 + $0x18] sm:$0xff] }
 0xa62   :  { %v3089_v1 = vpop.xlane.xlu0 %3088 }
 0xa63   :  { %7166 = vrsqrt.f32 %v3092_v16  ;;  %v3091_v35 = vmul.f32 0.015625, %v3089_v1 }
 0xa65   :  { %v3093_v24 = vadd.f32 1e-05, %v3091_v35  ;;  %v7308_v35 = vld [vmem:[#allocation2 + $0x10] sm:$0xff] }
 0xa67   :  { %7168 = vrsqrt.f32 %v3093_v24 }
 0xa68   :  { %7170 = vrsqrt.f32 %v3047_v39  ;;  %v7312_v39 = vld [vmem:[#allocation2 + $0x30] sm:$0xff] }
 0xa6d   :  { %v7167_v2 = vpop.eup %7166 }
 0xa6e   :  { %v3096_v52 = vmul.f32 %v7300_v10, %v7167_v2 }
 0xa70   :  { %v3098_v12 = vmul.f32 %v3096_v52, %v3080_v9 }
 0xa71   :  { %v7169_v63 = vpop.eup %7168 }
 0xa72   :  { %v3097_v33 = vmul.f32 %v7300_v10, %v7169_v63  ;;  %v8606_v38 = vadd.f32 %v7301_v61, %v3098_v12  ;;  %v7171_v9 = vpop.eup %7170  ;;  %v7309_v10 = vld [vmem:[#allocation2 + $0x28] sm:$0xff]  ;;  %v7310_v63 = vld [vmem:[#allocation2 + $0x20] sm:$0xff] }
 0xa73   :  { %v3051_v30 = vmul.f32 %v7302_v55, %v7171_v9  ;;  %v7313_v55 = vld [vmem:[%s9197_s8] ss:$0 sm:$0xff] }
 0xa74   :  { %6422 = vmatprep.mubr.msk.f32.mxu0 %vm200_vm1, %v8606_v38  ;;  %v3099_v59 = vmul.f32 %v3097_v33, %v3081_v44 }
 0xa75   :  { %v3055_v48 = vrot.slane %v3051_v30, %v7806_v62 }
 0xa76   :  { %v8610_v31 = vadd.f32 %v7301_v61, %v3099_v59 }
 0xa77   :  { %v3056_v54 = vmul.f32 %v3055_v48, %v8433_v57  ;;  %v3057_v5 = vmul.f32 %v3055_v48, %v8436_v41  ;;  %v3058_v8 = vmul.f32 %v3055_v48, %v8439_v20  ;;  %v3059_v57 = vmul.f32 %v3055_v48, %v8442_v53 }
 0xa78   :  { %6423 = vmatmul.mubr.msk.f32.vlgmr.msra.gmra.mrb[54].mxu0 %vm200_vm1, %v8610_v31  ;;  %v3060_v18 = vmul.f32 %v3055_v48, %v8446_v4  ;;  %v3062_v21 = vmul.f32 %v3055_v48, %v8467_v28  ;;  %v3063_v4 = vmul.f32 %v3055_v48, %v8476_v43  ;;  %v7304_v28 = vld [vmem:[%s9199_s10] ss:$0 sm:$0xff] }
 0xaa9   :  { %v6314_v47 = vpop.f32.mrb[30].mxu1 }
 0xaaa   :  { %v2646_v45 = vpop.f32.mrb[31].mxu1 }
 0xaab   :  { %6328 = vmatprep.mubr.msk.f32.mxu1 %vm783_vm2, %v2646_v45 }
 0xaac   :  { %6329 = vmatmul.mubr.msk.f32.vlgmr.msra.gmra.mrb[14].mxu1 %vm783_vm2, %v6314_v47 }
 0xaad   :  { %v6317_v44 = vpop.f32.mrb[32].mxu1  ;;  %6791 = vmatpush3.bf16.msra.mxu1 %v7887_v25 }
 0xaae   :  { %v2656_v23 = vpop.f32.mrb[33].mxu1  ;;  %6793 = vmatprep.subr.bf16.mxu1 %v7891_v27 }
 0xaaf   :  { %6331 = vmatprep.mubr.msk.f32.mxu1 %vm783_vm2, %v2656_v23 }
 0xab0   :  { %6332 = vmatmul.mubr.msk.f32.gmra.mrb[16].mxu1 %vm783_vm2, %v6317_v44 }
 0xab1   :  { %v6320_v40 = vpop.f32.mrb[34].mxu1  ;;  %6795 = vmatpush3.bf16.msra.mxu1 %v7891_v27  ;;  %v7303_v27 = vld [vmem:[%s9193_s4] ss:$0 sm:$0xff] }
 0xab2   :  { %v2666_v22 = vpop.f32.mrb[35].mxu1  ;;  %6797 = vmatprep.subr.bf16.mxu1 %v7895_v29  ;;  %v3064_v0 = vadd.f32 %v7303_v27, %v3056_v54  ;;  %v3066_v41 = vadd.f32 %v7303_v27, %v3058_v8  ;;  %v3067_v20 = vadd.f32 %v7303_v27, %v3059_v57  ;;  %v3068_v19 = vadd.f32 %v7303_v27, %v3060_v18  ;;  %v7314_v57 = vld [vmem:[%s9201_s12] ss:$0 sm:$0xff]  ;;  %s7524_s12 = smov [#allocation14]  }
 0xab3   :  { %6334 = vmatprep.mubr.msk.f32.mxu1 %vm783_vm2, %v2666_v22  ;;  %s5439_s21 = sshll.u32 %s7524_s12, 4  ;;  %s5440_s21 = int_to_ptr.vmem [resolvable:$true] %s5439_s21 }
 0xab4   :  { %6335 = vmatmul.mubr.msk.f32.gmra.mrb[18].mxu1 %vm783_vm2, %v6320_v40  ;;  %s7477_s16 = scalar_lea.vmem %s5440_s21, 2048  ;;  %p7482_p1 = scmp.lt.s32.totalorder %s5440_s21, %s5440_s21 }
 0xab5   :  { %v6323_v25 = vpop.f32.mrb[36].mxu1  ;;  %6799 = vmatpush3.bf16.msra.mxu1 %v7895_v29  ;;  %v3065_v29 = vadd.f32 %v7303_v27, %v3057_v5  ;;  %p7478_p0 = scmp.ne.s32.totalorder %s5440_s21, %s7477_s16  ;;  %p7483_p2 = scmp.lt.s32.totalorder %s7477_s16, %s7477_s16 }
 0xab6   :  { %v2676_v62 = vpop.f32.mrb[37].mxu1  ;;  %6801 = vmatprep.subr.bf16.mxu1 %v7898_v32 }
 0xab7   :  { %6337 = vmatprep.mubr.msk.f32.mxu1 %vm783_vm2, %v2676_v62  ;;  %p7484_p3 = por %p7483_p2, %p7482_p1 }
 0xab8   :  { %6338 = vmatmul.mubr.msk.f32.gmra.mrb[20].mxu1 %vm783_vm2, %v6323_v25 }
 0xab9   :  { %6803 = vmatpush3.bf16.msra.mxu1 %v7898_v32  ;;  %6394 = vmatprep.mubr.msk.f32.mxu1 %vm200_vm1, %v3064_v0  ;;  %v3061_v32 = vmul.f32 %v3055_v48, %v8449_v34  ;;  %v3071_v34 = vadd.f32 %v7303_v27, %v3063_v4  ;;  %p7485_p4 = pnand %p7484_p3, %p7478_p0 }
 0xaba   :  { %6821 = vmatprep.subr.bf16.mxu1 %v7903_v36 }
 0xabb   :  { %v3069_v53 = vadd.f32 %v7303_v27, %v3061_v32 }
 0xabc   :  { %6395 = vmatmul.mubr.msk.f32.vlgmr.msra.gmra.mrb[38].mxu1 %vm200_vm1, %v3065_v29 }
 0xabd   :  { %6397 = vmatprep.mubr.msk.f32.mxu1 %vm200_vm1, %v3066_v41  ;;  %6823 = vmatpush3.bf16.msra.mxu1 %v7903_v36  ;;  %v3070_v36 = vadd.f32 %v7303_v27, %v3062_v21 }
 0xabe   :  { %6825 = vmatprep.subr.bf16.mxu1 %v7917_v58 }
 0xac0   :  { %6398 = vmatmul.mubr.msk.f32.gmra.mrb[40].mxu1 %vm200_vm1, %v3067_v20 }
 0xac1   :  { %6400 = vmatprep.mubr.msk.f32.mxu1 %vm200_vm1, %v3068_v19  ;;  %6827 = vmatpush3.bf16.msra.mxu1 %v7917_v58 }
 0xac2   :  { %6829 = vmatprep.subr.bf16.mxu1 %v7926_v7 }
 0xac4   :  { %6401 = vmatmul.mubr.msk.f32.gmra.mrb[42].mxu1 %vm200_vm1, %v3069_v53 }
 0xac5   :  { %6403 = vmatprep.mubr.msk.f32.mxu1 %vm200_vm1, %v3070_v36  ;;  %6831 = vmatpush3.bf16.msra.mxu1 %v7926_v7 }
 0xac6   :  { %6833 = vmatprep.subr.bf16.mxu1 %v7934_v15 }
 0xac8   :  { %6404 = vmatmul.mubr.msk.f32.gmra.mrb[44].mxu1 %vm200_vm1, %v3071_v34 }
 0xac9   :  { %6835 = vmatpush3.bf16.msra.mxu1 %v7934_v15  ;;  %6441 = vmatprep.mubr.msk.f32.mxu1 %vm200_vm1, %v8606_v38  ;;  %v7311_v38 = vld [vmem:[#allocation2 + $0x38] sm:$0xff] }
 0xacc   :  { %6442 = vmatmul.mubr.msk.f32.vlgmr.msra.gmra.mrb[46].mxu1 %vm200_vm1, %v8610_v31 }
 0xb4b   :  { %v6424_v58 = vpop.f32.mrb[54].mxu0 }
 0xb4c   :  { %v3309_v43 = vadd.f32 %v7304_v28, %v6424_v58  ;;  %v3303_v7 = vpop.f32.mrb[55].mxu0 }
 0xb4d   :  { %v3304_v60 = vadd.f32 %v7304_v28, %v3303_v7 }
 0xb4f   :  { %v6836_v17 = vpack.c.bf16 %v3309_v43, %v3304_v60  ;;  %v8668_v6 = vpack.i.bf16 %v3309_v43, %v3304_v60 }
 0xb51   :  { %6838 = vmatprep.subr.msk.bf16.mxu0 %vm7951_vm3, %v6836_v17 }
 0xb52   :  { %6841 = vmatpush3.bf16.xpose.msk.msra.mxu0 %vm7951_vm3, %v6836_v17 }
 0xb53   :  { %6847 = vmatprep.subr.bf16.mxu0 %v8077_v56 }
 0xb7f   :  { %v6330_v15 = vpop.f32.mrb[14].mxu1 }
 0xb80   :  { %v6892_v14 = vadd.f32 %v7305_v37, %v6330_v15  ;;  %v2775_v3 = vpop.f32.mrb[15].mxu1 }
 0xb81   :  { %v6893_v51 = vadd.f32 %v7306_v13, %v2775_v3 }
 0xb82   :  { %2823 = vst.msk [vmem:[#allocation14 + $0x8] sm:$0xff] %vm200_vm1, %v6892_v14 }
 0xb83   :  { %2822 = vst.msk [vmem:[#allocation14] sm:$0xff] %vm200_vm1, %v6893_v51  ;;  %v6333_v42 = vpop.f32.mrb[16].mxu1 }
 0xb84   :  { %v6894_v16 = vadd.f32 %v7307_v11, %v6333_v42  ;;  %v2785_v1 = vpop.f32.mrb[17].mxu1 }
 0xb85   :  { %v6895_v24 = vadd.f32 %v7308_v35, %v2785_v1 }
 0xb86   :  { %2825 = vst.msk [vmem:[#allocation14 + $0x18] sm:$0xff] %vm200_vm1, %v6894_v16 }
 0xb87   :  { %2824 = vst.msk [vmem:[#allocation14 + $0x10] sm:$0xff] %vm200_vm1, %v6895_v24  ;;  %v6336_v2 = vpop.f32.mrb[18].mxu1 }
 0xb88   :  { %v6896_v52 = vadd.f32 %v7309_v10, %v6336_v2  ;;  %v2795_v12 = vpop.f32.mrb[19].mxu1 }
 0xb89   :  { %v6897_v33 = vadd.f32 %v7310_v63, %v2795_v12 }
 0xb8a   :  { %2827 = vst.msk [vmem:[#allocation14 + $0x28] sm:$0xff] %vm200_vm1, %v6896_v52 }
 0xb8b   :  { %2826 = vst.msk [vmem:[#allocation14 + $0x20] sm:$0xff] %vm200_vm1, %v6897_v33  ;;  %v6339_v61 = vpop.f32.mrb[20].mxu1 }
 0xb8c   :  { %v6898_v59 = vadd.f32 %v7311_v38, %v6339_v61  ;;  %v2805_v31 = vpop.f32.mrb[21].mxu1 }
 0xb8d   :  { %v6899_v9 = vadd.f32 %v7312_v39, %v2805_v31 }
 0xb8e   :  { %2829 = vst.msk [vmem:[#allocation14 + $0x38] sm:$0xff] %vm200_vm1, %v6898_v59 }
 0xb8f   :  { %2828 = vst.msk [vmem:[#allocation14 + $0x30] sm:$0xff] %vm200_vm1, %v6899_v9  ;;  %v6396_v47 = vpop.f32.mrb[38].mxu1 }
 0xb90   :  { %v3192_v45 = vpop.f32.mrb[39].mxu1  ;;  %v8688_v44 = vadd.f32 %v7313_v55, %v6396_v47 }
 0xb91   :  { %v8686_v30 = vadd.f32 %v7313_v55, %v3192_v45 }
 0xb93   :  { %v6399_v23 = vpop.f32.mrb[40].mxu1  ;;  %6448 = vmatprep.mubr.msk.f32.mxu0 %vm783_vm2, %v8686_v30 }
 0xb94   :  { %v3202_v48 = vpop.f32.mrb[41].mxu1  ;;  %6449 = vmatmul.mubr.msk.f32.vlgmr.msra.gmra.mrb[56].mxu0 %vm783_vm2, %v8688_v44  ;;  %v8697_v22 = vadd.f32 %v7313_v55, %v6399_v23 }
 0xb95   :  { %v8694_v40 = vadd.f32 %v7313_v55, %v3202_v48  ;;  %6849 = vmatpush3.bf16.msra.mxu0 %v8077_v56 }
 0xb97   :  { %v6402_v54 = vpop.f32.mrb[42].mxu1  ;;  %6451 = vmatprep.mubr.msk.f32.mxu0 %vm783_vm2, %v8694_v40 }
 0xb98   :  { %v3212_v25 = vpop.f32.mrb[43].mxu1  ;;  %6452 = vmatmul.mubr.msk.f32.gmra.mrb[58].mxu0 %vm783_vm2, %v8697_v22  ;;  %v8705_v5 = vadd.f32 %v7313_v55, %v6402_v54 }
 0xb99   :  { %v8703_v62 = vadd.f32 %v7313_v55, %v3212_v25 }
 0xb9b   :  { %v6405_v27 = vpop.f32.mrb[44].mxu1  ;;  %6454 = vmatprep.mubr.msk.f32.mxu0 %vm783_vm2, %v8703_v62 }
 0xb9c   :  { %v3222_v0 = vpop.f32.mrb[45].mxu1  ;;  %6455 = vmatmul.mubr.msk.f32.gmra.mrb[60].mxu0 %vm783_vm2, %v8705_v5  ;;  %v8713_v8 = vadd.f32 %v7313_v55, %v6405_v27 }
 0xb9d   :  { %v8711_v56 = vadd.f32 %v7313_v55, %v3222_v0 }
 0xb9f   :  { %v6443_v29 = vpop.f32.mrb[46].mxu1  ;;  %6457 = vmatprep.mubr.msk.f32.mxu0 %vm783_vm2, %v8711_v56 }
 0xba0   :  { %v3384_v41 = vadd.f32 %v7314_v57, %v6443_v29  ;;  %v3378_v18 = vpop.f32.mrb[47].mxu1  ;;  %6458 = vmatmul.mubr.msk.f32.gmra.mrb[62].mxu0 %vm783_vm2, %v8713_v8 }
 0xba1   :  { %v3379_v20 = vadd.f32 %v7314_v57, %v3378_v18 }
 0xba3   :  { %v6842_v32 = vpack.c.bf16 %v3384_v41, %v3379_v20  ;;  %v8722_v19 = vpack.i.bf16 %v3384_v41, %v3379_v20 }
 0xba5   :  { %6843 = vmatprep.subr.bf16.mxu1 %v6842_v32 }
 0xba6   :  { %6845 = vmatpush3.bf16.msra.mxu1 %v6842_v32 }
 0xc67   :  { %v6450_v21 = vpop.f32.mrb[56].mxu0 }
 0xc68   :  { %v3523_v53 = vmul.f32 0.25, %v6450_v21  ;;  %v3483_v4 = vpop.f32.mrb[57].mxu0 }
 0xc69   :  { %v3522_v36 = vmul.f32 0.25, %v3483_v4 }
 0xc6a   :  { %v3533_v34 = vsel %vm783_vm2, %v3523_v53, -inf }
 0xc6b   :  { %3534 = vmax.xlane.f32.xlu1 %v3533_v34  ;;  %v6453_v58 = vpop.f32.mrb[58].mxu0  ;;  %v3530_v28 = vsel %vm783_vm2, %v3522_v36, -inf }
 0xc6c   :  { %v3525_v43 = vmul.f32 0.25, %v6453_v58  ;;  %3531 = vmax.xlane.f32.xlu0 %v3530_v28  ;;  %v3493_v7 = vpop.f32.mrb[59].mxu0 }
 0xc6d   :  { %v3524_v17 = vmul.f32 0.25, %v3493_v7 }
 0xc6e   :  { %v3539_v60 = vsel %vm783_vm2, %v3525_v43, -inf }
 0xc6f   :  { %v6456_v15 = vpop.f32.mrb[60].mxu0  ;;  %v3536_v13 = vsel %vm783_vm2, %v3524_v17, -inf }
 0xc70   :  { %3540 = vmax.xlane.f32.xlu0 %v3539_v60  ;;  %v3503_v37 = vpop.f32.mrb[61].mxu0  ;;  %v3527_v14 = vmul.f32 0.25, %v6456_v15 }
 0xc71   :  { %v3526_v42 = vmul.f32 0.25, %v3503_v37 }
 0xc72   :  { %v3545_v11 = vsel %vm783_vm2, %v3527_v14, -inf }
 0xc73   :  { %v6459_v3 = vpop.f32.mrb[62].mxu0  ;;  %v3542_v1 = vsel %vm783_vm2, %v3526_v42, -inf }
 0xc74   :  { %3537 = vmax.xlane.f32.xlu0 %v3536_v13  ;;  %v3513_v51 = vpop.f32.mrb[63].mxu0  ;;  %v3529_v35 = vmul.f32 0.25, %v6459_v3 }
 0xc75   :  { %v3528_v16 = vmul.f32 0.25, %v3513_v51 }
 0xc76   :  { %v3551_v2 = vsel %vm783_vm2, %v3529_v35, -inf }
 0xc77   :  { %v3548_v24 = vsel %vm783_vm2, %v3528_v16, -inf }
 0xc78   :  { %3546 = vmax.xlane.f32.xlu0 %v3545_v11 }
 0xc7c   :  { %3543 = vmax.xlane.f32.xlu0 %v3542_v1 }
 0xc80   :  { %3549 = vmax.xlane.f32.xlu0 %v3548_v24 }
 0xc84   :  { %3552 = vmax.xlane.f32.xlu0 %v3551_v2 }
 0xcf8   :  { %v3535_v10 = vpop.xlane.xlu1 %3534 }
 0xcf9   :  { %v3555_v52 = vsub.f32 %v3523_v53, %v3535_v10  ;;  %v3532_v12 = vpop.xlane.xlu0 %3531 }
 0xcfa   :  { %v3554_v63 = vsub.f32 %v3522_v36, %v3532_v12 }
 0xcfb   :  { %v3564_v33 = vmul.f32 1.442695, %v3555_v52 }
 0xcfc   :  { %v3562_v61 = vmul.f32 1.442695, %v3554_v63 }
 0xcfd   :  { %7172 = vpow2.f32 %v3564_v33  ;;  %v3541_v38 = vpop.xlane.xlu0 %3540 }
 0xcfe   :  { %v3557_v59 = vsub.f32 %v3525_v43, %v3541_v38  ;;  %7174 = vpow2.f32 %v3562_v61 }
 0xd00   :  { %v3568_v31 = vmul.f32 1.442695, %v3557_v59 }
 0xd01   :  { %v3538_v39 = vpop.xlane.xlu0 %3537 }
 0xd02   :  { %7176 = vpow2.f32 %v3568_v31  ;;  %v3556_v9 = vsub.f32 %v3524_v17, %v3538_v39 }
 0xd04   :  { %v3566_v47 = vmul.f32 1.442695, %v3556_v9 }
 0xd05   :  { %v3547_v45 = vpop.xlane.xlu0 %3546 }
 0xd06   :  { %7178 = vpow2.f32 %v3566_v47  ;;  %v3559_v55 = vsub.f32 %v3527_v14, %v3547_v45 }
 0xd07   :  { %v8732_v23 = vpop.eup %7172 }
 0xd08   :  { %v3572_v48 = vmul.f32 1.442695, %v3559_v55  ;;  %v3581_v54 = vsel %vm783_vm2, %v8732_v23, 0.0  ;;  %v8736_v25 = vpop.eup %7174 }
 0xd09   :  { %v3544_v27 = vpop.xlane.xlu0 %3543  ;;  %3582 = vadd.xlane.f32.xlu0 %v3581_v54  ;;  %v3578_v41 = vsel %vm783_vm2, %v8736_v25, 0.0 }
 0xd0a   :  { %7180 = vpow2.f32 %v3572_v48  ;;  %v3558_v0 = vsub.f32 %v3526_v42, %v3544_v27 }
 0xd0c   :  { %v8738_v29 = vpop.eup %7176  ;;  %v3570_v57 = vmul.f32 1.442695, %v3558_v0 }
 0xd0d   :  { %3579 = vadd.xlane.f32.xlu0 %v3578_v41  ;;  %v3550_v18 = vpop.xlane.xlu0 %3549  ;;  %v3587_v20 = vsel %vm783_vm2, %v8738_v29, 0.0 }
 0xd0e   :  { %7182 = vpow2.f32 %v3570_v57  ;;  %v3560_v32 = vsub.f32 %v3528_v16, %v3550_v18  ;;  %3588 = vadd.xlane.f32.xlu1 %v3587_v20 }
 0xd10   :  { %v7179_v21 = vpop.eup %7178  ;;  %v3574_v53 = vmul.f32 1.442695, %v3560_v32 }
 0xd11   :  { %v3553_v4 = vpop.xlane.xlu0 %3552  ;;  %v3584_v36 = vsel %vm783_vm2, %v7179_v21, 0.0 }
 0xd12   :  { %7184 = vpow2.f32 %v3574_v53  ;;  %v3561_v34 = vsub.f32 %v3529_v35, %v3553_v4  ;;  %3585 = vadd.xlane.f32.xlu0 %v3584_v36 }
 0xd14   :  { %v8745_v58 = vpop.eup %7180  ;;  %v3576_v28 = vmul.f32 1.442695, %v3561_v34 }
 0xd15   :  { %v3593_v43 = vsel %vm783_vm2, %v8745_v58, 0.0 }
 0xd16   :  { %7186 = vpow2.f32 %v3576_v28  ;;  %3594 = vadd.xlane.f32.xlu1 %v3593_v43 }
 0xd18   :  { %v7183_v7 = vpop.eup %7182 }
 0xd19   :  { %v3590_v60 = vsel %vm783_vm2, %v7183_v7, 0.0 }
 0xd1a   :  { %3591 = vadd.xlane.f32.xlu0 %v3590_v60 }
 0xd1c   :  { %v8750_v17 = vpop.eup %7184 }
 0xd1d   :  { %v3596_v15 = vsel %vm783_vm2, %v8750_v17, 0.0 }
 0xd1e   :  { %3597 = vadd.xlane.f32.xlu0 %v3596_v15 }
 0xd20   :  { %v8754_v37 = vpop.eup %7186 }
 0xd21   :  { %v3599_v14 = vsel %vm783_vm2, %v8754_v37, 0.0 }
 0xd22   :  { %3600 = vadd.xlane.f32.xlu1 %v3599_v14 }
 0xd33   :  { %3884 = vrot.lane.b32.xlu1 %v8686_v30, %s7521_s0 }
 0xd34   :  { %7003 = vrot.lane.b32.xlu0 %v8668_v6, %s7521_s0 }
 0xd37   :  { %3886 = vrot.lane.b32.xlu1 %v8688_v44, %s7521_s0 }
 0xd38   :  { %3890 = vrot.lane.b32.xlu0 %v8697_v22, %s7521_s0 }
 0xd3b   :  { %3888 = vrot.lane.b32.xlu1 %v8694_v40, %s7521_s0 }
 0xd3c   :  { %3892 = vrot.lane.b32.xlu0 %v8703_v62, %s7521_s0 }
 0xd3f   :  { %7008 = vrot.lane.b32.xlu1 %v8668_v6, %s7522_s28 }
 0xd40   :  { %3896 = vrot.lane.b32.xlu0 %v8711_v56, %s7521_s0 }
 0xd43   :  { %3894 = vrot.lane.b32.xlu1 %v8705_v5, %s7521_s0 }
 0xd44   :  { %4399 = vrot.lane.b32.xlu0 %v8686_v30, %s7522_s28 }
 0xd47   :  { %3898 = vrot.lane.b32.xlu1 %v8713_v8, %s7521_s0 }
 0xd48   :  { %4403 = vrot.lane.b32.xlu0 %v8694_v40, %s7522_s28 }
 0xd4b   :  { %4401 = vrot.lane.b32.xlu1 %v8688_v44, %s7522_s28 }
 0xd4c   :  { %4407 = vrot.lane.b32.xlu0 %v8703_v62, %s7522_s28 }
 0xd4f   :  { %4405 = vrot.lane.b32.xlu1 %v8697_v22, %s7522_s28 }
 0xd50   :  { %4411 = vrot.lane.b32.xlu0 %v8711_v56, %s7522_s28 }
 0xd53   :  { %4409 = vrot.lane.b32.xlu1 %v8705_v5, %s7522_s28 }
 0xd57   :  { %4413 = vrot.lane.b32.xlu1 %v8713_v8, %s7522_s28 }
 0xd96   :  { %v3583_v3 = vpop.xlane.xlu0 %3582 }
 0xd97   :  { %7188 = vrcp.f32 %v3583_v3 }
 0xd9a   :  { %v3580_v13 = vpop.xlane.xlu0 %3579 }
 0xd9b   :  { %7190 = vrcp.f32 %v3580_v13  ;;  %v3589_v51 = vpop.xlane.xlu1 %3588 }
 0xd9c   :  { %7192 = vrcp.f32 %v3589_v51 }
 0xd9f   :  { %v3586_v42 = vpop.xlane.xlu0 %3585 }
 0xda0   :  { %7194 = vrcp.f32 %v3586_v42 }
 0xda1   :  { %v7189_v11 = vpop.eup %7188 }
 0xda2   :  { %v3611_v24 = vmul.f32 %v7189_v11, %v8732_v23 }
 0xda3   :  { %v3595_v16 = vpop.xlane.xlu1 %3594 }
 0xda4   :  { %7196 = vrcp.f32 %v3595_v16 }
 0xda5   :  { %v7191_v1 = vpop.eup %7190 }
 0xda6   :  { %v3610_v35 = vmul.f32 %v7191_v1, %v8736_v25  ;;  %v7193_v10 = vpop.eup %7192 }
 0xda7   :  { %v3592_v2 = vpop.xlane.xlu0 %3591  ;;  %v3613_v33 = vmul.f32 %v7193_v10, %v8738_v29 }
 0xda8   :  { %7198 = vrcp.f32 %v3592_v2  ;;  %6464 = vmatprep.mubr.msk.f32.mxu1 %vm783_vm2, %v3610_v35 }
 0xda9   :  { %6465 = vmatmul.mubr.msk.f32.vlgmr.msra.gmra.mrb[48].mxu1 %vm783_vm2, %v3611_v24 }
 0xdaa   :  { %v7195_v52 = vpop.eup %7194 }
 0xdab   :  { %v3598_v12 = vpop.xlane.xlu0 %3597  ;;  %v3612_v63 = vmul.f32 %v7195_v52, %v7179_v21 }
 0xdac   :  { %7200 = vrcp.f32 %v3598_v12 }
 0xdad   :  { %6467 = vmatprep.mubr.msk.f32.mxu1 %vm783_vm2, %v3612_v63 }
 0xdae   :  { %6468 = vmatmul.mubr.msk.f32.gmra.mrb[50].mxu1 %vm783_vm2, %v3613_v33  ;;  %v7197_v39 = vpop.eup %7196 }
 0xdaf   :  { %v3601_v61 = vpop.xlane.xlu1 %3600  ;;  %v7004_v38 = vpop.permute.xlu0 %7003  ;;  %v3615_v23 = vmul.f32 %v7197_v39, %v8745_v58 }
 0xdb0   :  { %7202 = vrcp.f32 %v3601_v61  ;;  %v7006_v59 = vunpack.i.h.bf16 %v7004_v38  ;;  %v7005_v31 = vunpack.i.l.bf16 %v7004_v38 }
 0xdb2   :  { %v7199_v9 = vpop.eup %7198  ;;  %v6850_v47 = vpack.c.bf16 %v7006_v59, %v7005_v31 }
 0xdb3   :  { %v3885_v45 = vpop.permute.xlu1 %3884  ;;  %v3614_v55 = vmul.f32 %v7199_v9, %v7183_v7  ;;  %v3891_v48 = vpop.permute.xlu0 %3890 }
 0xdb4   :  { %6852 = vmatprep.subr.msk.bf16.mxu1 %vm7951_vm3, %v6850_v47 }
 0xdb5   :  { %6470 = vmatprep.mubr.msk.f32.mxu1 %vm783_vm2, %v3614_v55  ;;  %6855 = vmatpush3.bf16.xpose.msk.msra.mxu1 %vm7951_vm3, %v6850_v47 }
 0xdb6   :  { %v7201_v54 = vpop.eup %7200  ;;  %6471 = vmatmul.mubr.msk.f32.gmra.mrb[52].mxu1 %vm783_vm2, %v3615_v23 }
 0xdb7   :  { %v3887_v25 = vpop.permute.xlu1 %3886  ;;  %v3616_v27 = vmul.f32 %v7201_v54, %v8750_v17  ;;  %v3893_v29 = vpop.permute.xlu0 %3892 }
 0xdb9   :  { %6473 = vmatprep.mubr.msk.f32.mxu1 %vm783_vm2, %v3616_v27 }
 0xdba   :  { %v7203_v0 = vpop.eup %7202 }
 0xdbb   :  { %v3889_v57 = vpop.permute.xlu1 %3888  ;;  %v3617_v41 = vmul.f32 %v7203_v0, %v8754_v37  ;;  %v3897_v21 = vpop.permute.xlu0 %3896 }
 0xdbd   :  { %6474 = vmatmul.mubr.msk.f32.gmra.mrb[54].mxu1 %vm783_vm2, %v3617_v41 }
 0xdbe   :  { %6496 = vmatprep.mubr.msk.f32.mxu1 %vm783_vm2, %v3885_v45 }
 0xdbf   :  { %v7009_v18 = vpop.permute.xlu1 %7008  ;;  %v4400_v36 = vpop.permute.xlu0 %4399 }
 0xdc0   :  { %v7011_v20 = vunpack.i.h.bf16 %v7009_v18  ;;  %v7010_v32 = vunpack.i.l.bf16 %v7009_v18 }
 0xdc1   :  { %6497 = vmatmul.mubr.msk.f32.vlgmr.msra.gmra.mrb[56].mxu1 %vm783_vm2, %v3887_v25 }
 0xdc2   :  { %v6864_v53 = vpack.c.bf16 %v7011_v20, %v7010_v32  ;;  %6499 = vmatprep.mubr.msk.f32.mxu1 %vm783_vm2, %v3889_v57 }
 0xdc3   :  { %v3895_v4 = vpop.permute.xlu1 %3894  ;;  %v4404_v28 = vpop.permute.xlu0 %4403 }
 0xdc4   :  { %6866 = vmatprep.subr.msk.bf16.mxu1 %vm7951_vm3, %v6864_v53 }
 0xdc5   :  { %6500 = vmatmul.mubr.msk.f32.gmra.mrb[58].mxu1 %vm783_vm2, %v3891_v48 }
 0xdc6   :  { %6869 = vmatpush3.bf16.xpose.msk.msra.mxu1 %vm7951_vm3, %v6864_v53  ;;  %6502 = vmatprep.mubr.msk.f32.mxu1 %vm783_vm2, %v3893_v29 }
 0xdc7   :  { %v3899_v34 = vpop.permute.xlu1 %3898  ;;  %v4408_v7 = vpop.permute.xlu0 %4407 }
 0xdc9   :  { %6503 = vmatmul.mubr.msk.f32.gmra.mrb[60].mxu1 %vm783_vm2, %v3895_v4 }
 0xdca   :  { %6505 = vmatprep.mubr.msk.f32.mxu1 %vm783_vm2, %v3897_v21 }
 0xdcb   :  { %v4402_v58 = vpop.permute.xlu1 %4401  ;;  %v4412_v17 = vpop.permute.xlu0 %4411 }
 0xdcd   :  { %6506 = vmatmul.mubr.msk.f32.gmra.mrb[62].mxu1 %vm783_vm2, %v3899_v34 }
 0xdce   :  { %6544 = vmatprep.mubr.msk.f32.mxu1 %vm783_vm2, %v4400_v36 }
 0xdcf   :  { %v4406_v43 = vpop.permute.xlu1 %4405 }
 0xdd1   :  { %6545 = vmatmul.mubr.msk.f32.vlgmr.msra.gmra.mrb[64].mxu1 %vm783_vm2, %v4402_v58 }
 0xdd2   :  { %6547 = vmatprep.mubr.msk.f32.mxu1 %vm783_vm2, %v4404_v28 }
 0xdd3   :  { %v4410_v60 = vpop.permute.xlu1 %4409 }
 0xdd5   :  { %6548 = vmatmul.mubr.msk.f32.gmra.mrb[66].mxu1 %vm783_vm2, %v4406_v43 }
 0xdd6   :  { %6550 = vmatprep.mubr.msk.f32.mxu1 %vm783_vm2, %v4408_v7 }
 0xdd7   :  { %v4414_v15 = vpop.permute.xlu1 %4413 }
 0xdd9   :  { %6551 = vmatmul.mubr.msk.f32.gmra.mrb[68].mxu1 %vm783_vm2, %v4410_v60 }
 0xdda   :  { %6553 = vmatprep.mubr.msk.f32.mxu1 %vm783_vm2, %v4412_v17 }
 0xddd   :  { %6554 = vmatmul.mubr.msk.f32.gmra.mrb[70].mxu1 %vm783_vm2, %v4414_v15 }
 0xe7c   :  { %v6466_v37 = vpop.f32.mrb[48].mxu1 }
 0xe7d   :  { %v3708_v14 = vpop.f32.mrb[49].mxu1 }
 0xe7e   :  { %6480 = vmatprep.mubr.msk.f32.mxu0 %vm783_vm2, %v3708_v14 }
 0xe7f   :  { %6481 = vmatmul.mubr.msk.f32.vlgmr.msra.gmra.mrb[64].mxu0 %vm783_vm2, %v6466_v37 }
 0xe81   :  { %v6469_v3 = vpop.f32.mrb[50].mxu1 }
 0xe82   :  { %v3718_v13 = vpop.f32.mrb[51].mxu1 }
 0xe83   :  { %6483 = vmatprep.mubr.msk.f32.mxu0 %vm783_vm2, %v3718_v13 }
 0xe84   :  { %6484 = vmatmul.mubr.msk.f32.gmra.mrb[66].mxu0 %vm783_vm2, %v6469_v3 }
 0xe89   :  { %v6472_v51 = vpop.f32.mrb[52].mxu1 }
 0xe8a   :  { %v3728_v42 = vpop.f32.mrb[53].mxu1 }
 0xe8b   :  { %6486 = vmatprep.mubr.msk.f32.mxu0 %vm783_vm2, %v3728_v42 }
 0xe8c   :  { %6487 = vmatmul.mubr.msk.f32.gmra.mrb[68].mxu0 %vm783_vm2, %v6472_v51 }
 0xe90   :  { %v6475_v11 = vpop.f32.mrb[54].mxu1 }
 0xe91   :  { %v3738_v16 = vpop.f32.mrb[55].mxu1 }
 0xe92   :  { %6489 = vmatprep.mubr.msk.f32.mxu0 %vm783_vm2, %v3738_v16 }
 0xe93   :  { %6490 = vmatmul.mubr.msk.f32.gmra.mrb[70].mxu0 %vm783_vm2, %v6475_v11 }
 0xe94   :  { %v8840_v1 = vpop.f32.mrb[56].mxu1 }
 0xe95   :  { %v8842_v35 = vpop.f32.mrb[57].mxu1 }
 0xe98   :  { %v8844_v24 = vpop.f32.mrb[58].mxu1 }
 0xe99   :  { %v8846_v2 = vpop.f32.mrb[59].mxu1 }
 0xe9c   :  { %v8848_v10 = vpop.f32.mrb[60].mxu1 }
 0xe9d   :  { %v8850_v52 = vpop.f32.mrb[61].mxu1 }
 0xea0   :  { %v8852_v12 = vpop.f32.mrb[62].mxu1 }
 0xea1   :  { %v8854_v63 = vpop.f32.mrb[63].mxu1 }
 0xea4   :  { %v6546_v33 = vpop.f32.mrb[64].mxu1 }
 0xea5   :  { %v4545_v61 = vmul.f32 0.25, %v6546_v33  ;;  %v4505_v38 = vpop.f32.mrb[65].mxu1 }
 0xea6   :  { %v4544_v59 = vmul.f32 0.25, %v4505_v38 }
 0xea7   :  { %v4555_v31 = vsel %vm783_vm2, %v4545_v61, -inf }
 0xea8   :  { %4556 = vmax.xlane.f32.xlu1 %v4555_v31  ;;  %v6549_v39 = vpop.f32.mrb[66].mxu1  ;;  %v4552_v9 = vsel %vm783_vm2, %v4544_v59, -inf }
 0xea9   :  { %v4547_v47 = vmul.f32 0.25, %v6549_v39  ;;  %4553 = vmax.xlane.f32.xlu0 %v4552_v9  ;;  %v4515_v45 = vpop.f32.mrb[67].mxu1 }
 0xeaa   :  { %v4546_v23 = vmul.f32 0.25, %v4515_v45 }
 0xeab   :  { %v4561_v55 = vsel %vm783_vm2, %v4547_v47, -inf }
 0xeac   :  { %v6552_v48 = vpop.f32.mrb[68].mxu1  ;;  %v4558_v57 = vsel %vm783_vm2, %v4546_v23, -inf }
 0xead   :  { %v4549_v54 = vmul.f32 0.25, %v6552_v48  ;;  %4562 = vmax.xlane.f32.xlu0 %v4561_v55  ;;  %v4525_v25 = vpop.f32.mrb[69].mxu1 }
 0xeae   :  { %v4548_v0 = vmul.f32 0.25, %v4525_v25 }
 0xeaf   :  { %v4567_v27 = vsel %vm783_vm2, %v4549_v54, -inf }
 0xeb0   :  { %4568 = vmax.xlane.f32.xlu1 %v4567_v27  ;;  %v6555_v29 = vpop.f32.mrb[70].mxu1  ;;  %v4564_v21 = vsel %vm783_vm2, %v4548_v0, -inf }
 0xeb1   :  { %v4551_v41 = vmul.f32 0.25, %v6555_v29  ;;  %4559 = vmax.xlane.f32.xlu0 %v4558_v57  ;;  %v4535_v18 = vpop.f32.mrb[71].mxu1 }
 0xeb2   :  { %v4550_v32 = vmul.f32 0.25, %v4535_v18 }
 0xeb3   :  { %v4573_v20 = vsel %vm783_vm2, %v4551_v41, -inf }
 0xeb4   :  { %4574 = vmax.xlane.f32.xlu1 %v4573_v20  ;;  %v4570_v53 = vsel %vm783_vm2, %v4550_v32, -inf }
 0xeb5   :  { %4565 = vmax.xlane.f32.xlu0 %v4564_v21 }
 0xeb9   :  { %4571 = vmax.xlane.f32.xlu0 %v4570_v53 }
 0xec5   :  { %7018 = vrot.lane.b32.xlu1 %v8668_v6, %s7523_s15 }
 0xec9   :  { %4912 = vrot.lane.b32.xlu1 %v8686_v30, %s7523_s15 }
 0xecd   :  { %4914 = vrot.lane.b32.xlu1 %v8688_v44, %s7523_s15 }
 0xecf   :  { %7013 = vrot.lane.b32.xlu0 %v8722_v19, %s7522_s28 }
 0xed3   :  { %4916 = vrot.lane.b32.xlu0 %v8694_v40, %s7523_s15 }
 0xf35   :  { %v4557_v4 = vpop.xlane.xlu1 %4556 }
 0xf36   :  { %v4577_v36 = vsub.f32 %v4545_v61, %v4557_v4  ;;  %v4554_v34 = vpop.xlane.xlu0 %4553 }
 0xf37   :  { %v4576_v58 = vsub.f32 %v4544_v59, %v4554_v34  ;;  %v8922_v34 = vmul.f32 0.25, %v8840_v1  ;;  %v8941_v1 = vmul.f32 0.25, %v8852_v12  ;;  %v8955_v12 = vmul.f32 0.25, %v8854_v63 }
 0xf38   :  { %v4586_v28 = vmul.f32 1.442695, %v4577_v36 }
 0xf39   :  { %v4584_v43 = vmul.f32 1.442695, %v4576_v58  ;;  %v8925_v58 = vmul.f32 0.25, %v8842_v35 }
 0xf3a   :  { %7204 = vpow2.f32 %v4586_v28  ;;  %v4563_v6 = vpop.xlane.xlu0 %4562  ;;  %v4058_v28 = vsel %vm783_vm2, %v8941_v1, -inf }
 0xf3b   :  { %7206 = vpow2.f32 %v4584_v43  ;;  %v4579_v7 = vsub.f32 %v4547_v47, %v4563_v6  ;;  %v4055_v6 = vsel %vm783_vm2, %v8955_v12, -inf }
 0xf3d   :  { %v4590_v30 = vmul.f32 1.442695, %v4579_v7  ;;  %v4569_v60 = vpop.xlane.xlu1 %4568 }
 0xf3e   :  { %v4581_v17 = vsub.f32 %v4549_v54, %v4569_v60  ;;  %v4560_v44 = vpop.xlane.xlu0 %4559 }
 0xf3f   :  { %7208 = vpow2.f32 %v4590_v30  ;;  %v4578_v15 = vsub.f32 %v4546_v23, %v4560_v44 }
 0xf40   :  { %v4594_v37 = vmul.f32 1.442695, %v4581_v17 }
 0xf41   :  { %v4588_v14 = vmul.f32 1.442695, %v4578_v15  ;;  %v4575_v3 = vpop.xlane.xlu1 %4574 }
 0xf42   :  { %7210 = vpow2.f32 %v4594_v37  ;;  %v4583_v40 = vsub.f32 %v4551_v41, %v4575_v3  ;;  %v4566_v13 = vpop.xlane.xlu0 %4565 }
 0xf43   :  { %7212 = vpow2.f32 %v4588_v14  ;;  %v4580_v51 = vsub.f32 %v4548_v0, %v4566_v13 }
 0xf44   :  { %v8874_v42 = vpop.eup %7204  ;;  %v4598_v11 = vmul.f32 1.442695, %v4583_v40 }
 0xf45   :  { %v8876_v16 = vpop.eup %7206  ;;  %v4592_v33 = vmul.f32 1.442695, %v4580_v51  ;;  %v4603_v61 = vsel %vm783_vm2, %v8874_v42, 0.0  ;;  %v7019_v9 = vpop.permute.xlu1 %7018 }
 0xf46   :  { %7214 = vpow2.f32 %v4598_v11  ;;  %4604 = vadd.xlane.f32.xlu1 %v4603_v61  ;;  %v4572_v38 = vpop.xlane.xlu0 %4571  ;;  %v4600_v59 = vsel %vm783_vm2, %v8876_v16, 0.0  ;;  %v7021_v25 = vunpack.i.h.bf16 %v7019_v9  ;;  %v7020_v27 = vunpack.i.l.bf16 %v7019_v9 }
 0xf47   :  { %7216 = vpow2.f32 %v4592_v33  ;;  %v4582_v31 = vsub.f32 %v4550_v32, %v4572_v38  ;;  %4601 = vadd.xlane.f32.xlu0 %v4600_v59 }
 0xf48   :  { %v8896_v20 = vpack.c.bf16 %v7021_v25, %v7020_v27 }
 0xf49   :  { %v8882_v39 = vpop.eup %7208  ;;  %v4596_v47 = vmul.f32 1.442695, %v4582_v31 }
 0xf4a   :  { %v7014_v45 = vpop.permute.xlu0 %7013  ;;  %v4609_v55 = vsel %vm783_vm2, %v8882_v39, 0.0 }
 0xf4b   :  { %7218 = vpow2.f32 %v4596_v47  ;;  %v7016_v23 = vunpack.i.h.bf16 %v7014_v45  ;;  %v7015_v48 = vunpack.i.l.bf16 %v7014_v45  ;;  %4610 = vadd.xlane.f32.xlu1 %v4609_v55 }
 0xf4c   :  { %v8886_v54 = vpop.eup %7210 }
 0xf4d   :  { %v8888_v0 = vpop.eup %7212  ;;  %v6870_v29 = vpack.c.bf16 %v7016_v23, %v7015_v48  ;;  %v4615_v57 = vsel %vm783_vm2, %v8886_v54, 0.0 }
 0xf4e   :  { %v4606_v41 = vsel %vm783_vm2, %v8888_v0, 0.0  ;;  %v4917_v30 = vpop.permute.xlu0 %4916 }
 0xf4f   :  { %4616 = vadd.xlane.f32.xlu1 %v4615_v57  ;;  %4607 = vadd.xlane.f32.xlu0 %v4606_v41 }
 0xf50   :  { %v8894_v18 = vpop.eup %7214  ;;  %6871 = vmatprep.subr.bf16.mxu1 %v6870_v29 }
 0xf51   :  { %v8898_v32 = vpop.eup %7216  ;;  %6873 = vmatpush3.bf16.msra.mxu1 %v6870_v29  ;;  %v4621_v21 = vsel %vm783_vm2, %v8894_v18, 0.0 }
 0xf52   :  { %6880 = vmatprep.subr.msk.bf16.mxu1 %vm7951_vm3, %v8896_v20  ;;  %v4612_v53 = vsel %vm783_vm2, %v8898_v32, 0.0 }
 0xf53   :  { %4622 = vadd.xlane.f32.xlu1 %v4621_v21  ;;  %4613 = vadd.xlane.f32.xlu0 %v4612_v53 }
 0xf55   :  { %v8907_v4 = vpop.eup %7218 }
 0xf56   :  { %v4618_v36 = vsel %vm783_vm2, %v8907_v4, 0.0 }
 0xf57   :  { %4619 = vadd.xlane.f32.xlu0 %v4618_v36 }
 0xf64   :  { %4918 = vrot.lane.b32.xlu1 %v8697_v22, %s7523_s15  ;;  %v8928_v22 = vmul.f32 0.25, %v8846_v2 }
 0xf66   :  { %v4043_v2 = vsel %vm783_vm2, %v8928_v22, -inf }
 0xf68   :  { %4922 = vrot.lane.b32.xlu1 %v8705_v5, %s7523_s15  ;;  %v8931_v5 = vmul.f32 0.25, %v8848_v10  ;;  %v8948_v10 = vmul.f32 0.25, %v8850_v52  ;;  %v4913_v52 = vpop.permute.xlu1 %4912 }
 0xf6a   :  { %v4052_v35 = vsel %vm783_vm2, %v8931_v5, -inf  ;;  %v4049_v43 = vsel %vm783_vm2, %v8948_v10, -inf }
 0xf6c   :  { %4926 = vrot.lane.b32.xlu1 %v8713_v8, %s7523_s15  ;;  %v4040_v8 = vsel %vm783_vm2, %v8922_v34, -inf  ;;  %v4915_v7 = vpop.permute.xlu1 %4914 }
 0xf6d   :  { %4920 = vrot.lane.b32.xlu0 %v8703_v62, %s7523_s15  ;;  %v4037_v62 = vsel %vm783_vm2, %v8925_v58, -inf }
 0xf71   :  { %4924 = vrot.lane.b32.xlu0 %v8711_v56, %s7523_s15  ;;  %v8938_v56 = vmul.f32 0.25, %v8844_v24 }
 0xf73   :  { %v4046_v24 = vsel %vm783_vm2, %v8938_v56, -inf }
 0xf90   :  { %4041 = vmax.xlane.f32.xlu1 %v4040_v8  ;;  %4038 = vmax.xlane.f32.xlu0 %v4037_v62 }
 0xf94   :  { %4053 = vmax.xlane.f32.xlu1 %v4052_v35  ;;  %4044 = vmax.xlane.f32.xlu0 %v4043_v2 }
 0xf98   :  { %4059 = vmax.xlane.f32.xlu1 %v4058_v28  ;;  %4047 = vmax.xlane.f32.xlu0 %v4046_v24 }
 0xf9c   :  { %4050 = vmax.xlane.f32.xlu0 %v4049_v43 }
 0xfa0   :  { %4056 = vmax.xlane.f32.xlu0 %v4055_v6 }
 0xfd3   :  { %v4605_v60 = vpop.xlane.xlu1 %4604 }
 0xfd4   :  { %7220 = vrcp.f32 %v4605_v60  ;;  %v4602_v17 = vpop.xlane.xlu0 %4601 }
 0xfd5   :  { %7222 = vrcp.f32 %v4602_v17 }
 0xfd8   :  { %v4611_v44 = vpop.xlane.xlu1 %4610 }
 0xfd9   :  { %7224 = vrcp.f32 %v4611_v44 }
 0xfdc   :  { %v4617_v15 = vpop.xlane.xlu1 %4616  ;;  %v4608_v37 = vpop.xlane.xlu0 %4607 }
 0xfdd   :  { %7226 = vrcp.f32 %v4608_v37 }
 0xfde   :  { %v7221_v63 = vpop.eup %7220  ;;  %7228 = vrcp.f32 %v4617_v15 }
 0xfdf   :  { %v7223_v14 = vpop.eup %7222  ;;  %v4633_v13 = vmul.f32 %v7221_v63, %v8874_v42 }
 0xfe0   :  { %v4614_v3 = vpop.xlane.xlu0 %4613  ;;  %v4632_v40 = vmul.f32 %v7223_v14, %v8876_v16  ;;  %v4623_v51 = vpop.xlane.xlu1 %4622 }
 0xfe1   :  { %7230 = vrcp.f32 %v4614_v3 }
 0xfe2   :  { %6560 = vmatprep.mubr.msk.f32.mxu1 %vm783_vm2, %v4632_v40  ;;  %7232 = vrcp.f32 %v4623_v51 }
 0xfe3   :  { %6561 = vmatmul.mubr.msk.f32.vlgmr.msra.gmra.mrb[72].mxu1 %vm783_vm2, %v4633_v13  ;;  %v7225_v33 = vpop.eup %7224 }
 0xfe4   :  { %6883 = vmatpush3.bf16.xpose.msk.msra.mxu1 %vm7951_vm3, %v8896_v20  ;;  %v4620_v11 = vpop.xlane.xlu0 %4619  ;;  %v4635_v42 = vmul.f32 %v7225_v33, %v8882_v39  ;;  %v4919_v55 = vpop.permute.xlu1 %4918 }
 0xfe5   :  { %7234 = vrcp.f32 %v4620_v11 }
 0xfe7   :  { %v7227_v61 = vpop.eup %7226 }
 0xfe8   :  { %v4634_v16 = vmul.f32 %v7227_v61, %v8888_v0  ;;  %v7229_v38 = vpop.eup %7228  ;;  %v4921_v23 = vpop.permute.xlu0 %4920 }
 0xfe9   :  { %v4637_v49 = vmul.f32 %v7229_v38, %v8886_v54  ;;  %v4923_v48 = vpop.permute.xlu1 %4922 }
 0xfea   :  { %6563 = vmatprep.mubr.msk.f32.mxu1 %vm783_vm2, %v4634_v16 }
 0xfeb   :  { %v7231_v59 = vpop.eup %7230  ;;  %6564 = vmatmul.mubr.msk.f32.gmra.mrb[74].mxu1 %vm783_vm2, %v4635_v42 }
 0xfec   :  { %v4636_v31 = vmul.f32 %v7231_v59, %v8898_v32  ;;  %v7233_v9 = vpop.eup %7232  ;;  %v4925_v54 = vpop.permute.xlu0 %4924 }
 0xfed   :  { %v4639_v39 = vmul.f32 %v7233_v9, %v8894_v18  ;;  %v4927_v25 = vpop.permute.xlu1 %4926 }
 0xfee   :  { %6566 = vmatprep.mubr.msk.f32.mxu1 %vm783_vm2, %v4636_v31 }
 0xfef   :  { %v7235_v47 = vpop.eup %7234  ;;  %6567 = vmatmul.mubr.msk.f32.gmra.mrb[76].mxu1 %vm783_vm2, %v4637_v49 }
 0xff0   :  { %v4638_v45 = vmul.f32 %v7235_v47, %v8907_v4 }
 0xff2   :  { %6569 = vmatprep.mubr.msk.f32.mxu1 %vm783_vm2, %v4638_v45 }
 0xff3   :  { %6570 = vmatmul.mubr.msk.f32.gmra.mrb[78].mxu1 %vm783_vm2, %v4639_v39 }
 0xff4   :  { %6592 = vmatprep.mubr.msk.f32.mxu1 %vm783_vm2, %v4913_v52 }
 0xff7   :  { %6593 = vmatmul.mubr.msk.f32.vlgmr.msra.gmra.mrb[80].mxu1 %vm783_vm2, %v4915_v7 }
 0xff8   :  { %6595 = vmatprep.mubr.msk.f32.mxu1 %vm783_vm2, %v4917_v30 }
 0xffb   :  { %6596 = vmatmul.mubr.msk.f32.gmra.mrb[82].mxu1 %vm783_vm2, %v4919_v55 }
 0xffc   :  { %6598 = vmatprep.mubr.msk.f32.mxu1 %vm783_vm2, %v4921_v23 }
 0xfff   :  { %6599 = vmatmul.mubr.msk.f32.gmra.mrb[84].mxu1 %vm783_vm2, %v4923_v48 }
0x1000   :  { %6601 = vmatprep.mubr.msk.f32.mxu1 %vm783_vm2, %v4925_v54 }
0x1003   :  { %6602 = vmatmul.mubr.msk.f32.gmra.mrb[86].mxu1 %vm783_vm2, %v4927_v25 }
0x101d   :  { %v4042_v27 = vpop.xlane.xlu1 %4041  ;;  %v4039_v0 = vpop.xlane.xlu0 %4038 }
0x101e   :  { %v4062_v29 = vsub.f32 %v8922_v34, %v4042_v27  ;;  %v4061_v57 = vsub.f32 %v8925_v58, %v4039_v0 }
0x1020   :  { %v4071_v41 = vmul.f32 1.442695, %v4062_v29  ;;  %v4069_v18 = vmul.f32 1.442695, %v4061_v57 }
0x1021   :  { %v4054_v20 = vpop.xlane.xlu1 %4053  ;;  %v4045_v32 = vpop.xlane.xlu0 %4044 }
0x1022   :  { %7236 = vpow2.f32 %v4071_v41  ;;  %v4063_v21 = vsub.f32 %v8928_v22, %v4045_v32  ;;  %v4066_v4 = vsub.f32 %v8931_v5, %v4054_v20 }
0x1023   :  { %7238 = vpow2.f32 %v4069_v18 }
0x1024   :  { %v4073_v53 = vmul.f32 1.442695, %v4063_v21  ;;  %v4079_v34 = vmul.f32 1.442695, %v4066_v4 }
0x1025   :  { %v4048_v36 = vpop.xlane.xlu0 %4047  ;;  %v4060_v8 = vpop.xlane.xlu1 %4059 }
0x1026   :  { %v4064_v62 = vsub.f32 %v8938_v56, %v4048_v36  ;;  %7240 = vpow2.f32 %v4073_v53  ;;  %v4068_v58 = vsub.f32 %v8941_v1, %v4060_v8 }
0x1028   :  { %v4075_v35 = vmul.f32 1.442695, %v4064_v62  ;;  %v4083_v6 = vmul.f32 1.442695, %v4068_v58 }
0x1029   :  { %v4051_v2 = vpop.xlane.xlu0 %4050 }
0x102a   :  { %v4065_v28 = vsub.f32 %v8948_v10, %v4051_v2  ;;  %7242 = vpow2.f32 %v4075_v35 }
0x102b   :  { %7244 = vpow2.f32 %v4079_v34 }
0x102c   :  { %v8995_v24 = vpop.eup %7236  ;;  %v4077_v22 = vmul.f32 1.442695, %v4065_v28 }
0x102d   :  { %v7239_v43 = vpop.eup %7238  ;;  %v4057_v5 = vpop.xlane.xlu0 %4056  ;;  %v4088_v52 = vsel %vm783_vm2, %v8995_v24, 0.0 }
0x102e   :  { %7246 = vpow2.f32 %v4077_v22  ;;  %v4067_v56 = vsub.f32 %v8955_v12, %v4057_v5  ;;  %4089 = vadd.xlane.f32.xlu1 %v4088_v52  ;;  %v4085_v1 = vsel %vm783_vm2, %v7239_v43, 0.0 }
0x102f   :  { %4086 = vadd.xlane.f32.xlu0 %v4085_v1  ;;  %7248 = vpow2.f32 %v4083_v6 }
0x1030   :  { %v4081_v7 = vmul.f32 1.442695, %v4067_v56  ;;  %v9001_v10 = vpop.eup %7240 }
0x1031   :  { %v4091_v30 = vsel %vm783_vm2, %v9001_v10, 0.0 }
0x1032   :  { %7250 = vpow2.f32 %v4081_v7 }
0x1033   :  { %4092 = vadd.xlane.f32.xlu0 %v4091_v30 }
0x1034   :  { %v9005_v60 = vpop.eup %7242 }
0x1035   :  { %v4094_v17 = vsel %vm783_vm2, %v9005_v60, 0.0  ;;  %v9009_v44 = vpop.eup %7244 }
0x1036   :  { %4095 = vadd.xlane.f32.xlu1 %v4094_v17  ;;  %v4100_v37 = vsel %vm783_vm2, %v9009_v44, 0.0 }
0x1038   :  { %v9011_v12 = vpop.eup %7246 }
0x1039   :  { %v4097_v15 = vsel %vm783_vm2, %v9011_v12, 0.0  ;;  %v9017_v63 = vpop.eup %7248 }
0x103a   :  { %4098 = vadd.xlane.f32.xlu0 %v4097_v15  ;;  %4101 = vadd.xlane.f32.xlu1 %v4100_v37  ;;  %v4106_v40 = vsel %vm783_vm2, %v9017_v63, 0.0 }
0x103c   :  { %v9019_v14 = vpop.eup %7250 }
0x103d   :  { %v4103_v3 = vsel %vm783_vm2, %v9019_v14, 0.0 }
0x103e   :  { %4104 = vadd.xlane.f32.xlu0 %v4103_v3  ;;  %4107 = vadd.xlane.f32.xlu1 %v4106_v40 }
0x1054   :  { %7023 = vrot.lane.b32.xlu0 %v8722_v19, %s7521_s0 }
0x10b6   :  { %v9027_v13 = vpop.f32.mrb[72].mxu1 }
0x10b7   :  { %v9029_v51 = vpop.f32.mrb[73].mxu1 }
0x10bb   :  { %v4090_v16 = vpop.xlane.xlu1 %4089 }
0x10bc   :  { %v4087_v11 = vpop.xlane.xlu0 %4086 }
0x10bd   :  { %7252 = vrcp.f32 %v4087_v11 }
0x10be   :  { %v9031_v33 = vpop.f32.mrb[74].mxu1  ;;  %7254 = vrcp.f32 %v4090_v16 }
0x10bf   :  { %v9033_v61 = vpop.f32.mrb[75].mxu1 }
0x10c0   :  { %v4093_v42 = vpop.xlane.xlu0 %4092 }
0x10c1   :  { %7256 = vrcp.f32 %v4093_v42 }
0x10c2   :  { %v9035_v38 = vpop.f32.mrb[76].mxu1 }
0x10c3   :  { %v9037_v59 = vpop.f32.mrb[77].mxu1  ;;  %v4096_v31 = vpop.xlane.xlu1 %4095 }
0x10c4   :  { %7258 = vrcp.f32 %v4096_v31 }
0x10c6   :  { %v9039_v49 = vpop.f32.mrb[78].mxu1 }
0x10c7   :  { %v7253_v9 = vpop.eup %7252  ;;  %v4099_v47 = vpop.xlane.xlu0 %4098 }
0x10c8   :  { %v9041_v45 = vpop.f32.mrb[79].mxu1  ;;  %v4117_v39 = vmul.f32 %v7253_v9, %v7239_v43  ;;  %v4102_v48 = vpop.xlane.xlu1 %4101  ;;  %7260 = vrcp.f32 %v4099_v47 }
0x10c9   :  { %7262 = vrcp.f32 %v4102_v48  ;;  %v7255_v36 = vpop.eup %7254 }
0x10ca   :  { %6512 = vmatprep.mubr.msk.f32.mxu0 %vm783_vm2, %v4117_v39  ;;  %v6594_v55 = vpop.f32.mrb[80].mxu1  ;;  %v4118_v34 = vmul.f32 %v7255_v36, %v8995_v24 }
0x10cb   :  { %v4105_v23 = vpop.xlane.xlu0 %4104  ;;  %v9044_v54 = vmul.f32 0.25, %v6594_v55  ;;  %v5018_v25 = vpop.f32.mrb[81].mxu1 }
0x10cc   :  { %v9046_v27 = vmul.f32 0.25, %v5018_v25  ;;  %v4108_v32 = vpop.xlane.xlu1 %4107  ;;  %7264 = vrcp.f32 %v4105_v23  ;;  %v7257_v62 = vpop.eup %7256 }
0x10cd   :  { %v5068_v0 = vsel %vm783_vm2, %v9044_v54, -inf  ;;  %7266 = vrcp.f32 %v4108_v32  ;;  %v4119_v43 = vmul.f32 %v7257_v62, %v9001_v10 }
0x10ce   :  { %5069 = vmax.xlane.f32.xlu1 %v5068_v0  ;;  %v6597_v29 = vpop.f32.mrb[82].mxu1  ;;  %v5065_v4 = vsel %vm783_vm2, %v9046_v27, -inf  ;;  %v7259_v28 = vpop.eup %7258 }
0x10cf   :  { %v7024_v57 = vpop.permute.xlu0 %7023  ;;  %v5028_v41 = vpop.f32.mrb[83].mxu1  ;;  %v5060_v21 = vmul.f32 0.25, %v6597_v29  ;;  %v4120_v1 = vmul.f32 %v7259_v28, %v9005_v60 }
0x10d0   :  { %v7026_v18 = vunpack.i.h.bf16 %v7024_v57  ;;  %v7025_v20 = vunpack.i.l.bf16 %v7024_v57  ;;  %v5059_v58 = vmul.f32 0.25, %v5028_v41 }
0x10d1   :  { %v5074_v2 = vsel %vm783_vm2, %v5060_v21, -inf }
0x10d2   :  { %v6856_v53 = vpack.c.bf16 %v7026_v18, %v7025_v20  ;;  %5066 = vmax.xlane.f32.xlu1 %v5065_v4  ;;  %v6600_v8 = vpop.f32.mrb[84].mxu1  ;;  %v7261_v6 = vpop.eup %7260  ;;  %v5071_v56 = vsel %vm783_vm2, %v5059_v58, -inf }
0x10d3   :  { %v5038_v35 = vpop.f32.mrb[85].mxu1  ;;  %v7263_v7 = vpop.eup %7262  ;;  %v4121_v30 = vmul.f32 %v7261_v6, %v9011_v12 }
0x10d4   :  { %6857 = vmatprep.subr.bf16.mxu0 %v6856_v53  ;;  %v5061_v24 = vmul.f32 0.25, %v5038_v35  ;;  %v4122_v60 = vmul.f32 %v7263_v7, %v9009_v44 }
0x10d5   :  { %6859 = vmatpush3.bf16.msra.mxu0 %v6856_v53 }
0x10d6   :  { %6861 = vmatprep.subr.bf16.mxu0 %v8499_v46  ;;  %5075 = vmax.xlane.f32.xlu1 %v5074_v2  ;;  %v6603_v22 = vpop.f32.mrb[86].mxu1  ;;  %v7265_v17 = vpop.eup %7264  ;;  %v5077_v15 = vsel %vm783_vm2, %v5061_v24, -inf }
0x10d7   :  { %v5048_v5 = vpop.f32.mrb[87].mxu1  ;;  %v7267_v37 = vpop.eup %7266  ;;  %v4123_v3 = vmul.f32 %v7265_v17, %v9019_v14  ;;  %v5064_v12 = vmul.f32 0.25, %v6603_v22 }
0x10d8   :  { %6513 = vmatmul.mubr.msk.f32.vlgmr.msra.gmra.mrb[72].mxu0 %vm783_vm2, %v4118_v34  ;;  %v9057_v52 = vmul.f32 0.25, %v5048_v5  ;;  %v4124_v11 = vmul.f32 %v7267_v37, %v9017_v63 }
0x10d9   :  { %6515 = vmatprep.mubr.msk.f32.mxu0 %vm783_vm2, %v4119_v43  ;;  %6863 = vmatpush3.bf16.msra.mxu0 %v8499_v46  ;;  %v5062_v46 = vmul.f32 0.25, %v6600_v8  ;;  %v5086_v16 = vsel %vm783_vm2, %v5064_v12, -inf }
0x10da   :  { %6875 = vmatprep.subr.bf16.mxu0 %v8503_v26  ;;  %5072 = vmax.xlane.f32.xlu1 %v5071_v56  ;;  %v5083_v10 = vsel %vm783_vm2, %v9057_v52, -inf }
0x10db   :  { %5084 = vmax.xlane.f32.xlu0 %v5083_v10  ;;  %v5080_v40 = vsel %vm783_vm2, %v5062_v46, -inf }
0x10dc   :  { %6516 = vmatmul.mubr.msk.f32.gmra.mrb[74].mxu0 %vm783_vm2, %v4120_v1 }
0x10dd   :  { %6518 = vmatprep.mubr.msk.f32.mxu0 %vm783_vm2, %v4121_v30 }
0x10de   :  { %5078 = vmax.xlane.f32.xlu1 %v5077_v15 }
0x10e0   :  { %6519 = vmatmul.mubr.msk.f32.gmra.mrb[76].mxu0 %vm783_vm2, %v4122_v60 }
0x10e1   :  { %6521 = vmatprep.mubr.msk.f32.mxu0 %vm783_vm2, %v4123_v3 }
0x10e2   :  { %5081 = vmax.xlane.f32.xlu1 %v5080_v40 }
0x10e4   :  { %6522 = vmatmul.mubr.msk.f32.gmra.mrb[78].mxu0 %vm783_vm2, %v4124_v11 }
0x10e6   :  { %5087 = vmax.xlane.f32.xlu1 %v5086_v16 }
0x115b   :  { %v5070_v44 = vpop.xlane.xlu1 %5069 }
0x115c   :  { %v5090_v42 = vsub.f32 %v9044_v54, %v5070_v44 }
0x115e   :  { %v5099_v31 = vmul.f32 1.442695, %v5090_v42 }
0x115f   :  { %v5067_v14 = vpop.xlane.xlu1 %5066 }
0x1160   :  { %7268 = vpow2.f32 %v5099_v31  ;;  %v5089_v9 = vsub.f32 %v9046_v27, %v5067_v14 }
0x1162   :  { %v5097_v47 = vmul.f32 1.442695, %v5089_v9 }
0x1163   :  { %v5076_v39 = vpop.xlane.xlu1 %5075 }
0x1164   :  { %7270 = vpow2.f32 %v5097_v47  ;;  %v5092_v55 = vsub.f32 %v5060_v21, %v5076_v39 }
0x1166   :  { %v5103_v23 = vmul.f32 1.442695, %v5092_v55 }
0x1167   :  { %v5073_v63 = vpop.xlane.xlu1 %5072 }
0x1168   :  { %7272 = vpow2.f32 %v5103_v23  ;;  %v5091_v48 = vsub.f32 %v5059_v58, %v5073_v63  ;;  %v5085_v41 = vpop.xlane.xlu0 %5084 }
0x1169   :  { %v5095_v53 = vsub.f32 %v9057_v52, %v5085_v41 }
0x116a   :  { %v9080_v25 = vpop.eup %7268  ;;  %v5101_v0 = vmul.f32 1.442695, %v5091_v48 }
0x116b   :  { %v5079_v29 = vpop.xlane.xlu1 %5078  ;;  %v5116_v54 = vsel %vm783_vm2, %v9080_v25, 0.0  ;;  %v5109_v58 = vmul.f32 1.442695, %v5095_v53 }
0x116c   :  { %7274 = vpow2.f32 %v5101_v0  ;;  %5117 = vadd.xlane.f32.xlu1 %v5116_v54  ;;  %v5093_v27 = vsub.f32 %v5061_v24, %v5079_v29 }
0x116e   :  { %v9084_v57 = vpop.eup %7270  ;;  %v5105_v4 = vmul.f32 1.442695, %v5093_v27 }
0x116f   :  { %v5082_v18 = vpop.xlane.xlu1 %5081  ;;  %v5113_v20 = vsel %vm783_vm2, %v9084_v57, 0.0 }
0x1170   :  { %v5094_v32 = vsub.f32 %v5062_v46, %v5082_v18  ;;  %5114 = vadd.xlane.f32.xlu1 %v5113_v20 }
0x1172   :  { %v9088_v21 = vpop.eup %7272  ;;  %v5107_v36 = vmul.f32 1.442695, %v5094_v32 }
0x1173   :  { %v5088_v8 = vpop.xlane.xlu1 %5087  ;;  %v5122_v62 = vsel %vm783_vm2, %v9088_v21, 0.0 }
0x1174   :  { %7276 = vpow2.f32 %v5107_v36  ;;  %v5096_v35 = vsub.f32 %v5064_v12, %v5088_v8  ;;  %5123 = vadd.xlane.f32.xlu1 %v5122_v62  ;;  %v7316_v36 = vld [vmem:[#allocation2 + $0x40] sm:$0xff] }
0x1175   :  { %7278 = vpow2.f32 %v5105_v4 }
0x1176   :  { %v9093_v34 = vpop.eup %7274  ;;  %v5111_v2 = vmul.f32 1.442695, %v5096_v35  ;;  %v7317_v35 = vld [vmem:[#allocation2 + $0x58] sm:$0xff] }
0x1177   :  { %v5119_v28 = vsel %vm783_vm2, %v9093_v34, 0.0 }
0x1178   :  { %7280 = vpow2.f32 %v5111_v2  ;;  %5120 = vadd.xlane.f32.xlu1 %v5119_v28  ;;  %v7318_v2 = vld [vmem:[#allocation2 + $0x50] sm:$0xff] }
0x1179   :  { %7282 = vpow2.f32 %v5109_v58 }
0x117e   :  { %v9097_v22 = vpop.eup %7276 }
0x117f   :  { %v5128_v43 = vsel %vm783_vm2, %v9097_v22, 0.0  ;;  %v9101_v6 = vpop.eup %7278 }
0x1180   :  { %5129 = vadd.xlane.f32.xlu1 %v5128_v43  ;;  %v5125_v52 = vsel %vm783_vm2, %v9101_v6, 0.0  ;;  %v7319_v43 = vld [vmem:[#allocation2 + $0x68] sm:$0xff] }
0x1182   :  { %v9103_v5 = vpop.eup %7280 }
0x1183   :  { %v5134_v24 = vsel %vm783_vm2, %v9103_v5, 0.0  ;;  %v9109_v56 = vpop.eup %7282 }
0x1184   :  { %5126 = vadd.xlane.f32.xlu1 %v5125_v52  ;;  %5135 = vadd.xlane.f32.xlu0 %v5134_v24  ;;  %v5131_v1 = vsel %vm783_vm2, %v9109_v56, 0.0  ;;  %v7320_v52 = vld [vmem:[#allocation2 + $0x60] sm:$0xff] }
0x1188   :  { %5132 = vadd.xlane.f32.xlu1 %v5131_v1  ;;  %v7321_v1 = vld [vmem:[#allocation2 + $0x78] sm:$0xff] }
0x1199   :  { %7028 = vrot.lane.b32.xlu1 %v8722_v19, %s7523_s15 }
0x11ab   :  { %v6514_v7 = vpop.f32.mrb[72].mxu0 }
0x11ac   :  { %v4223_v10 = vpop.f32.mrb[73].mxu0 }
0x11ad   :  { %6528 = vmatprep.mubr.msk.f32.mxu0 %vm783_vm2, %v4223_v10 }
0x11ae   :  { %6529 = vmatmul.mubr.msk.f32.vlgmr.msra.gmra.mrb[64].mxu0 %vm783_vm2, %v6514_v7 }
0x11af   :  { %v6517_v30 = vpop.f32.mrb[74].mxu0  ;;  %6877 = vmatpush3.bf16.msra.mxu0 %v8503_v26 }
0x11b0   :  { %v4233_v17 = vpop.f32.mrb[75].mxu0 }
0x11b1   :  { %6531 = vmatprep.mubr.msk.f32.mxu0 %vm783_vm2, %v4233_v17 }
0x11b2   :  { %6532 = vmatmul.mubr.msk.f32.gmra.mrb[66].mxu0 %vm783_vm2, %v6517_v30  ;;  %v7322_v30 = vld [vmem:[#allocation2 + $0x70] sm:$0xff] }
0x11b3   :  { %v6520_v46 = vpop.f32.mrb[76].mxu0 }
0x11b4   :  { %v4243_v15 = vpop.f32.mrb[77].mxu0 }
0x11b5   :  { %6534 = vmatprep.mubr.msk.f32.mxu0 %vm783_vm2, %v4243_v15 }
0x11b6   :  { %6535 = vmatmul.mubr.msk.f32.gmra.mrb[68].mxu0 %vm783_vm2, %v6520_v46 }
0x11b7   :  { %v6523_v19 = vpop.f32.mrb[78].mxu0 }
0x11b8   :  { %v4253_v60 = vpop.f32.mrb[79].mxu0 }
0x11b9   :  { %6537 = vmatprep.mubr.msk.f32.mxu0 %vm783_vm2, %v4253_v60 }
0x11ba   :  { %6538 = vmatmul.mubr.msk.f32.gmra.mrb[70].mxu0 %vm783_vm2, %v6523_v19 }
0x11bb   :  { %6576 = vmatprep.mubr.msk.f32.mxu0 %vm783_vm2, %v9029_v51 }
0x11be   :  { %6577 = vmatmul.mubr.msk.f32.vlgmr.msra.gmra.mrb[64].mxu0 %vm783_vm2, %v9027_v13 }
0x11bf   :  { %6579 = vmatprep.mubr.msk.f32.mxu0 %vm783_vm2, %v9033_v61 }
0x11c2   :  { %6580 = vmatmul.mubr.msk.f32.gmra.mrb[66].mxu0 %vm783_vm2, %v9031_v33 }
0x11c3   :  { %6582 = vmatprep.mubr.msk.f32.mxu0 %vm783_vm2, %v9037_v59 }
0x11c6   :  { %6583 = vmatmul.mubr.msk.f32.gmra.mrb[68].mxu0 %vm783_vm2, %v9035_v38 }
0x11c7   :  { %6585 = vmatprep.mubr.msk.f32.mxu0 %vm783_vm2, %v9041_v45 }
0x11ca   :  { %6586 = vmatmul.mubr.msk.f32.gmra.mrb[70].mxu0 %vm783_vm2, %v9039_v49 }
0x11f9   :  { %v5118_v26 = vpop.xlane.xlu1 %5117 }
0x11fd   :  { %v5115_v13 = vpop.xlane.xlu1 %5114 }
0x11fe   :  { %7284 = vrcp.f32 %v5115_v13 }
0x11ff   :  { %7286 = vrcp.f32 %v5118_v26 }
0x1201   :  { %v5124_v51 = vpop.xlane.xlu1 %5123 }
0x1205   :  { %v5121_v37 = vpop.xlane.xlu1 %5120 }
0x1206   :  { %7288 = vrcp.f32 %v5121_v37 }
0x1207   :  { %7290 = vrcp.f32 %v5124_v51 }
0x1208   :  { %v7285_v61 = vpop.eup %7284 }
0x1209   :  { %v5145_v33 = vmul.f32 %v7285_v61, %v9084_v57  ;;  %v7287_v16 = vpop.eup %7286 }
0x120a   :  { %v5146_v42 = vmul.f32 %v7287_v16, %v9080_v25 }
0x120b   :  { %6608 = vmatprep.mubr.msk.f32.mxu0 %vm783_vm2, %v5145_v33 }
0x120d   :  { %v5130_v59 = vpop.xlane.xlu1 %5129 }
0x1210   :  { %v7289_v44 = vpop.eup %7288 }
0x1211   :  { %v5127_v3 = vpop.xlane.xlu1 %5126  ;;  %v5136_v40 = vpop.xlane.xlu0 %5135  ;;  %v5147_v14 = vmul.f32 %v7289_v44, %v9093_v34 }
0x1212   :  { %7292 = vrcp.f32 %v5127_v3  ;;  %v7291_v31 = vpop.eup %7290 }
0x1213   :  { %7294 = vrcp.f32 %v5130_v59  ;;  %v5148_v47 = vmul.f32 %v7291_v31, %v9088_v21  ;;  %v7315_v21 = vld [vmem:[#allocation2 + $0x48] sm:$0xff] }
0x1215   :  { %v5133_v38 = vpop.xlane.xlu1 %5132 }
0x1216   :  { %7296 = vrcp.f32 %v5133_v38 }
0x1217   :  { %7298 = vrcp.f32 %v5136_v40 }
0x1219   :  { %v7029_v45 = vpop.permute.xlu1 %7028 }
0x121a   :  { %v7031_v12 = vunpack.i.h.bf16 %v7029_v45  ;;  %v7030_v49 = vunpack.i.l.bf16 %v7029_v45 }
0x121c   :  { %v6884_v11 = vpack.c.bf16 %v7031_v12, %v7030_v49  ;;  %v7293_v9 = vpop.eup %7292 }
0x121d   :  { %v7295_v39 = vpop.eup %7294  ;;  %v5149_v55 = vmul.f32 %v7293_v9, %v9101_v6 }
0x121e   :  { %6885 = vmatprep.subr.bf16.mxu0 %v6884_v11  ;;  %v5150_v63 = vmul.f32 %v7295_v39, %v9097_v22 }
0x121f   :  { %6887 = vmatpush3.bf16.msra.mxu0 %v6884_v11 }
0x1220   :  { %6889 = vmatprep.subr.bf16.mxu0 %v8595_v50  ;;  %v7297_v23 = vpop.eup %7296 }
0x1221   :  { %v7299_v48 = vpop.eup %7298  ;;  %v5151_v25 = vmul.f32 %v7297_v23, %v9109_v56 }
0x1222   :  { %6609 = vmatmul.mubr.msk.f32.vlgmr.msra.gmra.mrb[80].mxu0 %vm783_vm2, %v5146_v42 }
0x1223   :  { %6611 = vmatprep.mubr.msk.f32.mxu0 %vm783_vm2, %v5147_v14  ;;  %6891 = vmatpush3.bf16.msra.mxu0 %v8595_v50  ;;  %v5152_v50 = vmul.f32 %v7299_v48, %v9103_v5 }
0x1226   :  { %6612 = vmatmul.mubr.msk.f32.gmra.mrb[82].mxu0 %vm783_vm2, %v5148_v47 }
0x1227   :  { %6614 = vmatprep.mubr.msk.f32.mxu0 %vm783_vm2, %v5149_v55 }
0x122a   :  { %6615 = vmatmul.mubr.msk.f32.gmra.mrb[84].mxu0 %vm783_vm2, %v5150_v63 }
0x122b   :  { %6617 = vmatprep.mubr.msk.f32.mxu0 %vm783_vm2, %v5151_v25 }
0x122e   :  { %6618 = vmatmul.mubr.msk.f32.gmra.mrb[86].mxu0 %vm783_vm2, %v5152_v50 }
0x12f5   :  { %v6610_v0 = vpop.f32.mrb[80].mxu0 }
0x12f6   :  { %v5249_v29 = vpop.f32.mrb[81].mxu0 }
0x12f7   :  { %6624 = vmatprep.mubr.msk.f32.mxu0 %vm783_vm2, %v5249_v29 }
0x12f8   :  { %6625 = vmatmul.mubr.msk.f32.vlgmr.msra.gmra.mrb[64].mxu0 %vm783_vm2, %v6610_v0 }
0x12f9   :  { %v6613_v54 = vpop.f32.mrb[82].mxu0 }
0x12fa   :  { %v5259_v57 = vpop.f32.mrb[83].mxu0 }
0x12fb   :  { %6627 = vmatprep.mubr.msk.f32.mxu0 %vm783_vm2, %v5259_v57 }
0x12fc   :  { %6628 = vmatmul.mubr.msk.f32.gmra.mrb[66].mxu0 %vm783_vm2, %v6613_v54 }
0x12fd   :  { %v6616_v27 = vpop.f32.mrb[84].mxu0 }
0x12fe   :  { %v5269_v41 = vpop.f32.mrb[85].mxu0 }
0x12ff   :  { %6630 = vmatprep.mubr.msk.f32.mxu0 %vm783_vm2, %v5269_v41 }
0x1300   :  { %6631 = vmatmul.mubr.msk.f32.gmra.mrb[68].mxu0 %vm783_vm2, %v6616_v27 }
0x1301   :  { %v6619_v18 = vpop.f32.mrb[86].mxu0 }
0x1302   :  { %v5279_v20 = vpop.f32.mrb[87].mxu0 }
0x1303   :  { %6633 = vmatprep.mubr.msk.f32.mxu0 %vm783_vm2, %v5279_v20 }
0x1304   :  { %6634 = vmatmul.mubr.msk.f32.gmra.mrb[70].mxu0 %vm783_vm2, %v6619_v18 }
0x13cb   :  { %v6626_v32 = vpop.f32.mrb[64].mxu0 }
0x13cc   :  { %v6900_v53 = vadd.f32 %v7315_v21, %v6626_v32  ;;  %v5378_v4 = vpop.f32.mrb[65].mxu0 }
0x13cd   :  { %v6901_v8 = vadd.f32 %v7316_v36, %v5378_v4 }
0x13ce   :  { %5427 = vst.msk [vmem:[#allocation14 + $0x48] sm:$0xff] %vm200_vm1, %v6900_v53 }
0x13cf   :  { %5426 = vst.msk [vmem:[#allocation14 + $0x40] sm:$0xff] %vm200_vm1, %v6901_v8  ;;  %v6629_v62 = vpop.f32.mrb[66].mxu0 }
0x13d0   :  { %v6902_v34 = vadd.f32 %v7317_v35, %v6629_v62  ;;  %v5388_v58 = vpop.f32.mrb[67].mxu0 }
0x13d1   :  { %v6903_v28 = vadd.f32 %v7318_v2, %v5388_v58 }
0x13d2   :  { %5429 = vst.msk [vmem:[#allocation14 + $0x58] sm:$0xff] %vm200_vm1, %v6902_v34 }
0x13d3   :  { %5428 = vst.msk [vmem:[#allocation14 + $0x50] sm:$0xff] %vm200_vm1, %v6903_v28  ;;  %v6632_v22 = vpop.f32.mrb[68].mxu0 }
0x13d4   :  { %v6904_v6 = vadd.f32 %v7319_v43, %v6632_v22  ;;  %v5398_v5 = vpop.f32.mrb[69].mxu0 }
0x13d5   :  { %v6905_v24 = vadd.f32 %v7320_v52, %v5398_v5 }
0x13d6   :  { %5431 = vst.msk [vmem:[#allocation14 + $0x68] sm:$0xff] %vm200_vm1, %v6904_v6 }
0x13d7   :  { %5430 = vst.msk [vmem:[#allocation14 + $0x60] sm:$0xff] %vm200_vm1, %v6905_v24  ;;  %v6635_v56 = vpop.f32.mrb[70].mxu0 }
0x13d8   :  { %v6906_v7 = vadd.f32 %v7321_v1, %v6635_v56  ;;  %v5408_v10 = vpop.f32.mrb[71].mxu0 }
0x13d9   :  { %v6907_v17 = vadd.f32 %v7322_v30, %v5408_v10 }
0x13da   :  { %5433 = vst.msk [vmem:[#allocation14 + $0x78] sm:$0xff] %vm200_vm1, %v6906_v7 }
0x13db   :  { %5432 = vst.msk [vmem:[#allocation14 + $0x70] sm:$0xff] %vm200_vm1, %v6907_v17 }
0x13dc   :  { %7488 = shalt.err (!%p7485_p4)
}
0x13dd   :  { %s7489_s20 = scalar_lea.hbm %s9203_s14, 2048 }
0x13de   :  { %p7490_p5 = scmp.ne.s32.totalorder %s9203_s14, %s7489_s20  ;;  %p7493_p6 = scmp.lt.u32.totalorder %s7489_s20, %s9203_s14 }
0x13e0   :  { %p7495_p7 = pnand %p7493_p6, %p7490_p5 }
0x13e2   :  { %7498 = shalt.err (!%p7495_p7)
}
0x13e3   :  { %5445 = dma.vmem_to_hbm [thread:$0]  %s5440_s21, 2048, %s9203_s14, [#allocation4], %s7511_s25, %s7511_s25, %s7512_s26  }
0x13e4   :  { %7507 = dma.done.wait [#allocation4], 2048  }
0x13e5   :  { %7508 = vsyncadd [#allocation4], 4294965248 }
0x13e6   :  { %5449 = vsyncpa [#allocation3], 1 }
0x13e7   :  { %5450 = vsyncpa [#allocation6], 1 }
0x13e8   :  { %5451 = vsyncpa [#allocation9], 1 }
0x13e9   :  { %5452 = vsyncpa [#allocation12], 1 }
0x13ea   :  { %5453 = vsyncpa [#allocation4], 1 }

</bundles_post_ra>
